<compile_context>
chip_gen: v5e
topology: v5e:2x2
jax: 0.10.0
libtpu: 0.0.40
codegen_flags: <defaults>
</compile_context>

<pallas_src>
import functools

import jax
import jax.numpy as jnp
from jax import lax
from jax.experimental import pallas as pl
from jax.experimental.pallas import tpu as pltpu

DIMS = [784, 512, 256, 128, 64, 32, 10]
MIDDLE_LAYER = 3                 # routing applied to fc3: 256 -> 128
IN_GROUPS = 4
OUT_GROUPS = 4
NUM_PATHWAYS = IN_GROUPS * OUT_GROUPS                # 16
MIDDLE_IN = DIMS[MIDDLE_LAYER - 1]                   # 256
MIDDLE_OUT = DIMS[MIDDLE_LAYER]                      # 128
IN_GROUP_SIZE = MIDDLE_IN // IN_GROUPS               # 64  (contiguous groups)
OUT_GROUP_SIZE = MIDDLE_OUT // OUT_GROUPS            # 32  (contiguous groups)
WIDE_COLS = IN_GROUPS * MIDDLE_OUT + NUM_PATHWAYS    # 528 (4 y-blocks + router)
EXPAND_COLS = (IN_GROUPS + 1) * MIDDLE_OUT           # 640 (4 scale maps + wsum)


def _round_up(n, m):
    return ((n + m - 1) // m) * m


def _gelu_exact(v):
    # exact (erf-based) GELU, matching torch.nn.functional.gelu default
    return 0.5 * v * (1.0 + lax.erf(v * 0.7071067811865476))


def _gelu_tanh(v):
    # tanh approximation (EUP path); NOT bit-parity with torch's default GELU.
    c = 0.7978845608028654
    return 0.5 * v * (1.0 + jnp.tanh(c * (v + 0.044715 * v * v * v)))


def _softmax_last(s):
    s = s - jnp.max(s, axis=-1, keepdims=True)
    e = jnp.exp(s)
    return e / jnp.sum(e, axis=-1, keepdims=True)


def mlp_pathway_kernel(x_ref, w1, b1, w2, b2, w3, b3, w4, b4, w5, b5, w6, b6,
                       wr, br, w3w, ew, o_ref, *, use_wide, approx_gelu):
    gelu = _gelu_tanh if approx_gelu else _gelu_exact

    def dot_bf16(a, w_ref):
        # bf16 operands into the MXU, f32 accumulate (no-op cast if already bf16)
        return jnp.dot(a.astype(jnp.bfloat16), w_ref[...],
                       preferred_element_type=jnp.float32)

    x = x_ref[...]                                        # (TB, 784) bf16
    h1 = gelu(dot_bf16(x, w1) + b1[...])                  # (TB, 512) f32
    h2 = gelu(dot_bf16(h1, w2) + b2[...])                 # (TB, 256) == middle_input
    h2b = h2.astype(jnp.bfloat16)                         # single hoisted cast

    if use_wide:
        # One fused K=256 matmul: four block-diagonal y_i blocks (128 cols each)
        # plus the 16 router-logit columns.  Friendly to the 256-deep MXU.
        wide = jnp.dot(h2b, w3w[...], preferred_element_type=jnp.float32)   # (TB, 528)
        pw = _softmax_last(wide[:, IN_GROUPS * MIDDLE_OUT:] + br[...])      # (TB, 16)
        ys = [wide[:, i * MIDDLE_OUT:(i + 1) * MIDDLE_OUT]
              for i in range(IN_GROUPS)]
    else:
        # 128-deep MXU (v2-v5): 4 slim K=64 matmuls each map to a single pass.
        pw = _softmax_last(
            jnp.dot(h2b, wr[...], preferred_element_type=jnp.float32) + br[...])
        W3 = w3[...]                                      # (256, 128) bf16
        ys = [jnp.dot(h2b[:, i * IN_GROUP_SIZE:(i + 1) * IN_GROUP_SIZE],
                      W3[i * IN_GROUP_SIZE:(i + 1) * IN_GROUP_SIZE, :],
                      preferred_element_type=jnp.float32)
              for i in range(IN_GROUPS)]

    # Pathway-weight expansion on the MXU: (TB,16) @ (16,640) 0/1 matrix gives
    # the four per-input-group (TB,128) scale maps plus the i-summed weights
    # for the bias.  f32 operands -> numerically identical to a select chain.
    pwE = jnp.dot(pw, ew[...], preferred_element_type=jnp.float32)          # (TB, 640)

    # out[:, Oj] = sum_i pw[:, i*4+j] * (h2[:, Ii] @ W3[Ii, Oj]) + b3[Oj]*sum_i pw
    # (the reference's `weights.sum() > 1e-6` skip is always true under softmax,
    #  so every pathway is computed unconditionally)
    mid = b3[...] * pwE[:, IN_GROUPS * MIDDLE_OUT:]
    for i in range(IN_GROUPS):
        mid = mid + ys[i] * pwE[:, i * MIDDLE_OUT:(i + 1) * MIDDLE_OUT]
    mid = gelu(mid)                                       # (TB, 128)

    h4 = gelu(dot_bf16(mid, w4) + b4[...])                # (TB, 64)
    h5 = gelu(dot_bf16(h4, w5) + b5[...])                 # (TB, 32)
    o_ref[...] = dot_bf16(h5, w6) + b6[...]               # (TB, 10) f32


@functools.partial(jax.jit, static_argnames=("tile_b", "use_wide", "approx_gelu"))
def _mlp_forward(x, params, tile_b, use_wide, approx_gelu):
    B = x.shape[0]
    x2 = x.reshape(B, -1).astype(jnp.bfloat16)            # stream input as bf16
    assert x2.shape[1] == DIMS[0]

    tb = min(tile_b, _round_up(B, 16))                    # 16-row bf16 packing
    Bp = _round_up(B, tb)
    if Bp != B:
        x2 = jnp.pad(x2, ((0, Bp - B), (0, 0)))
    grid = (Bp // tb,)

    args = (x2,
            params["w1"], params["b1"], params["w2"], params["b2"],
            params["w3"], params["b3"], params["w4"], params["b4"],
            params["w5"], params["b5"], params["w6"], params["b6"],
            params["wr"], params["br"], params["w3w"], params["ew"])

    def resident(shape):
        # block index never changes -> DMA'd once and kept resident in VMEM.
        # (pipeline_mode=pl.Buffered(1) would trim ~1 MB of double-buffering on
        #  v7x; left at the default for maximum compiler compatibility.)
        return pl.BlockSpec(shape, lambda i: (0, 0))

    in_specs = [pl.BlockSpec((tb, DIMS[0]), lambda i: (i, 0))]
    for idx in range(6):
        in_specs.append(resident((DIMS[idx], DIMS[idx + 1])))
        in_specs.append(resident((1, DIMS[idx + 1])))
    in_specs.append(resident((MIDDLE_IN, NUM_PATHWAYS)))
    in_specs.append(resident((1, NUM_PATHWAYS)))
    in_specs.append(resident((MIDDLE_IN, WIDE_COLS)))
    in_specs.append(resident((NUM_PATHWAYS, EXPAND_COLS)))
    out_specs = pl.BlockSpec((tb, DIMS[-1]), lambda i: (i, 0))

    macs = (784 * 512 + 512 * 256 + 128 * 64 + 64 * 32 + 32 * 10
            + NUM_PATHWAYS * EXPAND_COLS
            + (MIDDLE_IN * WIDE_COLS if use_wide
               else MIDDLE_IN * NUM_PATHWAYS + IN_GROUPS * IN_GROUP_SIZE * MIDDLE_OUT))
    trans = (512 + 256 + 128 + 64 + 32) + NUM_PATHWAYS
    weight_bytes = 2 * (784 * 512 + 512 * 256 + 256 * 128 + 128 * 64 + 64 * 32
                        + 32 * 10 + MIDDLE_IN * NUM_PATHWAYS + MIDDLE_IN * WIDE_COLS)
    bias_bytes = 4 * (512 + 256 + 128 + 64 + 32 + 10 + NUM_PATHWAYS
                      + NUM_PATHWAYS * EXPAND_COLS)
    cost = pl.CostEstimate(
        flops=2 * Bp * macs,
        transcendentals=Bp * trans,
        bytes_accessed=weight_bytes + bias_bytes + Bp * (DIMS[0] * 2 + DIMS[-1] * 4))

    kernel = functools.partial(mlp_pathway_kernel, use_wide=use_wide,
                               approx_gelu=approx_gelu)
    out = pl.pallas_call(
        kernel,
        out_shape=jax.ShapeDtypeStruct((Bp, DIMS[-1]), jnp.float32),
        grid=grid,
        in_specs=in_specs,
        out_specs=out_specs,
        compiler_params=pltpu.CompilerParams(
            dimension_semantics=("parallel",),
            vmem_limit_bytes=32 * 1024 * 1024),
        cost_estimate=cost,
    )(*args)
    return out[:B]


def middle_pathway_mlp(x, params, tile_b=512, use_wide=None, approx_gelu=False):
    """x: any (B, ...) array flattening to (B, 784). Returns (B, 10) f32 logits."""
    if use_wide is None:
        kind = jax.devices()[0].device_kind.lower()
        # 128-deep-MXU generations are better served by the 4 slim K=64 matmuls.
        use_wide = not any(v in kind for v in ("v2", "v3", "v4", "v5"))
    return _mlp_forward(x, params, int(tile_b), bool(use_wide), bool(approx_gelu))


def _build_wide_w3(w3, wr):
    """Block-diagonal (256, 512) copy of W3 (rows of input group i nonzero only
    in output block i) with the router columns fused on the right -> (256, 528)
    bf16, so one K=256 matmul yields all four y_i plus the router logits."""
    w3w = jnp.zeros((MIDDLE_IN, WIDE_COLS), jnp.bfloat16)
    for i in range(IN_GROUPS):
        rows = slice(i * IN_GROUP_SIZE, (i + 1) * IN_GROUP_SIZE)
        cols = slice(i * MIDDLE_OUT, (i + 1) * MIDDLE_OUT)
        w3w = w3w.at[rows, cols].set(w3[rows, :])
    return w3w.at[:, IN_GROUPS * MIDDLE_OUT:].set(wr)


def _build_expand_matrix():
    """0/1 matrix (16, 640): columns [i*128, (i+1)*128) expand pathway weight
    (i, j=c//32); the last 128 columns expand the i-summed weights (bias term)."""
    p = jnp.arange(NUM_PATHWAYS)[:, None]
    c = jnp.arange(EXPAND_COLS)[None, :]
    blk = c // MIDDLE_OUT
    j_of_c = (c % MIDDLE_OUT) // OUT_GROUP_SIZE
    i_match = jnp.where(blk < IN_GROUPS, (p // OUT_GROUPS) == blk, True)
    j_match = (p % OUT_GROUPS) == j_of_c
    return (i_match & j_match).astype(jnp.float32)


def init_params(key):
    """Deterministic params mimicking nn.Linear init (uniform +/- 1/sqrt(fan_in)).

    Weights stored transposed as (in, out) bf16; biases as (1, out) f32.  Also
    builds the fused wide W3+router matrix and the constant expansion matrix."""
    params = {}
    keys = jax.random.split(key, 7)
    for idx in range(6):
        fan_in, fan_out = DIMS[idx], DIMS[idx + 1]
        kw, kb = jax.random.split(keys[idx])
        bound = 1.0 / (fan_in ** 0.5)
        W = jax.random.uniform(kw, (fan_out, fan_in), jnp.float32, -bound, bound)
        b = jax.random.uniform(kb, (fan_out,), jnp.float32, -bound, bound)
        params[f"w{idx + 1}"] = W.T.astype(jnp.bfloat16)   # (in, out) bf16
        params[f"b{idx + 1}"] = b[None, :]                 # (1, out) f32
    kw, kb = jax.random.split(keys[6])
    bound = 1.0 / (MIDDLE_IN ** 0.5)
    Wr = jax.random.uniform(kw, (NUM_PATHWAYS, MIDDLE_IN), jnp.float32, -bound, bound)
    br = jax.random.uniform(kb, (NUM_PATHWAYS,), jnp.float32, -bound, bound)
    params["wr"] = Wr.T.astype(jnp.bfloat16)
    params["br"] = br[None, :]
    params["w3w"] = _build_wide_w3(params["w3"], params["wr"])
    params["ew"] = _build_expand_matrix()
    return params


def reference_forward(x, params):
    """Pure-JAX replica of the PyTorch forward (middle_layer == 3), using the
    same bf16-operands / f32-accumulate matmul convention as the kernel."""
    def lin(a, w, b):
        return jnp.dot(a.astype(jnp.bfloat16), w,
                       preferred_element_type=jnp.float32) + b

    B = x.shape[0]
    h = x.reshape(B, -1).astype(jnp.float32)
    h = _gelu_exact(lin(h, params["w1"], params["b1"]))
    h = _gelu_exact(lin(h, params["w2"], params["b2"]))
    middle_input = h
    pw = _softmax_last(lin(middle_input, params["wr"], params["br"]))
    W3 = params["w3"]          # (256, 128) bf16, i.e. fc3.weight.T
    b3 = params["b3"][0]       # (128,) f32
    out = jnp.zeros((B, MIDDLE_OUT), jnp.float32)
    pathway_idx = 0
    for i in range(IN_GROUPS):
        for j in range(OUT_GROUPS):
            w = pw[:, pathway_idx][:, None]
            xin = middle_input[:, i * IN_GROUP_SIZE:(i + 1) * IN_GROUP_SIZE]
            Wsub = W3[i * IN_GROUP_SIZE:(i + 1) * IN_GROUP_SIZE,
                      j * OUT_GROUP_SIZE:(j + 1) * OUT_GROUP_SIZE]
            bsub = b3[j * OUT_GROUP_SIZE:(j + 1) * OUT_GROUP_SIZE]
            po = jnp.dot(xin.astype(jnp.bfloat16), Wsub,
                         preferred_element_type=jnp.float32) + bsub
            out = out.at[:, j * OUT_GROUP_SIZE:(j + 1) * OUT_GROUP_SIZE].add(po * w)
            pathway_idx += 1
    h = _gelu_exact(out)
    h = _gelu_exact(lin(h, params["w4"], params["b4"]))
    h = _gelu_exact(lin(h, params["w5"], params["b5"]))
    return lin(h, params["w6"], params["b6"])


if __name__ == "__main__":
    key = jax.random.PRNGKey(0)
    kp, kx = jax.random.split(key)
    params = init_params(kp)
    x = jax.random.normal(kx, (8, 1, 28, 28), jnp.float32)   # flattens to (8, 784)

    ref = jax.block_until_ready(reference_forward(x, params))

    out = jax.block_until_ready(middle_pathway_mlp(x, params))
    assert out.shape == (8, 10)
    assert bool(jnp.allclose(out, ref, atol=5e-3, rtol=5e-3)), "mismatch (auto path)"

    # Exercise both middle-layer forms so the path selected on any chip is valid.
    for wide in (False, True):
        o = jax.block_until_ready(middle_pathway_mlp(x, params, use_wide=wide))
        assert bool(jnp.allclose(o, ref, atol=5e-3, rtol=5e-3)), f"mismatch wide={wide}"

    # TODO(synk): record_activations / pathway_activations bookkeeping is host-side
    # Python dict logging with no device-side equivalent; not implemented.
    print("KERNEL_OK")
</pallas_src>

<mosaic_0001>
module attributes {stable_mosaic.version = 11 : i64} {
  func.func @mlp_pathway_kernel(%arg0: i32, %arg1: memref<16x784xbf16, #tpu.memory_space<vmem>>, %arg2: memref<784x512xbf16, #tpu.memory_space<vmem>>, %arg3: memref<1x512xf32, #tpu.memory_space<vmem>>, %arg4: memref<512x256xbf16, #tpu.memory_space<vmem>>, %arg5: memref<1x256xf32, #tpu.memory_space<vmem>>, %arg6: memref<256x128xbf16, #tpu.memory_space<vmem>>, %arg7: memref<1x128xf32, #tpu.memory_space<vmem>>, %arg8: memref<128x64xbf16, #tpu.memory_space<vmem>>, %arg9: memref<1x64xf32, #tpu.memory_space<vmem>>, %arg10: memref<64x32xbf16, #tpu.memory_space<vmem>>, %arg11: memref<1x32xf32, #tpu.memory_space<vmem>>, %arg12: memref<32x10xbf16, #tpu.memory_space<vmem>>, %arg13: memref<1x10xf32, #tpu.memory_space<vmem>>, %arg14: memref<256x16xbf16, #tpu.memory_space<vmem>>, %arg15: memref<1x16xf32, #tpu.memory_space<vmem>>, %arg16: memref<256x528xbf16, #tpu.memory_space<vmem>>, %arg17: memref<16x640xf32, #tpu.memory_space<vmem>>, %arg18: memref<16x10xf32, #tpu.memory_space<vmem>>) attributes {dimension_semantics = [#tpu.dimension_semantics<parallel>], iteration_bounds = array<i64: 1>, scalar_prefetch = 0 : i64, scratch_operands = 0 : i64, tpu.core_type = #tpu.core_type<tc>, window_params = [{transform_indices = @transform_0, window_bounds = array<i64: 16, 784>}, {pipeline_mode = #tpu.pipeline_mode<synchronous>, transform_indices = @transform_1, window_bounds = array<i64: 784, 512>}, {pipeline_mode = #tpu.pipeline_mode<synchronous>, transform_indices = @transform_2, window_bounds = array<i64: 1, 512>}, {pipeline_mode = #tpu.pipeline_mode<synchronous>, transform_indices = @transform_3, window_bounds = array<i64: 512, 256>}, {pipeline_mode = #tpu.pipeline_mode<synchronous>, transform_indices = @transform_4, window_bounds = array<i64: 1, 256>}, {pipeline_mode = #tpu.pipeline_mode<synchronous>, transform_indices = @transform_5, window_bounds = array<i64: 256, 128>}, {pipeline_mode = #tpu.pipeline_mode<synchronous>, transform_indices = @transform_6, window_bounds = array<i64: 1, 128>}, {pipeline_mode = #tpu.pipeline_mode<synchronous>, transform_indices = @transform_7, window_bounds = array<i64: 128, 64>}, {pipeline_mode = #tpu.pipeline_mode<synchronous>, transform_indices = @transform_8, window_bounds = array<i64: 1, 64>}, {pipeline_mode = #tpu.pipeline_mode<synchronous>, transform_indices = @transform_9, window_bounds = array<i64: 64, 32>}, {pipeline_mode = #tpu.pipeline_mode<synchronous>, transform_indices = @transform_10, window_bounds = array<i64: 1, 32>}, {pipeline_mode = #tpu.pipeline_mode<synchronous>, transform_indices = @transform_11, window_bounds = array<i64: 32, 10>}, {pipeline_mode = #tpu.pipeline_mode<synchronous>, transform_indices = @transform_12, window_bounds = array<i64: 1, 10>}, {pipeline_mode = #tpu.pipeline_mode<synchronous>, transform_indices = @transform_13, window_bounds = array<i64: 256, 16>}, {pipeline_mode = #tpu.pipeline_mode<synchronous>, transform_indices = @transform_14, window_bounds = array<i64: 1, 16>}, {pipeline_mode = #tpu.pipeline_mode<synchronous>, transform_indices = @transform_15, window_bounds = array<i64: 256, 528>}, {pipeline_mode = #tpu.pipeline_mode<synchronous>, transform_indices = @transform_16, window_bounds = array<i64: 16, 640>}, {transform_indices = @transform_17, window_bounds = array<i64: 16, 10>}]} {
    %c0 = arith.constant 0 : index
    %c0_0 = arith.constant 0 : index
    %0 = vector.load %arg1[%c0, %c0_0] : memref<16x784xbf16, #tpu.memory_space<vmem>>, vector<16x784xbf16>
    %c0_1 = arith.constant 0 : index
    %c0_2 = arith.constant 0 : index
    %1 = vector.load %arg2[%c0_1, %c0_2] : memref<784x512xbf16, #tpu.memory_space<vmem>>, vector<784x512xbf16>
    %cst = arith.constant dense<0.000000e+00> : vector<16x512xf32>
    %2 = tpu.matmul %0, %1, %cst {dimension_numbers = #tpu.dot_dimension_numbers<[1], [0], [0], [1], [0, 0, 1, 1], [], []>} : vector<16x784xbf16>, vector<784x512xbf16>, vector<16x512xf32> -> vector<16x512xf32>
    %c0_3 = arith.constant 0 : index
    %c0_4 = arith.constant 0 : index
    %3 = vector.load %arg3[%c0_3, %c0_4] : memref<1x512xf32, #tpu.memory_space<vmem>>, vector<1x512xf32>
    %4 = vector.broadcast %3 : vector<1x512xf32> to vector<16x512xf32>
    %5 = arith.addf %2, %4 : vector<16x512xf32>
    %cst_5 = arith.constant 5.000000e-01 : f32
    %6 = vector.broadcast %cst_5 : f32 to vector<16x512xf32>
    %7 = arith.mulf %6, %5 : vector<16x512xf32>
    %cst_6 = arith.constant 0.707106769 : f32
    %8 = vector.broadcast %cst_6 : f32 to vector<16x512xf32>
    %9 = arith.mulf %5, %8 : vector<16x512xf32>
    %10 = math.erf %9 : vector<16x512xf32>
    %cst_7 = arith.constant 1.000000e+00 : f32
    %11 = vector.broadcast %cst_7 : f32 to vector<16x512xf32>
    %12 = arith.addf %11, %10 : vector<16x512xf32>
    %13 = arith.mulf %7, %12 : vector<16x512xf32>
    %14 = arith.truncf %13 : vector<16x512xf32> to vector<16x512xbf16>
    %c0_8 = arith.constant 0 : index
    %c0_9 = arith.constant 0 : index
    %15 = vector.load %arg4[%c0_8, %c0_9] : memref<512x256xbf16, #tpu.memory_space<vmem>>, vector<512x256xbf16>
    %cst_10 = arith.constant dense<0.000000e+00> : vector<16x256xf32>
    %16 = tpu.matmul %14, %15, %cst_10 {dimension_numbers = #tpu.dot_dimension_numbers<[1], [0], [0], [1], [0, 0, 1, 1], [], []>} : vector<16x512xbf16>, vector<512x256xbf16>, vector<16x256xf32> -> vector<16x256xf32>
    %c0_11 = arith.constant 0 : index
    %c0_12 = arith.constant 0 : index
    %17 = vector.load %arg5[%c0_11, %c0_12] : memref<1x256xf32, #tpu.memory_space<vmem>>, vector<1x256xf32>
    %18 = vector.broadcast %17 : vector<1x256xf32> to vector<16x256xf32>
    %19 = arith.addf %16, %18 : vector<16x256xf32>
    %cst_13 = arith.constant 5.000000e-01 : f32
    %20 = vector.broadcast %cst_13 : f32 to vector<16x256xf32>
    %21 = arith.mulf %20, %19 : vector<16x256xf32>
    %cst_14 = arith.constant 0.707106769 : f32
    %22 = vector.broadcast %cst_14 : f32 to vector<16x256xf32>
    %23 = arith.mulf %19, %22 : vector<16x256xf32>
    %24 = math.erf %23 : vector<16x256xf32>
    %cst_15 = arith.constant 1.000000e+00 : f32
    %25 = vector.broadcast %cst_15 : f32 to vector<16x256xf32>
    %26 = arith.addf %25, %24 : vector<16x256xf32>
    %27 = arith.mulf %21, %26 : vector<16x256xf32>
    %28 = arith.truncf %27 : vector<16x256xf32> to vector<16x256xbf16>
    %c0_16 = arith.constant 0 : index
    %c0_17 = arith.constant 0 : index
    %29 = vector.load %arg16[%c0_16, %c0_17] : memref<256x528xbf16, #tpu.memory_space<vmem>>, vector<256x528xbf16>
    %cst_18 = arith.constant dense<0.000000e+00> : vector<16x528xf32>
    %30 = tpu.matmul %28, %29, %cst_18 {dimension_numbers = #tpu.dot_dimension_numbers<[1], [0], [0], [1], [0, 0, 1, 1], [], []>} : vector<16x256xbf16>, vector<256x528xbf16>, vector<16x528xf32> -> vector<16x528xf32>
    %31 = vector.extract_strided_slice %30 {offsets = [0, 512], sizes = [16, 16], strides = [1, 1]} : vector<16x528xf32> to vector<16x16xf32>
    %c0_19 = arith.constant 0 : index
    %c0_20 = arith.constant 0 : index
    %32 = vector.load %arg15[%c0_19, %c0_20] : memref<1x16xf32, #tpu.memory_space<vmem>>, vector<1x16xf32>
    %33 = vector.broadcast %32 : vector<1x16xf32> to vector<16x16xf32>
    %34 = arith.addf %31, %33 : vector<16x16xf32>
    %cst_21 = arith.constant dense<0xFF800000> : vector<16xf32>
    %35 = vector.multi_reduction <maximumf>, %34, %cst_21 [1] : vector<16x16xf32> to vector<16xf32>
    %36 = vector.shape_cast %35 : vector<16xf32> to vector<16x1xf32>
    %37 = vector.broadcast %36 : vector<16x1xf32> to vector<16x16xf32>
    %38 = arith.subf %34, %37 : vector<16x16xf32>
    %39 = math.exp %38 : vector<16x16xf32>
    %cst_22 = arith.constant dense<0.000000e+00> : vector<16xf32>
    %40 = vector.multi_reduction <add>, %39, %cst_22 [1] : vector<16x16xf32> to vector<16xf32>
    %41 = vector.shape_cast %40 : vector<16xf32> to vector<16x1xf32>
    %42 = vector.broadcast %41 : vector<16x1xf32> to vector<16x16xf32>
    %43 = arith.divf %39, %42 : vector<16x16xf32>
    %44 = vector.extract_strided_slice %30 {offsets = [0, 0], sizes = [16, 128], strides = [1, 1]} : vector<16x528xf32> to vector<16x128xf32>
    %45 = vector.extract_strided_slice %30 {offsets = [0, 128], sizes = [16, 128], strides = [1, 1]} : vector<16x528xf32> to vector<16x128xf32>
    %46 = vector.extract_strided_slice %30 {offsets = [0, 256], sizes = [16, 128], strides = [1, 1]} : vector<16x528xf32> to vector<16x128xf32>
    %47 = vector.extract_strided_slice %30 {offsets = [0, 384], sizes = [16, 128], strides = [1, 1]} : vector<16x528xf32> to vector<16x128xf32>
    %c0_23 = arith.constant 0 : index
    %c0_24 = arith.constant 0 : index
    %48 = vector.load %arg17[%c0_23, %c0_24] : memref<16x640xf32, #tpu.memory_space<vmem>>, vector<16x640xf32>
    %cst_25 = arith.constant dense<0.000000e+00> : vector<16x640xf32>
    %49 = tpu.matmul %43, %48, %cst_25 {dimension_numbers = #tpu.dot_dimension_numbers<[1], [0], [0], [1], [0, 0, 1, 1], [], []>} : vector<16x16xf32>, vector<16x640xf32>, vector<16x640xf32> -> vector<16x640xf32>
    %c0_26 = arith.constant 0 : index
    %c0_27 = arith.constant 0 : index
    %50 = vector.load %arg7[%c0_26, %c0_27] : memref<1x128xf32, #tpu.memory_space<vmem>>, vector<1x128xf32>
    %51 = vector.extract_strided_slice %49 {offsets = [0, 512], sizes = [16, 128], strides = [1, 1]} : vector<16x640xf32> to vector<16x128xf32>
    %52 = vector.broadcast %50 : vector<1x128xf32> to vector<16x128xf32>
    %53 = arith.mulf %52, %51 : vector<16x128xf32>
    %54 = vector.extract_strided_slice %49 {offsets = [0, 0], sizes = [16, 128], strides = [1, 1]} : vector<16x640xf32> to vector<16x128xf32>
    %55 = arith.mulf %44, %54 : vector<16x128xf32>
    %56 = arith.addf %53, %55 : vector<16x128xf32>
    %57 = vector.extract_strided_slice %49 {offsets = [0, 128], sizes = [16, 128], strides = [1, 1]} : vector<16x640xf32> to vector<16x128xf32>
    %58 = arith.mulf %45, %57 : vector<16x128xf32>
    %59 = arith.addf %56, %58 : vector<16x128xf32>
    %60 = vector.extract_strided_slice %49 {offsets = [0, 256], sizes = [16, 128], strides = [1, 1]} : vector<16x640xf32> to vector<16x128xf32>
    %61 = arith.mulf %46, %60 : vector<16x128xf32>
    %62 = arith.addf %59, %61 : vector<16x128xf32>
    %63 = vector.extract_strided_slice %49 {offsets = [0, 384], sizes = [16, 128], strides = [1, 1]} : vector<16x640xf32> to vector<16x128xf32>
    %64 = arith.mulf %47, %63 : vector<16x128xf32>
    %65 = arith.addf %62, %64 : vector<16x128xf32>
    %cst_28 = arith.constant 5.000000e-01 : f32
    %66 = vector.broadcast %cst_28 : f32 to vector<16x128xf32>
    %67 = arith.mulf %66, %65 : vector<16x128xf32>
    %cst_29 = arith.constant 0.707106769 : f32
    %68 = vector.broadcast %cst_29 : f32 to vector<16x128xf32>
    %69 = arith.mulf %65, %68 : vector<16x128xf32>
    %70 = math.erf %69 : vector<16x128xf32>
    %cst_30 = arith.constant 1.000000e+00 : f32
    %71 = vector.broadcast %cst_30 : f32 to vector<16x128xf32>
    %72 = arith.addf %71, %70 : vector<16x128xf32>
    %73 = arith.mulf %67, %72 : vector<16x128xf32>
    %74 = arith.truncf %73 : vector<16x128xf32> to vector<16x128xbf16>
    %c0_31 = arith.constant 0 : index
    %c0_32 = arith.constant 0 : index
    %75 = vector.load %arg8[%c0_31, %c0_32] : memref<128x64xbf16, #tpu.memory_space<vmem>>, vector<128x64xbf16>
    %cst_33 = arith.constant dense<0.000000e+00> : vector<16x64xf32>
    %76 = tpu.matmul %74, %75, %cst_33 {dimension_numbers = #tpu.dot_dimension_numbers<[1], [0], [0], [1], [0, 0, 1, 1], [], []>} : vector<16x128xbf16>, vector<128x64xbf16>, vector<16x64xf32> -> vector<16x64xf32>
    %c0_34 = arith.constant 0 : index
    %c0_35 = arith.constant 0 : index
    %77 = vector.load %arg9[%c0_34, %c0_35] : memref<1x64xf32, #tpu.memory_space<vmem>>, vector<1x64xf32>
    %78 = vector.broadcast %77 : vector<1x64xf32> to vector<16x64xf32>
    %79 = arith.addf %76, %78 : vector<16x64xf32>
    %cst_36 = arith.constant 5.000000e-01 : f32
    %80 = vector.broadcast %cst_36 : f32 to vector<16x64xf32>
    %81 = arith.mulf %80, %79 : vector<16x64xf32>
    %cst_37 = arith.constant 0.707106769 : f32
    %82 = vector.broadcast %cst_37 : f32 to vector<16x64xf32>
    %83 = arith.mulf %79, %82 : vector<16x64xf32>
    %84 = math.erf %83 : vector<16x64xf32>
    %cst_38 = arith.constant 1.000000e+00 : f32
    %85 = vector.broadcast %cst_38 : f32 to vector<16x64xf32>
    %86 = arith.addf %85, %84 : vector<16x64xf32>
    %87 = arith.mulf %81, %86 : vector<16x64xf32>
    %88 = arith.truncf %87 : vector<16x64xf32> to vector<16x64xbf16>
    %c0_39 = arith.constant 0 : index
    %c0_40 = arith.constant 0 : index
    %89 = vector.load %arg10[%c0_39, %c0_40] : memref<64x32xbf16, #tpu.memory_space<vmem>>, vector<64x32xbf16>
    %cst_41 = arith.constant dense<0.000000e+00> : vector<16x32xf32>
    %90 = tpu.matmul %88, %89, %cst_41 {dimension_numbers = #tpu.dot_dimension_numbers<[1], [0], [0], [1], [0, 0, 1, 1], [], []>} : vector<16x64xbf16>, vector<64x32xbf16>, vector<16x32xf32> -> vector<16x32xf32>
    %c0_42 = arith.constant 0 : index
    %c0_43 = arith.constant 0 : index
    %91 = vector.load %arg11[%c0_42, %c0_43] : memref<1x32xf32, #tpu.memory_space<vmem>>, vector<1x32xf32>
    %92 = vector.broadcast %91 : vector<1x32xf32> to vector<16x32xf32>
    %93 = arith.addf %90, %92 : vector<16x32xf32>
    %cst_44 = arith.constant 5.000000e-01 : f32
    %94 = vector.broadcast %cst_44 : f32 to vector<16x32xf32>
    %95 = arith.mulf %94, %93 : vector<16x32xf32>
    %cst_45 = arith.constant 0.707106769 : f32
    %96 = vector.broadcast %cst_45 : f32 to vector<16x32xf32>
    %97 = arith.mulf %93, %96 : vector<16x32xf32>
    %98 = math.erf %97 : vector<16x32xf32>
    %cst_46 = arith.constant 1.000000e+00 : f32
    %99 = vector.broadcast %cst_46 : f32 to vector<16x32xf32>
    %100 = arith.addf %99, %98 : vector<16x32xf32>
    %101 = arith.mulf %95, %100 : vector<16x32xf32>
    %102 = arith.truncf %101 : vector<16x32xf32> to vector<16x32xbf16>
    %c0_47 = arith.constant 0 : index
    %c0_48 = arith.constant 0 : index
    %103 = vector.load %arg12[%c0_47, %c0_48] : memref<32x10xbf16, #tpu.memory_space<vmem>>, vector<32x10xbf16>
    %cst_49 = arith.constant dense<0.000000e+00> : vector<16x10xf32>
    %104 = tpu.matmul %102, %103, %cst_49 {dimension_numbers = #tpu.dot_dimension_numbers<[1], [0], [0], [1], [0, 0, 1, 1], [], []>} : vector<16x32xbf16>, vector<32x10xbf16>, vector<16x10xf32> -> vector<16x10xf32>
    %c0_50 = arith.constant 0 : index
    %c0_51 = arith.constant 0 : index
    %105 = vector.load %arg13[%c0_50, %c0_51] : memref<1x10xf32, #tpu.memory_space<vmem>>, vector<1x10xf32>
    %106 = vector.broadcast %105 : vector<1x10xf32> to vector<16x10xf32>
    %107 = arith.addf %104, %106 : vector<16x10xf32>
    %c0_52 = arith.constant 0 : index
    %c0_53 = arith.constant 0 : index
    %108 = vector.load %arg18[%c0_52, %c0_53] : memref<16x10xf32, #tpu.memory_space<vmem>>, vector<16x10xf32>
    tpu.vector_store %arg18[%c0_52, %c0_53], %107 {strides = array<i32>} : memref<16x10xf32, #tpu.memory_space<vmem>>, vector<16x10xf32>,
    return
  }
  func.func @transform_0(%arg0: i32) -> (i32, i32) {
    %c0_i32 = arith.constant 0 : i32
    %c0_i32_0 = arith.constant 0 : i32
    return %arg0, %c0_i32 : i32, i32
  }
  func.func @transform_1(%arg0: i32) -> (i32, i32) {
    %c0_i32 = arith.constant 0 : i32
    %c0_i32_0 = arith.constant 0 : i32
    %c0_i32_1 = arith.constant 0 : i32
    return %c0_i32, %c0_i32_0 : i32, i32
  }
  func.func @transform_2(%arg0: i32) -> (i32, i32) {
    %c0_i32 = arith.constant 0 : i32
    %c0_i32_0 = arith.constant 0 : i32
    %c0_i32_1 = arith.constant 0 : i32
    return %c0_i32, %c0_i32_0 : i32, i32
  }
  func.func @transform_3(%arg0: i32) -> (i32, i32) {
    %c0_i32 = arith.constant 0 : i32
    %c0_i32_0 = arith.constant 0 : i32
    %c0_i32_1 = arith.constant 0 : i32
    return %c0_i32, %c0_i32_0 : i32, i32
  }
  func.func @transform_4(%arg0: i32) -> (i32, i32) {
    %c0_i32 = arith.constant 0 : i32
    %c0_i32_0 = arith.constant 0 : i32
    %c0_i32_1 = arith.constant 0 : i32
    return %c0_i32, %c0_i32_0 : i32, i32
  }
  func.func @transform_5(%arg0: i32) -> (i32, i32) {
    %c0_i32 = arith.constant 0 : i32
    %c0_i32_0 = arith.constant 0 : i32
    %c0_i32_1 = arith.constant 0 : i32
    return %c0_i32, %c0_i32_0 : i32, i32
  }
  func.func @transform_6(%arg0: i32) -> (i32, i32) {
    %c0_i32 = arith.constant 0 : i32
    %c0_i32_0 = arith.constant 0 : i32
    %c0_i32_1 = arith.constant 0 : i32
    return %c0_i32, %c0_i32_0 : i32, i32
  }
  func.func @transform_7(%arg0: i32) -> (i32, i32) {
    %c0_i32 = arith.constant 0 : i32
    %c0_i32_0 = arith.constant 0 : i32
    %c0_i32_1 = arith.constant 0 : i32
    return %c0_i32, %c0_i32_0 : i32, i32
  }
  func.func @transform_8(%arg0: i32) -> (i32, i32) {
    %c0_i32 = arith.constant 0 : i32
    %c0_i32_0 = arith.constant 0 : i32
    %c0_i32_1 = arith.constant 0 : i32
    return %c0_i32, %c0_i32_0 : i32, i32
  }
  func.func @transform_9(%arg0: i32) -> (i32, i32) {
    %c0_i32 = arith.constant 0 : i32
    %c0_i32_0 = arith.constant 0 : i32
    %c0_i32_1 = arith.constant 0 : i32
    return %c0_i32, %c0_i32_0 : i32, i32
  }
  func.func @transform_10(%arg0: i32) -> (i32, i32) {
    %c0_i32 = arith.constant 0 : i32
    %c0_i32_0 = arith.constant 0 : i32
    %c0_i32_1 = arith.constant 0 : i32
    return %c0_i32, %c0_i32_0 : i32, i32
  }
  func.func @transform_11(%arg0: i32) -> (i32, i32) {
    %c0_i32 = arith.constant 0 : i32
    %c0_i32_0 = arith.constant 0 : i32
    %c0_i32_1 = arith.constant 0 : i32
    return %c0_i32, %c0_i32_0 : i32, i32
  }
  func.func @transform_12(%arg0: i32) -> (i32, i32) {
    %c0_i32 = arith.constant 0 : i32
    %c0_i32_0 = arith.constant 0 : i32
    %c0_i32_1 = arith.constant 0 : i32
    return %c0_i32, %c0_i32_0 : i32, i32
  }
  func.func @transform_13(%arg0: i32) -> (i32, i32) {
    %c0_i32 = arith.constant 0 : i32
    %c0_i32_0 = arith.constant 0 : i32
    %c0_i32_1 = arith.constant 0 : i32
    return %c0_i32, %c0_i32_0 : i32, i32
  }
  func.func @transform_14(%arg0: i32) -> (i32, i32) {
    %c0_i32 = arith.constant 0 : i32
    %c0_i32_0 = arith.constant 0 : i32
    %c0_i32_1 = arith.constant 0 : i32
    return %c0_i32, %c0_i32_0 : i32, i32
  }
  func.func @transform_15(%arg0: i32) -> (i32, i32) {
    %c0_i32 = arith.constant 0 : i32
    %c0_i32_0 = arith.constant 0 : i32
    %c0_i32_1 = arith.constant 0 : i32
    return %c0_i32, %c0_i32_0 : i32, i32
  }
  func.func @transform_16(%arg0: i32) -> (i32, i32) {
    %c0_i32 = arith.constant 0 : i32
    %c0_i32_0 = arith.constant 0 : i32
    %c0_i32_1 = arith.constant 0 : i32
    return %c0_i32, %c0_i32_0 : i32, i32
  }
  func.func @transform_17(%arg0: i32) -> (i32, i32) {
    %c0_i32 = arith.constant 0 : i32
    %c0_i32_0 = arith.constant 0 : i32
    return %arg0, %c0_i32 : i32, i32
  }
}

</mosaic_0001>

<bundles_post_ra>
// kernel: _mlp_forward.1
= control target key start
LH: loop header
LB: loop body
LE: loop exit
PB: predicated region body
PF: predicated region fallthrough
CT: control target
= control target key end

     0   :  { %s9031_s0 = inlined_call_operand.vmem [shape: bf16[16,784], index: 0, kind: input, shape index: {}]   ;;  %s9032_s1 = inlined_call_operand.vmem [shape: bf16[784,512], index: 1, kind: input, shape index: {}]   ;;  %s9033_s2 = inlined_call_operand.hbm [shape: f32[1,512], index: 2, kind: input, shape index: {}]   ;;  %s9034_s3 = inlined_call_operand.vmem [shape: bf16[512,256], index: 3, kind: input, shape index: {}]   ;;  %s9035_s4 = inlined_call_operand.hbm [shape: f32[1,256], index: 4, kind: input, shape index: {}]   ;;  %s9036_s5 = inlined_call_operand.hbm [shape: bf16[256,128], index: 5, kind: input, shape index: {}]   ;;  %s9037_s6 = inlined_call_operand.vmem [shape: f32[1,128], index: 6, kind: input, shape index: {}]   ;;  %s9038_s7 = inlined_call_operand.vmem [shape: bf16[128,64], index: 7, kind: input, shape index: {}]   ;;  %s9039_s8 = inlined_call_operand.hbm [shape: f32[1,64], index: 8, kind: input, shape index: {}]   ;;  %s9040_s9 = inlined_call_operand.vmem [shape: bf16[64,32], index: 9, kind: input, shape index: {}]   ;;  %s9041_s10 = inlined_call_operand.hbm [shape: f32[1,32], index: 10, kind: input, shape index: {}]   ;;  %s9042_s11 = inlined_call_operand.vmem [shape: bf16[32,10], index: 11, kind: input, shape index: {}]   ;;  %s9043_s12 = inlined_call_operand.hbm [shape: f32[1,10], index: 12, kind: input, shape index: {}]   ;;  %s9044_s13 = inlined_call_operand.vmem [shape: bf16[256,16], index: 13, kind: input, shape index: {}]   ;;  %s9045_s14 = inlined_call_operand.hbm [shape: f32[1,16], index: 14, kind: input, shape index: {}]   ;;  %s9046_s15 = inlined_call_operand.vmem [shape: bf16[256,528], index: 15, kind: input, shape index: {}]   ;;  %s9047_s16 = inlined_call_operand.hbm [shape: f32[16,640], index: 16, kind: input, shape index: {}]   ;;  %s9048_s17 = inlined_call_operand.vmem [shape: f32[16,10], index: 17, kind: output, shape index: {}]  }
   0x1   :  { %9051 = sst [smem:[#allocation20_spill]] %s9031_s0 }
   0x2   :  { %9052 = sst [smem:[#allocation21_spill]] %s9032_s1 }
   0x3   :  { %22 = vsyncpa [#allocation3], 0 }
   0x4   :  { %23 = vsyncpa [#allocation5], 0 }
   0x5   :  { %24 = vsyncpa [#allocation8], 0 }
   0x6   :  { %25 = vsyncpa [#allocation11], 0  ;;  %s49_s13 = sshll.u32 %s9035_s4, 4  ;;  %s50_s13 = int_to_ptr.hbm [resolvable:$true] %s49_s13 }
   0x7   :  { %26 = vsyncpa [#allocation14], 0  ;;  %s6245_s26 = smov [#allocation4]   ;;  %s77_s0 = sshll.u32 %s9039_s8, 4  ;;  %s78_s0 = int_to_ptr.hbm [resolvable:$true] %s77_s0 }
   0x8   :  { %s51_s27 = sshll.u32 %s6245_s26, 4  ;;  %s6246_s30 = smov [#allocation7]   ;;  %s52_s27 = int_to_ptr.vmem [resolvable:$true] %s51_s27 }
   0x9   :  { %54 = dma.hbm_to_vmem [thread:$0]  %s50_s13, 32, %s52_s27, [#allocation5]  }
   0xa   :  { %s79_s18 = sshll.u32 %s6246_s30, 4  ;;  %s103_s20 = sshll.u32 %s9043_s12, 4  ;;  %s80_s18 = int_to_ptr.vmem [resolvable:$true] %s79_s18  ;;  %s104_s20 = int_to_ptr.hbm [resolvable:$true] %s103_s20 }
   0xb   :  { %82 = dma.hbm_to_vmem [thread:$0]  %s78_s0, 16, %s80_s18, [#allocation8]  }
   0xc   :  { %s36_s22 = sshll.u32 %s9033_s2, 4  ;;  %s6247_s23 = smov [#allocation10]   ;;  %s37_s22 = int_to_ptr.hbm [resolvable:$true] %s36_s22 }
   0xd   :  { %s105_s24 = sshll.u32 %s6247_s23, 4  ;;  %s6248_s8 = smov [#allocation2]   ;;  %s106_s24 = int_to_ptr.vmem [resolvable:$true] %s105_s24 }
   0xe   :  { %108 = dma.hbm_to_vmem [thread:$0]  %s104_s20, 16, %s106_s24, [#allocation11]  }
   0xf   :  { %s38_s25 = sshll.u32 %s6248_s8, 4  ;;  %s59_s27 = sshll.u32 %s9036_s5, 4  ;;  %s39_s25 = int_to_ptr.vmem [resolvable:$true] %s38_s25  ;;  %s60_s27 = int_to_ptr.hbm [resolvable:$true] %s59_s27 }
  0x10   :  { %41 = dma.hbm_to_vmem [thread:$0]  %s37_s22, 64, %s39_s25, [#allocation3]  }
  0x11   :  { %s6249_s12 = smov [#allocation6]   ;;  %s90_s2 = sshll.u32 %s9041_s10, 4  ;;  %s91_s2 = int_to_ptr.hbm [resolvable:$true] %s90_s2 }
  0x12   :  { %s61_s28 = sshll.u32 %s6249_s12, 4  ;;  %s6250_s30 = smov 64   ;;  %s62_s28 = int_to_ptr.vmem [resolvable:$true] %s61_s28 }
  0x13   :  { %s6251_s18 = smov 4   ;;  %s6252_s19 = smov [#allocation9]  }
  0x14   :  { %67 = dma.hbm_to_vmem [thread:$0]  %s60_s27, 2048, %s62_s28, [#allocation5], %s6250_s30, %s6250_s30, %s6251_s18  }
  0x15   :  { %s92_s1 = sshll.u32 %s6252_s19, 4  ;;  %s116_s5 = sshll.u32 %s9045_s14, 4  ;;  %s93_s1 = int_to_ptr.vmem [resolvable:$true] %s92_s1  ;;  %s117_s5 = int_to_ptr.hbm [resolvable:$true] %s116_s5 }
  0x16   :  { %95 = dma.hbm_to_vmem [thread:$0]  %s91_s2, 16, %s93_s1, [#allocation8]  }
  0x17   :  { %s128_s23 = sshll.u32 %s9047_s16, 4  ;;  %s6253_s24 = smov [#allocation12]   ;;  %s129_s23 = int_to_ptr.hbm [resolvable:$true] %s128_s23 }
  0x18   :  { %s118_s8 = sshll.u32 %s6253_s24, 4  ;;  %s6254_s10 = smov [#allocation13]   ;;  %s119_s8 = int_to_ptr.vmem [resolvable:$true] %s118_s8 }
  0x19   :  { %121 = dma.hbm_to_vmem [thread:$0]  %s117_s5, 16, %s119_s8, [#allocation11]  }
  0x1a   :  { %s130_s25 = sshll.u32 %s6254_s10, 4  ;;  %s6255_s13 = smov 640   ;;  %s131_s25 = int_to_ptr.vmem [resolvable:$true] %s130_s25 }
  0x1b   :  { %s6256_s26 = smov 40  }
  0x1c   :  { %136 = dma.hbm_to_vmem [thread:$0]  %s129_s23, 1280, %s131_s25, [#allocation14], %s6255_s13, %s6255_s13, %s6256_s26  }
  0x1d   :  { %6235 = dma.done.wait [#allocation3], 64  }
  0x1e   :  { %6236 = vsyncadd [#allocation3], 4294967232 }
  0x1f   :  { %6237 = dma.done.wait [#allocation5], 2080  }
  0x20   :  { %6238 = vsyncadd [#allocation5], 4294965216 }
  0x21   :  { %6239 = dma.done.wait [#allocation8], 32  }
  0x22   :  { %6240 = vsyncadd [#allocation8], 4294967264 }
  0x23   :  { %6241 = dma.done.wait [#allocation11], 32  }
  0x24   :  { %6242 = vsyncadd [#allocation11], 4294967264 }
  0x25   :  { %6243 = dma.done.wait [#allocation14], 1280  }
  0x26   :  { %6244 = vsyncadd [#allocation14], 4294966016  ;;  %s9053_s27 = sld [smem:[#allocation21_spill]]  ;;  %vm1399_vm0 = vcmask 130048  }
  0x27   :  { %s9054_s29 = sld [smem:[#allocation20_spill]] }
  0x2c   :  { %v4285_v0 = vld [vmem:[%s9053_s27 + $0xe0] sm:$0xf]  ;;  %v5658_v1 = vld [vmem:[%s9053_s27 + $0xec] sm:$0xf0] }
  0x2d   :  { %v4413_v2 = vld [vmem:[%s9053_s27 + $0x1e0] sm:$0xf]  ;;  %v4286_v3 = vor.u32 %v5658_v1, %v4285_v0  ;;  %v5690_v4 = vld [vmem:[%s9053_s27 + $0x1ec] sm:$0xf0] }
  0x2e   :  { %v4541_v5 = vld [vmem:[%s9053_s27 + $0x2e0] sm:$0xf]  ;;  %v5722_v6 = vld [vmem:[%s9053_s27 + $0x2ec] sm:$0xf0]  ;;  %v4414_v7 = vor.u32 %v5690_v4, %v4413_v2 }
  0x2f   :  { %v4542_v8 = vor.u32 %v5722_v6, %v4541_v5  ;;  %v4669_v9 = vld [vmem:[%s9053_s27 + $0x3e0] sm:$0xf]  ;;  %v5754_v10 = vld [vmem:[%s9053_s27 + $0x3ec] sm:$0xf0]  ;;  %1403 = vmatpush.bf16.msra.mxu0 %v4286_v3 }
  0x30   :  { %v4269_v11 = vld [vmem:[%s9053_s27 + $0xc0] sm:$0xf]  ;;  %v4670_v12 = vor.u32 %v5754_v10, %v4669_v9  ;;  %v5654_v13 = vld [vmem:[%s9053_s27 + $0xcc] sm:$0xf0]  ;;  %1417 = vmatpush.bf16.msra.mxu1 %v4414_v7 }
  0x31   :  { %v4397_v14 = vld [vmem:[%s9053_s27 + $0x1c0] sm:$0xf]  ;;  %v5686_v15 = vld [vmem:[%s9053_s27 + $0x1cc] sm:$0xf0]  ;;  %1431 = vmatpush.bf16.msra.mxu2 %v4542_v8  ;;  %v4270_v16 = vor.u32 %v5654_v13, %v4269_v11 }
  0x32   :  { %v4398_v17 = vor.u32 %v5686_v15, %v4397_v14  ;;  %v4525_v18 = vld [vmem:[%s9053_s27 + $0x2c0] sm:$0xf]  ;;  %v5718_v19 = vld [vmem:[%s9053_s27 + $0x2cc] sm:$0xf0]  ;;  %1445 = vmatpush.bf16.msra.mxu3 %v4670_v12 }
  0x33   :  { %v4653_v20 = vld [vmem:[%s9053_s27 + $0x3c0] sm:$0xf]  ;;  %v4526_v21 = vor.u32 %v5718_v19, %v4525_v18  ;;  %v5750_v22 = vld [vmem:[%s9053_s27 + $0x3cc] sm:$0xf0]  ;;  %1404 = vmatpush.bf16.msra.mxu0 %v4270_v16 }
  0x34   :  { %v4253_v23 = vld [vmem:[%s9053_s27 + $0xa0] sm:$0xf]  ;;  %v5650_v24 = vld [vmem:[%s9053_s27 + $0xac] sm:$0xf0]  ;;  %v4654_v25 = vor.u32 %v5750_v22, %v4653_v20  ;;  %1418 = vmatpush.bf16.msra.mxu1 %v4398_v17 }
  0x35   :  { %v4381_v26 = vld [vmem:[%s9053_s27 + $0x1a0] sm:$0xf]  ;;  %v5682_v27 = vld [vmem:[%s9053_s27 + $0x1ac] sm:$0xf0]  ;;  %v4254_v29 = vor.u32 %v5650_v24, %v4253_v23  ;;  %1432 = vmatpush.bf16.msra.mxu2 %v4526_v21 }
  0x36   :  { %v4509_v28 = vld [vmem:[%s9053_s27 + $0x2a0] sm:$0xf]  ;;  %v5714_v30 = vld [vmem:[%s9053_s27 + $0x2ac] sm:$0xf0]  ;;  %v4382_v33 = vor.u32 %v5682_v27, %v4381_v26  ;;  %1446 = vmatpush.bf16.msra.mxu3 %v4654_v25 }
  0x37   :  { %v4637_v31 = vld [vmem:[%s9053_s27 + $0x3a0] sm:$0xf]  ;;  %v5746_v32 = vld [vmem:[%s9053_s27 + $0x3ac] sm:$0xf0]  ;;  %v4510_v34 = vor.u32 %v5714_v30, %v4509_v28  ;;  %1405 = vmatpush.bf16.msra.mxu0 %v4254_v29 }
  0x38   :  { %v4237_v35 = vld [vmem:[%s9053_s27 + $0x80] sm:$0xf]  ;;  %v5646_v36 = vld [vmem:[%s9053_s27 + $0x8c] sm:$0xf0]  ;;  %v4638_v38 = vor.u32 %v5746_v32, %v4637_v31  ;;  %1419 = vmatpush.bf16.msra.mxu1 %v4382_v33  ;;  %v5656_v32 = vld [vmem:[%s9053_s27 + $0xe4] sm:$0xf] }
  0x39   :  { %v4365_v37 = vld [vmem:[%s9053_s27 + $0x180] sm:$0xf]  ;;  %v5678_v39 = vld [vmem:[%s9053_s27 + $0x18c] sm:$0xf0]  ;;  %v4238_v44 = vor.u32 %v5646_v36, %v4237_v35  ;;  %1433 = vmatpush.bf16.msra.mxu2 %v4510_v34  ;;  %v4287_v33 = vld [vmem:[%s9053_s27 + $0xf0] sm:$0xf0] }
  0x3a   :  { %v4493_v40 = vld [vmem:[%s9053_s27 + $0x280] sm:$0xf]  ;;  %v5710_v41 = vld [vmem:[%s9053_s27 + $0x28c] sm:$0xf0]  ;;  %v4366_v45 = vor.u32 %v5678_v39, %v4365_v37  ;;  %1447 = vmatpush.bf16.msra.mxu3 %v4638_v38  ;;  %v4153_v34 = vld [vmem:[%s9054_s29 + $0x8] sm:$0xf] }
  0x3b   :  { %v4621_v42 = vld [vmem:[%s9053_s27 + $0x380] sm:$0xf]  ;;  %v5742_v43 = vld [vmem:[%s9053_s27 + $0x38c] sm:$0xf0]  ;;  %v4494_v46 = vor.u32 %v5710_v41, %v4493_v40  ;;  %1406 = vmatpush.bf16.msra.mxu0 %v4238_v44  ;;  %v5625_v36 = vld [vmem:[%s9054_s29 + $0x20] sm:$0xf0] }
  0x3c   :  { %v4221_v47 = vld [vmem:[%s9053_s27 + $0x60] sm:$0xf]  ;;  %v5642_v48 = vld [vmem:[%s9053_s27 + $0x6c] sm:$0xf0]  ;;  %v4622_v50 = vor.u32 %v5742_v43, %v4621_v42  ;;  %1420 = vmatpush.bf16.msra.mxu1 %v4366_v45  ;;  %v5688_v41 = vld [vmem:[%s9053_s27 + $0x1e4] sm:$0xf] }
  0x3d   :  { %v4349_v49 = vld [vmem:[%s9053_s27 + $0x160] sm:$0xf]  ;;  %v5674_v51 = vld [vmem:[%s9053_s27 + $0x16c] sm:$0xf0]  ;;  %v4222_v56 = vor.u32 %v5642_v48, %v4221_v47  ;;  %1434 = vmatpush.bf16.msra.mxu2 %v4494_v46  ;;  %v5624_v43 = vld [vmem:[%s9054_s29 + $0x18] sm:$0xf0] }
  0x3e   :  { %v4477_v52 = vld [vmem:[%s9053_s27 + $0x260] sm:$0xf]  ;;  %v5706_v53 = vld [vmem:[%s9053_s27 + $0x26c] sm:$0xf0]  ;;  %v4350_v57 = vor.u32 %v5674_v51, %v4349_v49  ;;  %1448 = vmatpush.bf16.msra.mxu3 %v4622_v50  ;;  %v4415_v46 = vld [vmem:[%s9053_s27 + $0x1f0] sm:$0xf0]  ;;  %v4290_v50 = vor.u32 %v5656_v32, %v4287_v33 }
  0x3f   :  { %v4605_v54 = vld [vmem:[%s9053_s27 + $0x360] sm:$0xf]  ;;  %v5738_v55 = vld [vmem:[%s9053_s27 + $0x36c] sm:$0xf0]  ;;  %v4478_v58 = vor.u32 %v5706_v53, %v4477_v52  ;;  %1407 = vmatpush.bf16.msra.mxu0 %v4222_v56  ;;  %v5622_v47 = vld [vmem:[%s9054_s29 + $0xc] sm:$0xf] }
  0x40   :  { %v4205_v59 = vld [vmem:[%s9053_s27 + $0x40] sm:$0xf]  ;;  %v5638_v60 = vld [vmem:[%s9053_s27 + $0x4c] sm:$0xf0]  ;;  %v4606_v62 = vor.u32 %v5738_v55, %v4605_v54  ;;  %1421 = vmatpush.bf16.msra.mxu1 %v4350_v57  ;;  %v4155_v48 = vld [vmem:[%s9054_s29 + $0x24] sm:$0xf0]  ;;  %v6620_v54 = vor.u32 %v5625_v36, %v4153_v34 }
  0x41   :  { %v4333_v61 = vld [vmem:[%s9053_s27 + $0x140] sm:$0xf]  ;;  %v5670_v63 = vld [vmem:[%s9053_s27 + $0x14c] sm:$0xf0]  ;;  %v4206_v4 = vor.u32 %v5638_v60, %v4205_v59  ;;  %1435 = vmatpush.bf16.msra.mxu2 %v4478_v58  ;;  %v5652_v57 = vld [vmem:[%s9053_s27 + $0xc4] sm:$0xf]  ;;  %v6633_v60 = vor.u32 %v5622_v47, %v4155_v48 }
  0x42   :  { %v4461_v0 = vld [vmem:[%s9053_s27 + $0x240] sm:$0xf]  ;;  %v5702_v1 = vld [vmem:[%s9053_s27 + $0x24c] sm:$0xf0]  ;;  %v4334_v6 = vor.u32 %v5670_v63, %v4333_v61  ;;  %1449 = vmatpush.bf16.msra.mxu3 %v4606_v62  ;;  %v4271_v58 = vld [vmem:[%s9053_s27 + $0xd0] sm:$0xf0]  ;;  %v4418_v63 = vor.u32 %v5688_v41, %v4415_v46 }
  0x43   :  { %v4589_v2 = vld [vmem:[%s9053_s27 + $0x340] sm:$0xf]  ;;  %v5734_v3 = vld [vmem:[%s9053_s27 + $0x34c] sm:$0xf0]  ;;  %v4462_v7 = vor.u32 %v5702_v1, %v4461_v0  ;;  %1408 = vmatpush.bf16.msra.mxu0 %v4206_v4  ;;  %v5621_v61 = vld [vmem:[%s9054_s29 + $0x4] sm:$0xf]  ;;  %v4274_v4 = vor.u32 %v5652_v57, %v4271_v58 }
  0x44   :  { %v4189_v5 = vld [vmem:[%s9053_s27 + $0x20] sm:$0xf]  ;;  %v5634_v8 = vld [vmem:[%s9053_s27 + $0x2c] sm:$0xf0]  ;;  %v4590_v11 = vor.u32 %v5734_v3, %v4589_v2  ;;  %1422 = vmatpush.bf16.msra.mxu1 %v4334_v6  ;;  %v5684_v1 = vld [vmem:[%s9053_s27 + $0x1c4] sm:$0xf] }
  0x45   :  { %v4317_v9 = vld [vmem:[%s9053_s27 + $0x120] sm:$0xf]  ;;  %v5666_v10 = vld [vmem:[%s9053_s27 + $0x12c] sm:$0xf0]  ;;  %v4190_v18 = vor.u32 %v5634_v8, %v4189_v5  ;;  %1436 = vmatpush.bf16.msra.mxu2 %v4462_v7  ;;  %v4399_v2 = vld [vmem:[%s9053_s27 + $0x1d0] sm:$0xf0] }
  0x46   :  { %v4445_v12 = vld [vmem:[%s9053_s27 + $0x220] sm:$0xf]  ;;  %v5698_v13 = vld [vmem:[%s9053_s27 + $0x22c] sm:$0xf0]  ;;  %v4318_v23 = vor.u32 %v5666_v10, %v4317_v9  ;;  %1450 = vmatpush.bf16.msra.mxu3 %v4590_v11  ;;  %v5648_v10 = vld [vmem:[%s9053_s27 + $0xa4] sm:$0xf] }
  0x47   :  { %v4573_v14 = vld [vmem:[%s9053_s27 + $0x320] sm:$0xf]  ;;  %v5730_v15 = vld [vmem:[%s9053_s27 + $0x32c] sm:$0xf0]  ;;  %v4446_v24 = vor.u32 %v5698_v13, %v4445_v12  ;;  %1409 = vmatpush.bf16.msra.mxu0 %v4190_v18  ;;  %v4255_v11 = vld [vmem:[%s9053_s27 + $0xb0] sm:$0xf0]  ;;  %v4402_v12 = vor.u32 %v5684_v1, %v4399_v2 }
  0x48   :  { %v4173_v16 = vld [vmem:[%s9053_s27] sm:$0xf]  ;;  %v5630_v17 = vld [vmem:[%s9053_s27 + $0xc] sm:$0xf0]  ;;  %v4574_v28 = vor.u32 %v5730_v15, %v4573_v14  ;;  %1423 = vmatpush.bf16.msra.mxu1 %v4318_v23  ;;  %v5680_v14 = vld [vmem:[%s9053_s27 + $0x1a4] sm:$0xf] }
  0x49   :  { %v4301_v19 = vld [vmem:[%s9053_s27 + $0x100] sm:$0xf]  ;;  %v5662_v20 = vld [vmem:[%s9053_s27 + $0x10c] sm:$0xf0]  ;;  %v4174_v35 = vor.u32 %v5630_v17, %v4173_v16  ;;  %1437 = vmatpush.bf16.msra.mxu2 %v4446_v24  ;;  %v4383_v15 = vld [vmem:[%s9053_s27 + $0x1b0] sm:$0xf0]  ;;  %v4258_v17 = vor.u32 %v5648_v10, %v4255_v11 }
  0x4a   :  { %v4429_v21 = vld [vmem:[%s9053_s27 + $0x200] sm:$0xf]  ;;  %v5694_v22 = vld [vmem:[%s9053_s27 + $0x20c] sm:$0xf0]  ;;  %v4302_v39 = vor.u32 %v5662_v20, %v4301_v19  ;;  %1451 = vmatpush.bf16.msra.mxu3 %v4574_v28  ;;  %v4239_v23 = vld [vmem:[%s9053_s27 + $0x90] sm:$0xf0]  ;;  %v4386_v24 = vor.u32 %v5680_v14, %v4383_v15 }
  0x4b   :  { %v4557_v25 = vld [vmem:[%s9053_s27 + $0x300] sm:$0xf]  ;;  %v5726_v26 = vld [vmem:[%s9053_s27 + $0x30c] sm:$0xf0]  ;;  %v4430_v40 = vor.u32 %v5694_v22, %v4429_v21  ;;  %1410 = vmatpush.bf16.msra.mxu0 %v4174_v35  ;;  %v5644_v22 = vld [vmem:[%s9053_s27 + $0x84] sm:$0xf] }
  0x4c   :  { %v4797_v27 = vld [vmem:[%s9053_s27 + $0x4e0] sm:$0xf]  ;;  %v5786_v29 = vld [vmem:[%s9053_s27 + $0x4ec] sm:$0xf0]  ;;  %v4558_v44 = vor.u32 %v5726_v26, %v4557_v25  ;;  %1424 = vmatpush.bf16.msra.mxu1 %v4302_v39  ;;  %v5676_v26 = vld [vmem:[%s9053_s27 + $0x184] sm:$0xf] }
  0x4d   :  { %v4925_v30 = vld [vmem:[%s9053_s27 + $0x5e0] sm:$0xf]  ;;  %v5818_v31 = vld [vmem:[%s9053_s27 + $0x5ec] sm:$0xf0]  ;;  %v4798_v45 = vor.u32 %v5786_v29, %v4797_v27  ;;  %1438 = vmatpush.bf16.msra.mxu2 %v4430_v40  ;;  %v4367_v27 = vld [vmem:[%s9053_s27 + $0x190] sm:$0xf0]  ;;  %v4242_v29 = vor.u32 %v5644_v22, %v4239_v23 }
  0x4e   :  { %v4941_v37 = vld [vmem:[%s9053_s27 + $0x600] sm:$0xf]  ;;  %v5822_v38 = vld [vmem:[%s9053_s27 + $0x60c] sm:$0xf0]  ;;  %v4926_v49 = vor.u32 %v5818_v31, %v4925_v30  ;;  %1452 = vmatpush.bf16.msra.mxu3 %v4558_v44  ;;  %v5640_v34 = vld [vmem:[%s9053_s27 + $0x64] sm:$0xf] }
  0x4f   :  { %v4145_v42 = vld [vmem:[%s9054_s29] sm:$0xf]  ;;  %v5782_v52 = vld [vmem:[%s9053_s27 + $0x4cc] sm:$0xf0]  ;;  %v4942_v59 = vor.u32 %v5822_v38, %v4941_v37  ;;  %1459 = vmatpush.bf16.msrb.mxu0 %v4798_v45  ;;  %v4223_v35 = vld [vmem:[%s9053_s27 + $0x70] sm:$0xf0]  ;;  %v4370_v38 = vor.u32 %v5676_v26, %v4367_v27 }
  0x50   :  { %v4781_v51 = vld [vmem:[%s9053_s27 + $0x4c0] sm:$0xf]  ;;  %v6622_v55 = vor.u32 %v5624_v43, %v4145_v42  ;;  %v5814_v56 = vld [vmem:[%s9053_s27 + $0x5cc] sm:$0xf0]  ;;  %1473 = vmatpush.bf16.msrb.mxu1 %v4926_v49  ;;  %1439 = vmatmul.bf16.vlgmr.msra.gmra.mxu2 %v6620_v54  ;;  %v4169_v36 = vld [vmem:[%s9054_s29 + $0x18] sm:$0xf]  ;;  %v4226_v43 = vor.u32 %v5640_v34, %v4223_v35 }
  0x51   :  { %v4909_v53 = vld [vmem:[%s9053_s27 + $0x5c0] sm:$0xf]  ;;  %v4782_v0 = vor.u32 %v5782_v52, %v4781_v51  ;;  %v5778_v6 = vld [vmem:[%s9053_s27 + $0x4ac] sm:$0xf0]  ;;  %1494 = vmatpush.bf16.msrb.mxu2 %v4942_v59  ;;  %1453 = vmatmul.bf16.vlgmr.msra.gmra.mxu3 %v6633_v60  ;;  %v5627_v37 = vld [vmem:[%s9054_s29 + $0x30] sm:$0xf0] }
  0x52   :  { %v4147_v62 = vld [vmem:[%s9054_s29 + $0x1c] sm:$0xf0]  ;;  %1501 = vmatpush.bf16.msrb.mxu3 %v4290_v50  ;;  %v4910_v3 = vor.u32 %v5814_v56, %v4909_v53  ;;  %1411 = vmatmul.bf16.vlgmr.msra.gmra.mxu0 %v6622_v55  ;;  %v5810_v9 = vld [vmem:[%s9053_s27 + $0x5ac] sm:$0xf0]  ;;  %v5672_v40 = vld [vmem:[%s9053_s27 + $0x164] sm:$0xf]  ;;  %v6749_v50 = vor.u32 %v5627_v37, %v4169_v36 }
  0x53   :  { %v4765_v5 = vld [vmem:[%s9053_s27 + $0x4a0] sm:$0xf]  ;;  %v6658_v8 = vor.u32 %v5621_v61, %v4147_v62  ;;  %1460 = vmatpush.bf16.msrb.mxu0 %v4782_v0  ;;  %v5774_v19 = vld [vmem:[%s9053_s27 + $0x48c] sm:$0xf0]  ;;  %v4351_v41 = vld [vmem:[%s9053_s27 + $0x170] sm:$0xf0] }
  0x54   :  { %v4893_v7 = vld [vmem:[%s9053_s27 + $0x5a0] sm:$0xf]  ;;  %v4766_v13 = vor.u32 %v5778_v6, %v4765_v5  ;;  %1474 = vmatpush.bf16.msrb.mxu1 %v4910_v3  ;;  %v5806_v21 = vld [vmem:[%s9053_s27 + $0x58c] sm:$0xf0]  ;;  %v5636_v48 = vld [vmem:[%s9053_s27 + $0x44] sm:$0xf]  ;;  %v4354_v51 = vor.u32 %v5672_v40, %v4351_v41 }
  0x55   :  { %1515 = vmatpush.bf16.msra.mxu2 %v4418_v63  ;;  %v4894_v16 = vor.u32 %v5810_v9, %v4893_v7  ;;  %v4749_v18 = vld [vmem:[%s9053_s27 + $0x480] sm:$0xf]  ;;  %1425 = vmatmul.bf16.vlgmr.msra.gmra.mxu1 %v6658_v8  ;;  %v5770_v31 = vld [vmem:[%s9053_s27 + $0x46c] sm:$0xf0]  ;;  %v4207_v49 = vld [vmem:[%s9053_s27 + $0x50] sm:$0xf0] }
  0x56   :  { %1502 = vmatpush.bf16.msrb.mxu3 %v4274_v4  ;;  %v4877_v20 = vld [vmem:[%s9053_s27 + $0x580] sm:$0xf]  ;;  %v4750_v25 = vor.u32 %v5774_v19, %v4749_v18  ;;  %v5802_v33 = vld [vmem:[%s9053_s27 + $0x56c] sm:$0xf0]  ;;  %v5668_v53 = vld [vmem:[%s9053_s27 + $0x144] sm:$0xf]  ;;  %v4210_v58 = vor.u32 %v5636_v48, %v4207_v49 }
  0x57   :  { %1461 = vmatpush.bf16.msrb.mxu0 %v4766_v13  ;;  %v4878_v28 = vor.u32 %v5806_v21, %v4877_v20  ;;  %v4733_v30 = vld [vmem:[%s9053_s27 + $0x460] sm:$0xf]  ;;  %v5766_v45 = vld [vmem:[%s9053_s27 + $0x44c] sm:$0xf0]  ;;  %v4335_v56 = vld [vmem:[%s9053_s27 + $0x150] sm:$0xf0] }
  0x58   :  { %1475 = vmatpush.bf16.msrb.mxu1 %v4894_v16  ;;  %v4861_v32 = vld [vmem:[%s9053_s27 + $0x560] sm:$0xf]  ;;  %v4734_v39 = vor.u32 %v5770_v31, %v4733_v30  ;;  %v5798_v47 = vld [vmem:[%s9053_s27 + $0x54c] sm:$0xf0]  ;;  %v5632_v0 = vld [vmem:[%s9053_s27 + $0x24] sm:$0xf]  ;;  %v4338_v4 = vor.u32 %v5668_v53, %v4335_v56 }
  0x59   :  { %1516 = vmatpush.bf16.msra.mxu2 %v4402_v12  ;;  %v4862_v42 = vor.u32 %v5802_v33, %v4861_v32  ;;  %v4717_v44 = vld [vmem:[%s9053_s27 + $0x440] sm:$0xf]  ;;  %v5762_v61 = vld [vmem:[%s9053_s27 + $0x42c] sm:$0xf0]  ;;  %v4191_v1 = vld [vmem:[%s9053_s27 + $0x30] sm:$0xf0] }
  0x5a   :  { %1503 = vmatpush.bf16.msrb.mxu3 %v4258_v17  ;;  %v4845_v46 = vld [vmem:[%s9053_s27 + $0x540] sm:$0xf]  ;;  %v4718_v52 = vor.u32 %v5766_v45, %v4717_v44  ;;  %v5794_v63 = vld [vmem:[%s9053_s27 + $0x52c] sm:$0xf0]  ;;  %v5664_v2 = vld [vmem:[%s9053_s27 + $0x124] sm:$0xf]  ;;  %v4194_v11 = vor.u32 %v5632_v0, %v4191_v1 }
  0x5b   :  { %1462 = vmatpush.bf16.msrb.mxu0 %v4750_v25  ;;  %v4846_v57 = vor.u32 %v5798_v47, %v4845_v46  ;;  %v4701_v59 = vld [vmem:[%s9053_s27 + $0x420] sm:$0xf]  ;;  %v4319_v3 = vld [vmem:[%s9053_s27 + $0x130] sm:$0xf0]  ;;  %v5758_v7 = vld [vmem:[%s9053_s27 + $0x40c] sm:$0xf0] }
  0x5c   :  { %1476 = vmatpush.bf16.msrb.mxu1 %v4878_v28  ;;  %v4829_v62 = vld [vmem:[%s9053_s27 + $0x520] sm:$0xf]  ;;  %v4702_v5 = vor.u32 %v5762_v61, %v4701_v59  ;;  %v5790_v12 = vld [vmem:[%s9053_s27 + $0x50c] sm:$0xf0]  ;;  %v5628_v13 = vld [vmem:[%s9053_s27 + $0x4] sm:$0xf]  ;;  %v4322_v21 = vor.u32 %v5664_v2, %v4319_v3 }
  0x5d   :  { %1517 = vmatpush.bf16.msra.mxu2 %v4386_v24  ;;  %v4685_v6 = vld [vmem:[%s9053_s27 + $0x400] sm:$0xf]  ;;  %v4830_v10 = vor.u32 %v5794_v63, %v4829_v62  ;;  %v4175_v14 = vld [vmem:[%s9053_s27 + $0x10] sm:$0xf0]  ;;  %v5720_v15 = vld [vmem:[%s9053_s27 + $0x2e4] sm:$0xf] }
  0x5e   :  { %1504 = vmatpush.bf16.msrb.mxu3 %v4242_v29  ;;  %v4813_v9 = vld [vmem:[%s9053_s27 + $0x500] sm:$0xf]  ;;  %v4543_v16 = vld [vmem:[%s9053_s27 + $0x2f0] sm:$0xf0]  ;;  %v5752_v17 = vld [vmem:[%s9053_s27 + $0x3e4] sm:$0xf]  ;;  %v4686_v22 = vor.u32 %v5758_v7, %v4685_v6  ;;  %v4178_v27 = vor.u32 %v5628_v13, %v4175_v14 }
  0x5f   :  { %1463 = vmatpush.bf16.msrb.mxu0 %v4734_v39  ;;  %v4671_v18 = vld [vmem:[%s9053_s27 + $0x3f0] sm:$0xf0]  ;;  %v5784_v19 = vld [vmem:[%s9053_s27 + $0x4e4] sm:$0xf]  ;;  %v4161_v23 = vld [vmem:[%s9054_s29 + $0x10] sm:$0xf]  ;;  %v4814_v26 = vor.u32 %v5790_v12, %v4813_v9  ;;  %v4546_v31 = vor.u32 %v5720_v15, %v4543_v16 }
  0x60   :  { %1477 = vmatpush.bf16.msrb.mxu1 %v4862_v42  ;;  %4955 = vmatmul.msk.bf16.vlgmr.msrb.gmra.mxu2 %vm1399_vm0, %v6749_v50  ;;  %v4799_v20 = vld [vmem:[%s9053_s27 + $0x4f0] sm:$0xf0]  ;;  %v5626_v24 = vld [vmem:[%s9054_s29 + $0x28] sm:$0xf0]  ;;  %v5660_v25 = vld [vmem:[%s9053_s27 + $0x104] sm:$0xf]  ;;  %v4674_v32 = vor.u32 %v5752_v17, %v4671_v18 }
  0x61   :  { %1518 = vmatpush.bf16.msra.mxu2 %v4370_v38  ;;  %v4303_v28 = vld [vmem:[%s9053_s27 + $0x110] sm:$0xf0]  ;;  %v4163_v30 = vld [vmem:[%s9054_s29 + $0x2c] sm:$0xf0]  ;;  %v5816_v33 = vld [vmem:[%s9053_s27 + $0x5e4] sm:$0xf]  ;;  %v4802_v36 = vor.u32 %v5784_v19, %v4799_v20  ;;  %v6846_v37 = vor.u32 %v5626_v24, %v4161_v23 }
  0x62   :  { %1505 = vmatpush.bf16.msrb.mxu3 %v4226_v43  ;;  %v5623_v29 = vld [vmem:[%s9054_s29 + $0x14] sm:$0xf]  ;;  %v5716_v35 = vld [vmem:[%s9053_s27 + $0x2c4] sm:$0xf]  ;;  %v4306_v41 = vor.u32 %v5660_v25, %v4303_v28 }
  0x63   :  { %1464 = vmatpush.bf16.msrb.mxu0 %v4718_v52  ;;  %v4927_v34 = vld [vmem:[%s9053_s27 + $0x5f0] sm:$0xf0]  ;;  %v5748_v39 = vld [vmem:[%s9053_s27 + $0x3c4] sm:$0xf]  ;;  %v6857_v42 = vor.u32 %v5623_v29, %v4163_v30 }
  0x64   :  { %1478 = vmatpush.bf16.msrb.mxu1 %v4846_v57  ;;  %v4527_v38 = vld [vmem:[%s9053_s27 + $0x2d0] sm:$0xf0]  ;;  %v5780_v43 = vld [vmem:[%s9053_s27 + $0x4c4] sm:$0xf]  ;;  %v4930_v45 = vor.u32 %v5816_v33, %v4927_v34 }
  0x65   :  { %1519 = vmatpush.bf16.msra.mxu2 %v4354_v51  ;;  %v4655_v40 = vld [vmem:[%s9053_s27 + $0x3d0] sm:$0xf0]  ;;  %v4530_v46 = vor.u32 %v5716_v35, %v4527_v38  ;;  %v5812_v48 = vld [vmem:[%s9053_s27 + $0x5c4] sm:$0xf] }
  0x66   :  { %1506 = vmatpush.bf16.msrb.mxu3 %v4210_v58  ;;  %v4783_v44 = vld [vmem:[%s9053_s27 + $0x4d0] sm:$0xf0]  ;;  %v4658_v47 = vor.u32 %v5748_v39, %v4655_v40  ;;  %v5712_v51 = vld [vmem:[%s9053_s27 + $0x2a4] sm:$0xf] }
  0x67   :  { %1465 = vmatpush.bf16.msrb.mxu0 %v4702_v5  ;;  %v4911_v49 = vld [vmem:[%s9053_s27 + $0x5d0] sm:$0xf0]  ;;  %v4786_v52 = vor.u32 %v5780_v43, %v4783_v44  ;;  %v5744_v56 = vld [vmem:[%s9053_s27 + $0x3a4] sm:$0xf] }
  0x68   :  { %1479 = vmatpush.bf16.msrb.mxu1 %v4830_v10  ;;  %v4511_v53 = vld [vmem:[%s9053_s27 + $0x2b0] sm:$0xf0]  ;;  %v5776_v58 = vld [vmem:[%s9053_s27 + $0x4a4] sm:$0xf]  ;;  %v4914_v61 = vor.u32 %v5812_v48, %v4911_v49 }
  0x69   :  { %1520 = vmatpush.bf16.msra.mxu2 %v4338_v4  ;;  %v4639_v57 = vld [vmem:[%s9053_s27 + $0x3b0] sm:$0xf0]  ;;  %v4514_v62 = vor.u32 %v5712_v51, %v4511_v53  ;;  %v5808_v0 = vld [vmem:[%s9053_s27 + $0x5a4] sm:$0xf] }
  0x6a   :  { %1507 = vmatpush.bf16.msrb.mxu3 %v4194_v11  ;;  %v4767_v59 = vld [vmem:[%s9053_s27 + $0x4b0] sm:$0xf0]  ;;  %v4642_v63 = vor.u32 %v5744_v56, %v4639_v57  ;;  %v5708_v2 = vld [vmem:[%s9053_s27 + $0x284] sm:$0xf] }
  0x6b   :  { %1466 = vmatpush.bf16.msrb.mxu0 %v4686_v22  ;;  %v4895_v1 = vld [vmem:[%s9053_s27 + $0x5b0] sm:$0xf0]  ;;  %v4770_v3 = vor.u32 %v5776_v58, %v4767_v59  ;;  %v5740_v5 = vld [vmem:[%s9053_s27 + $0x384] sm:$0xf] }
  0x6c   :  { %1480 = vmatpush.bf16.msrb.mxu1 %v4814_v26  ;;  %v4495_v4 = vld [vmem:[%s9053_s27 + $0x290] sm:$0xf0]  ;;  %v5772_v7 = vld [vmem:[%s9053_s27 + $0x484] sm:$0xf]  ;;  %v4898_v10 = vor.u32 %v5808_v0, %v4895_v1  ;;  %v4293_v0 = vld [vmem:[%s9053_s27 + $0xe8] sm:$0xf] }
  0x6d   :  { %1521 = vmatpush.bf16.msra.mxu2 %v4322_v21  ;;  %v4623_v6 = vld [vmem:[%s9053_s27 + $0x390] sm:$0xf0]  ;;  %v4498_v11 = vor.u32 %v5708_v2, %v4495_v4  ;;  %v5804_v13 = vld [vmem:[%s9053_s27 + $0x584] sm:$0xf]  ;;  %v5659_v1 = vld [vmem:[%s9053_s27 + $0xf4] sm:$0xf0] }
  0x6e   :  { %1508 = vmatpush.bf16.msrb.mxu3 %v4178_v27  ;;  %1467 = vmatmul.bf16.vlgmr.msrb.gmra.mxu0 %v6846_v37  ;;  %v4751_v9 = vld [vmem:[%s9053_s27 + $0x490] sm:$0xf0]  ;;  %v4626_v12 = vor.u32 %v5740_v5, %v4623_v6  ;;  %v5704_v15 = vld [vmem:[%s9053_s27 + $0x264] sm:$0xf]  ;;  %v4421_v2 = vld [vmem:[%s9053_s27 + $0x1e8] sm:$0xf] }
  0x6f   :  { %1529 = vmatpush.bf16.msra.mxu0 %v4546_v31  ;;  %1481 = vmatmul.bf16.vlgmr.msrb.gmra.mxu1 %v6857_v42  ;;  %v4879_v14 = vld [vmem:[%s9053_s27 + $0x590] sm:$0xf0]  ;;  %v4754_v16 = vor.u32 %v5772_v7, %v4751_v9  ;;  %v5736_v18 = vld [vmem:[%s9053_s27 + $0x364] sm:$0xf]  ;;  %v5691_v4 = vld [vmem:[%s9053_s27 + $0x1f4] sm:$0xf0] }
  0x70   :  { %1543 = vmatpush.bf16.msra.mxu1 %v4674_v32  ;;  %v4479_v17 = vld [vmem:[%s9053_s27 + $0x270] sm:$0xf0]  ;;  %v5768_v20 = vld [vmem:[%s9053_s27 + $0x464] sm:$0xf]  ;;  %v4882_v22 = vor.u32 %v5804_v13, %v4879_v14  ;;  %v4294_v13 = vor.u32 %v5659_v1, %v4293_v0  ;;  %v4549_v14 = vld [vmem:[%s9053_s27 + $0x2e8] sm:$0xf] }
  0x71   :  { %1522 = vmatpush.bf16.msra.mxu2 %v4306_v41  ;;  %1509 = vmatmul.bf16.vlgmr.msrb.gmra.mxu3 %v6622_v55  ;;  %v4607_v19 = vld [vmem:[%s9053_s27 + $0x370] sm:$0xf0]  ;;  %v4482_v23 = vor.u32 %v5704_v15, %v4479_v17  ;;  %v5800_v25 = vld [vmem:[%s9053_s27 + $0x564] sm:$0xf]  ;;  %v5723_v15 = vld [vmem:[%s9053_s27 + $0x2f4] sm:$0xf0]  ;;  %v4422_v17 = vor.u32 %v5691_v4, %v4421_v2 }
  0x72   :  { %1557 = vmatpush.bf16.msra.mxu3 %v4802_v36  ;;  %v4735_v21 = vld [vmem:[%s9053_s27 + $0x470] sm:$0xf0]  ;;  %v4610_v24 = vor.u32 %v5736_v18, %v4607_v19  ;;  %v5700_v27 = vld [vmem:[%s9053_s27 + $0x244] sm:$0xf]  ;;  %v5755_v19 = vld [vmem:[%s9053_s27 + $0x3f4] sm:$0xf0] }
  0x73   :  { %1530 = vmatpush.bf16.msra.mxu0 %v4530_v46  ;;  %v4863_v26 = vld [vmem:[%s9053_s27 + $0x570] sm:$0xf0]  ;;  %v4738_v28 = vor.u32 %v5768_v20, %v4735_v21  ;;  %v5732_v30 = vld [vmem:[%s9053_s27 + $0x344] sm:$0xf]  ;;  %v4277_v20 = vld [vmem:[%s9053_s27 + $0xc8] sm:$0xf] }
  0x74   :  { %1544 = vmatpush.bf16.msra.mxu1 %v4658_v47  ;;  %1523 = vmatmul.bf16.vlgmr.msra.gmra.mxu2 %v6658_v8  ;;  %v4463_v29 = vld [vmem:[%s9053_s27 + $0x250] sm:$0xf0]  ;;  %v5764_v32 = vld [vmem:[%s9053_s27 + $0x444] sm:$0xf]  ;;  %v4866_v34 = vor.u32 %v5800_v25, %v4863_v26  ;;  %v5655_v21 = vld [vmem:[%s9053_s27 + $0xd4] sm:$0xf0]  ;;  %v4550_v25 = vor.u32 %v5723_v15, %v4549_v14 }
  0x75   :  { %1571 = vmatpush.bf16.msrb.mxu2 %v4930_v45  ;;  %v4591_v31 = vld [vmem:[%s9053_s27 + $0x350] sm:$0xf0]  ;;  %v4466_v35 = vor.u32 %v5700_v27, %v4463_v29  ;;  %v5796_v38 = vld [vmem:[%s9053_s27 + $0x544] sm:$0xf]  ;;  %v4278_v27 = vor.u32 %v5655_v21, %v4277_v20  ;;  %v5719_v29 = vld [vmem:[%s9053_s27 + $0x2d4] sm:$0xf0] }
  0x76   :  { %1558 = vmatpush.bf16.msra.mxu3 %v4786_v52  ;;  %v4719_v33 = vld [vmem:[%s9053_s27 + $0x450] sm:$0xf0]  ;;  %v4594_v36 = vor.u32 %v5732_v30, %v4591_v31  ;;  %v5696_v40 = vld [vmem:[%s9053_s27 + $0x224] sm:$0xf]  ;;  %v4661_v30 = vld [vmem:[%s9053_s27 + $0x3c8] sm:$0xf] }
  0x77   :  { %1531 = vmatpush.bf16.msra.mxu0 %v4514_v62  ;;  %v4847_v39 = vld [vmem:[%s9053_s27 + $0x550] sm:$0xf0]  ;;  %v4722_v41 = vor.u32 %v5764_v32, %v4719_v33  ;;  %v5728_v44 = vld [vmem:[%s9053_s27 + $0x324] sm:$0xf]  ;;  %v5751_v32 = vld [vmem:[%s9053_s27 + $0x3d4] sm:$0xf0] }
  0x78   :  { %1545 = vmatpush.bf16.msra.mxu1 %v4642_v63  ;;  %v4447_v43 = vld [vmem:[%s9053_s27 + $0x230] sm:$0xf0]  ;;  %v5760_v46 = vld [vmem:[%s9053_s27 + $0x424] sm:$0xf]  ;;  %v4850_v48 = vor.u32 %v5796_v38, %v4847_v39  ;;  %v4261_v33 = vld [vmem:[%s9053_s27 + $0xa8] sm:$0xf]  ;;  %v4662_v39 = vor.u32 %v5751_v32, %v4661_v30 }
  0x79   :  { %1572 = vmatpush.bf16.msrb.mxu2 %v4914_v61  ;;  %v4575_v45 = vld [vmem:[%s9053_s27 + $0x330] sm:$0xf0]  ;;  %v5792_v49 = vld [vmem:[%s9053_s27 + $0x524] sm:$0xf]  ;;  %v4450_v52 = vor.u32 %v5696_v40, %v4447_v43  ;;  %v5715_v43 = vld [vmem:[%s9053_s27 + $0x2b4] sm:$0xf0] }
  0x7a   :  { %1559 = vmatpush.bf16.msra.mxu3 %v4770_v3  ;;  %v4703_v47 = vld [vmem:[%s9053_s27 + $0x430] sm:$0xf0]  ;;  %v4578_v53 = vor.u32 %v5728_v44, %v4575_v45  ;;  %v5692_v56 = vld [vmem:[%s9053_s27 + $0x204] sm:$0xf]  ;;  %v4645_v44 = vld [vmem:[%s9053_s27 + $0x3a8] sm:$0xf] }
  0x7b   :  { %1532 = vmatpush.bf16.msra.mxu0 %v4498_v11  ;;  %v4831_v51 = vld [vmem:[%s9053_s27 + $0x530] sm:$0xf0]  ;;  %v5724_v58 = vld [vmem:[%s9053_s27 + $0x304] sm:$0xf]  ;;  %v4706_v59 = vor.u32 %v5760_v46, %v4703_v47  ;;  %v5747_v46 = vld [vmem:[%s9053_s27 + $0x3b4] sm:$0xf0] }
  0x7c   :  { %1546 = vmatpush.bf16.msra.mxu1 %v4626_v12  ;;  %v4431_v57 = vld [vmem:[%s9053_s27 + $0x210] sm:$0xf0]  ;;  %v5756_v62 = vld [vmem:[%s9053_s27 + $0x404] sm:$0xf]  ;;  %v4834_v3 = vor.u32 %v5792_v49, %v4831_v51  ;;  %v4245_v47 = vld [vmem:[%s9053_s27 + $0x88] sm:$0xf] }
  0x7d   :  { %1573 = vmatpush.bf16.msrb.mxu2 %v4898_v10  ;;  %v4559_v61 = vld [vmem:[%s9053_s27 + $0x310] sm:$0xf0]  ;;  %v5820_v5 = vld [vmem:[%s9053_s27 + $0x604] sm:$0xf]  ;;  %v4434_v7 = vor.u32 %v5692_v56, %v4431_v57  ;;  %v4373_v49 = vld [vmem:[%s9053_s27 + $0x188] sm:$0xf]  ;;  %v4646_v56 = vor.u32 %v5747_v46, %v4645_v44 }
  0x7e   :  { %1560 = vmatpush.bf16.msra.mxu3 %v4754_v16  ;;  %v4687_v63 = vld [vmem:[%s9053_s27 + $0x410] sm:$0xf0]  ;;  %v4562_v9 = vor.u32 %v5724_v58, %v4559_v61  ;;  %v5788_v10 = vld [vmem:[%s9053_s27 + $0x504] sm:$0xf]  ;;  %v4677_v16 = vld [vmem:[%s9053_s27 + $0x3e8] sm:$0xf] }
  0x7f   :  { %1533 = vmatpush.bf16.msra.mxu0 %v4482_v23  ;;  %v4943_v6 = vld [vmem:[%s9053_s27 + $0x610] sm:$0xf0]  ;;  %v4690_v12 = vor.u32 %v5756_v62, %v4687_v63  ;;  %v4405_v23 = vld [vmem:[%s9053_s27 + $0x1c8] sm:$0xf]  ;;  %v4678_v26 = vor.u32 %v5755_v19, %v4677_v16  ;;  %v5679_v51 = vld [vmem:[%s9053_s27 + $0x194] sm:$0xf0] }
  0x80   :  { %1547 = vmatpush.bf16.msra.mxu1 %v4610_v24  ;;  %v4815_v11 = vld [vmem:[%s9053_s27 + $0x510] sm:$0xf0]  ;;  %v4946_v18 = vor.u32 %v5820_v5, %v4943_v6  ;;  %v5687_v24 = vld [vmem:[%s9053_s27 + $0x1d4] sm:$0xf0]  ;;  %v4374_v62 = vor.u32 %v5679_v51, %v4373_v49  ;;  %v4229_v63 = vld [vmem:[%s9053_s27 + $0x68] sm:$0xf] }
  0x81   :  { %1574 = vmatpush.bf16.msrb.mxu2 %v4882_v22  ;;  %v4818_v22 = vor.u32 %v5788_v10, %v4815_v11  ;;  %v4406_v31 = vor.u32 %v5687_v24, %v4405_v23  ;;  %v5711_v58 = vld [vmem:[%s9053_s27 + $0x294] sm:$0xf0]  ;;  %v4357_v1 = vld [vmem:[%s9053_s27 + $0x168] sm:$0xf] }
  0x82   :  { %1561 = vmatpush.bf16.msra.mxu3 %v4738_v28  ;;  %v4533_v28 = vld [vmem:[%s9053_s27 + $0x2c8] sm:$0xf]  ;;  %v5743_v61 = vld [vmem:[%s9053_s27 + $0x394] sm:$0xf0] }
  0x83   :  { %1534 = vmatpush.bf16.msra.mxu0 %v4466_v35  ;;  %v4389_v35 = vld [vmem:[%s9053_s27 + $0x1a8] sm:$0xf]  ;;  %v4534_v38 = vor.u32 %v5719_v29, %v4533_v28  ;;  %v5643_v0 = vld [vmem:[%s9053_s27 + $0x74] sm:$0xf0] }
  0x84   :  { %1548 = vmatpush.bf16.msra.mxu1 %v4594_v36  ;;  %v5683_v36 = vld [vmem:[%s9053_s27 + $0x1b4] sm:$0xf0]  ;;  %v4485_v4 = vld [vmem:[%s9053_s27 + $0x268] sm:$0xf] }
  0x85   :  { %1575 = vmatpush.bf16.msrb.mxu2 %v4866_v34  ;;  %v5651_v34 = vld [vmem:[%s9053_s27 + $0xb4] sm:$0xf0]  ;;  %v4390_v45 = vor.u32 %v5683_v36, %v4389_v35  ;;  %v4613_v6 = vld [vmem:[%s9053_s27 + $0x368] sm:$0xf] }
  0x86   :  { %1562 = vmatpush.bf16.msra.mxu3 %v4722_v41  ;;  %v4262_v40 = vor.u32 %v5651_v34, %v4261_v33  ;;  %v4517_v41 = vld [vmem:[%s9053_s27 + $0x2a8] sm:$0xf]  ;;  %v5675_v2 = vld [vmem:[%s9053_s27 + $0x174] sm:$0xf0] }
  0x87   :  { %1535 = vmatpush.bf16.msra.mxu0 %v4450_v52  ;;  %v4518_v52 = vor.u32 %v5715_v43, %v4517_v41  ;;  %v5707_v5 = vld [vmem:[%s9053_s27 + $0x274] sm:$0xf0]  ;;  %v4358_v11 = vor.u32 %v5675_v2, %v4357_v1  ;;  %v4341_v14 = vld [vmem:[%s9053_s27 + $0x148] sm:$0xf] }
  0x88   :  { %1549 = vmatpush.bf16.msra.mxu1 %v4578_v53  ;;  %v4501_v53 = vld [vmem:[%s9053_s27 + $0x288] sm:$0xf]  ;;  %v5739_v10 = vld [vmem:[%s9053_s27 + $0x374] sm:$0xf0]  ;;  %v4486_v16 = vor.u32 %v5707_v5, %v4485_v4 }
  0x89   :  { %1576 = vmatpush.bf16.msrb.mxu2 %v4850_v48  ;;  %v5647_v48 = vld [vmem:[%s9053_s27 + $0x94] sm:$0xf0]  ;;  %v4469_v19 = vld [vmem:[%s9053_s27 + $0x248] sm:$0xf] }
  0x8a   :  { %1563 = vmatpush.bf16.msra.mxu3 %v4706_v59  ;;  %v4246_v57 = vor.u32 %v5647_v48, %v4245_v47  ;;  %v4629_v59 = vld [vmem:[%s9053_s27 + $0x388] sm:$0xf]  ;;  %v5671_v15 = vld [vmem:[%s9053_s27 + $0x154] sm:$0xf0] }
  0x8b   :  { %1536 = vmatpush.bf16.msra.mxu0 %v4434_v7  ;;  %v4630_v7 = vor.u32 %v5743_v61, %v4629_v59  ;;  %v5703_v20 = vld [vmem:[%s9053_s27 + $0x254] sm:$0xf0]  ;;  %v4597_v21 = vld [vmem:[%s9053_s27 + $0x348] sm:$0xf]  ;;  %v4295_v59 = vld [vmem:[%s9053_s27 + $0xf8] sm:$0xf0] }
  0x8c   :  { %1550 = vmatpush.bf16.msra.mxu1 %v4562_v9  ;;  %v4230_v9 = vor.u32 %v5643_v0, %v4229_v63  ;;  %v5735_v23 = vld [vmem:[%s9053_s27 + $0x354] sm:$0xf0]  ;;  %v4197_v24 = vld [vmem:[%s9053_s27 + $0x28] sm:$0xf]  ;;  %v4470_v28 = vor.u32 %v5703_v20, %v4469_v19 }
  0x8d   :  { %1577 = vmatpush.bf16.msrb.mxu2 %v4834_v3  ;;  %v4502_v3 = vor.u32 %v5711_v58, %v4501_v53  ;;  %v4453_v29 = vld [vmem:[%s9053_s27 + $0x228] sm:$0xf]  ;;  %v4598_v30 = vor.u32 %v5735_v23, %v4597_v21  ;;  %v5699_v32 = vld [vmem:[%s9053_s27 + $0x234] sm:$0xf0]  ;;  %v5657_v58 = vld [vmem:[%s9053_s27 + $0xec] sm:$0xf] }
  0x8e   :  { %1564 = vmatpush.bf16.msra.mxu3 %v4690_v12  ;;  %1537 = vmatmul.bf16.vlgmr.msra.gmra.mxu0 %v6620_v54  ;;  %v4213_v12 = vld [vmem:[%s9053_s27 + $0x48] sm:$0xf]  ;;  %v5731_v34 = vld [vmem:[%s9053_s27 + $0x334] sm:$0xf0]  ;;  %v4454_v44 = vor.u32 %v5699_v32, %v4453_v29  ;;  %v4407_v23 = vld [vmem:[%s9053_s27 + $0x1d8] sm:$0xf0] }
  0x8f   :  { %1592 = vmatpush.bf16.msrb.mxu0 %v4946_v18  ;;  %1551 = vmatmul.bf16.vlgmr.msra.gmra.mxu1 %v6633_v60  ;;  %v4581_v33 = vld [vmem:[%s9053_s27 + $0x328] sm:$0xf]  ;;  %v5787_v43 = vld [vmem:[%s9053_s27 + $0x4f4] sm:$0xf0] }
  0x90   :  { %1599 = vmatpush.bf16.msrb.mxu1 %v4294_v13  ;;  %v5639_v13 = vld [vmem:[%s9053_s27 + $0x54] sm:$0xf0]  ;;  %v4181_v36 = vld [vmem:[%s9053_s27 + $0x8] sm:$0xf]  ;;  %v4582_v47 = vor.u32 %v5731_v34, %v4581_v33  ;;  %v5681_v34 = vld [vmem:[%s9053_s27 + $0x1ac] sm:$0xf] }
  0x91   :  { %1578 = vmatpush.bf16.msrb.mxu2 %v4818_v22  ;;  %1565 = vmatmul.bf16.vlgmr.msra.gmra.mxu3 %v6846_v37  ;;  %v4214_v18 = vor.u32 %v5639_v13, %v4213_v12  ;;  %v4342_v22 = vor.u32 %v5671_v15, %v4341_v14  ;;  %v4805_v41 = vld [vmem:[%s9053_s27 + $0x4e8] sm:$0xf]  ;;  %v5819_v46 = vld [vmem:[%s9053_s27 + $0x5f4] sm:$0xf0]  ;;  %v4279_v14 = vld [vmem:[%s9053_s27 + $0xd8] sm:$0xf0] }
  0x92   :  { %1613 = vmatpush.bf16.msrb.mxu3 %v4422_v17  ;;  %v4614_v17 = vor.u32 %v5739_v10, %v4613_v6  ;;  %v4437_v49 = vld [vmem:[%s9053_s27 + $0x208] sm:$0xf]  ;;  %v5695_v51 = vld [vmem:[%s9053_s27 + $0x214] sm:$0xf0]  ;;  %v4298_v6 = vor.u32 %v5657_v58, %v4295_v59  ;;  %v4423_v10 = vld [vmem:[%s9053_s27 + $0x1f8] sm:$0xf0] }
  0x93   :  { %1627 = vmatpush.bf16.msra.mxu0 %v4550_v25  ;;  %v5635_v25 = vld [vmem:[%s9053_s27 + $0x34] sm:$0xf0]  ;;  %v4917_v0 = vld [vmem:[%s9053_s27 + $0x5c8] sm:$0xf]  ;;  %v4438_v1 = vor.u32 %v5695_v51, %v4437_v49  ;;  %v4375_v49 = vld [vmem:[%s9053_s27 + $0x198] sm:$0xf0] }
  0x94   :  { %1600 = vmatpush.bf16.msrb.mxu1 %v4278_v27  ;;  %1579 = vmatmul.bf16.vlgmr.msrb.gmra.mxu2 %v6857_v42  ;;  %v5667_v27 = vld [vmem:[%s9053_s27 + $0x134] sm:$0xf0]  ;;  %v4773_v15 = vld [vmem:[%s9053_s27 + $0x4a8] sm:$0xf]  ;;  %v5641_v51 = vld [vmem:[%s9053_s27 + $0x6c] sm:$0xf] }
  0x95   :  { %1641 = vmatpush.bf16.msra.mxu2 %v4678_v26  ;;  %v4325_v26 = vld [vmem:[%s9053_s27 + $0x128] sm:$0xf]  ;;  %v5783_v63 = vld [vmem:[%s9053_s27 + $0x4d4] sm:$0xf0] }
  0x96   :  { %1614 = vmatpush.bf16.msrb.mxu3 %v4406_v31  ;;  %v4198_v31 = vor.u32 %v5635_v25, %v4197_v24  ;;  %v4326_v35 = vor.u32 %v5667_v27, %v4325_v26  ;;  %v5815_v2 = vld [vmem:[%s9053_s27 + $0x5d4] sm:$0xf0]  ;;  %v5649_v24 = vld [vmem:[%s9053_s27 + $0xac] sm:$0xf]  ;;  %v4263_v26 = vld [vmem:[%s9053_s27 + $0xb8] sm:$0xf0] }
  0x97   :  { %1628 = vmatpush.bf16.msra.mxu0 %v4534_v38  ;;  %v5631_v38 = vld [vmem:[%s9053_s27 + $0x14] sm:$0xf0]  ;;  %v4918_v12 = vor.u32 %v5815_v2, %v4917_v0  ;;  %v4757_v27 = vld [vmem:[%s9053_s27 + $0x488] sm:$0xf]  ;;  %v4266_v32 = vor.u32 %v5649_v24, %v4263_v26  ;;  %v5673_v0 = vld [vmem:[%s9053_s27 + $0x16c] sm:$0xf] }
  0x98   :  { %1601 = vmatpush.bf16.msrb.mxu1 %v4262_v40  ;;  %v5663_v40 = vld [vmem:[%s9053_s27 + $0x114] sm:$0xf0]  ;;  %v4182_v48 = vor.u32 %v5631_v38, %v4181_v36  ;;  %v4885_v29 = vld [vmem:[%s9053_s27 + $0x588] sm:$0xf]  ;;  %v5645_v36 = vld [vmem:[%s9053_s27 + $0x8c] sm:$0xf] }
  0x99   :  { %1642 = vmatpush.bf16.msra.mxu2 %v4662_v39  ;;  %v4309_v39 = vld [vmem:[%s9053_s27 + $0x108] sm:$0xf]  ;;  %v5823_v4 = vld [vmem:[%s9053_s27 + $0x614] sm:$0xf0]  ;;  %v5637_v2 = vld [vmem:[%s9053_s27 + $0x4c] sm:$0xf] }
  0x9a   :  { %1615 = vmatpush.bf16.msrb.mxu3 %v4390_v45  ;;  %v4933_v45 = vld [vmem:[%s9053_s27 + $0x5e8] sm:$0xf]  ;;  %v4310_v53 = vor.u32 %v5663_v40, %v4309_v39  ;;  %v4247_v39 = vld [vmem:[%s9053_s27 + $0x98] sm:$0xf0]  ;;  %v5799_v59 = vld [vmem:[%s9053_s27 + $0x554] sm:$0xf0] }
  0x9b   :  { %1629 = vmatpush.bf16.msra.mxu0 %v4518_v52  ;;  %v4565_v52 = vld [vmem:[%s9053_s27 + $0x308] sm:$0xf]  ;;  %v4934_v61 = vor.u32 %v5819_v46, %v4933_v45  ;;  %v4250_v46 = vor.u32 %v5645_v36, %v4247_v39  ;;  %v4679_v26 = vld [vmem:[%s9053_s27 + $0x3f8] sm:$0xf0]  ;;  %v5717_v39 = vld [vmem:[%s9053_s27 + $0x2cc] sm:$0xf] }
  0x9c   :  { %1602 = vmatpush.bf16.msrb.mxu1 %v4246_v57  ;;  %v5727_v57 = vld [vmem:[%s9053_s27 + $0x314] sm:$0xf0]  ;;  %v4741_v40 = vld [vmem:[%s9053_s27 + $0x468] sm:$0xf] }
  0x9d   :  { %1643 = vmatpush.bf16.msra.mxu2 %v4646_v56  ;;  %v4806_v56 = vor.u32 %v5787_v43, %v4805_v41  ;;  %v4566_v5 = vor.u32 %v5727_v57, %v4565_v52  ;;  %v5771_v41 = vld [vmem:[%s9053_s27 + $0x474] sm:$0xf0]  ;;  %v4869_v43 = vld [vmem:[%s9053_s27 + $0x568] sm:$0xf] }
  0x9e   :  { %1616 = vmatpush.bf16.msrb.mxu3 %v4374_v62  ;;  %4956 = vmatmul.msk.bf16.vlgmr.msrb.gmra.mxu0 %vm1399_vm0, %v6749_v50  ;;  %v4789_v62 = vld [vmem:[%s9053_s27 + $0x4c8] sm:$0xf]  ;;  %v5767_v57 = vld [vmem:[%s9053_s27 + $0x454] sm:$0xf0] }
  0x9f   :  { %1630 = vmatpush.bf16.msra.mxu0 %v4502_v3  ;;  %v4949_v3 = vld [vmem:[%s9053_s27 + $0x608] sm:$0xf] }
  0xa0   :  { %1603 = vmatpush.bf16.msrb.mxu1 %v4230_v9  ;;  %v5689_v9 = vld [vmem:[%s9053_s27 + $0x1ec] sm:$0xf]  ;;  %v4950_v13 = vor.u32 %v5823_v4, %v4949_v3  ;;  %v4853_v58 = vld [vmem:[%s9053_s27 + $0x548] sm:$0xf]  ;;  %v4215_v4 = vld [vmem:[%s9053_s27 + $0x58] sm:$0xf0] }
  0xa1   :  { %1644 = vmatpush.bf16.msra.mxu2 %v4630_v7  ;;  %v4790_v7 = vor.u32 %v5783_v63, %v4789_v62  ;;  %v4426_v19 = vor.u32 %v5689_v9, %v4423_v10  ;;  %v4854_v3 = vor.u32 %v5799_v59, %v4853_v58  ;;  %v5795_v9 = vld [vmem:[%s9053_s27 + $0x534] sm:$0xf0]  ;;  %v5713_v58 = vld [vmem:[%s9053_s27 + $0x2ac] sm:$0xf]  ;;  %v4519_v59 = vld [vmem:[%s9053_s27 + $0x2b8] sm:$0xf0] }
  0xa2   :  { %1617 = vmatpush.bf16.msrb.mxu3 %v4358_v11  ;;  %v5653_v11 = vld [vmem:[%s9053_s27 + $0xcc] sm:$0xf] }
  0xa3   :  { %1631 = vmatpush.bf16.msra.mxu0 %v4486_v16  ;;  %v5779_v16 = vld [vmem:[%s9053_s27 + $0x4b4] sm:$0xf0]  ;;  %v4282_v20 = vor.u32 %v5653_v11, %v4279_v14  ;;  %v5669_v11 = vld [vmem:[%s9053_s27 + $0x14c] sm:$0xf]  ;;  %v4343_v14 = vld [vmem:[%s9053_s27 + $0x158] sm:$0xf0] }
  0xa4   :  { %1604 = vmatpush.bf16.msrb.mxu1 %v4214_v18  ;;  %v5811_v18 = vld [vmem:[%s9053_s27 + $0x5b4] sm:$0xf0]  ;;  %v4774_v21 = vor.u32 %v5779_v16, %v4773_v15  ;;  %v5633_v15 = vld [vmem:[%s9053_s27 + $0x2c] sm:$0xf]  ;;  %v4199_v16 = vld [vmem:[%s9053_s27 + $0x38] sm:$0xf0]  ;;  %v4346_v24 = vor.u32 %v5669_v11, %v4343_v14 }
  0xa5   :  { %1645 = vmatpush.bf16.msra.mxu2 %v4614_v17  ;;  %v4901_v17 = vld [vmem:[%s9053_s27 + $0x5a8] sm:$0xf]  ;;  %v5741_v11 = vld [vmem:[%s9053_s27 + $0x38c] sm:$0xf] }
  0xa6   :  { %1618 = vmatpush.bf16.msrb.mxu3 %v4342_v22  ;;  %v5685_v22 = vld [vmem:[%s9053_s27 + $0x1cc] sm:$0xf]  ;;  %v4902_v25 = vor.u32 %v5811_v18, %v4901_v17  ;;  %v4693_v18 = vld [vmem:[%s9053_s27 + $0x408] sm:$0xf] }
  0xa7   :  { %1632 = vmatpush.bf16.msra.mxu0 %v4470_v28  ;;  %v5775_v28 = vld [vmem:[%s9053_s27 + $0x494] sm:$0xf0] }
  0xa8   :  { %1605 = vmatpush.bf16.msrb.mxu1 %v4198_v31  ;;  %v4410_v31 = vor.u32 %v5685_v22, %v4407_v23  ;;  %v4758_v33 = vor.u32 %v5775_v28, %v4757_v27  ;;  %v5721_v22 = vld [vmem:[%s9053_s27 + $0x2ec] sm:$0xf]  ;;  %v4551_v23 = vld [vmem:[%s9053_s27 + $0x2f8] sm:$0xf0]  ;;  %v4202_v27 = vor.u32 %v5633_v15, %v4199_v16 }
  0xa9   :  { %1646 = vmatpush.bf16.msra.mxu2 %v4598_v30  ;;  %v5807_v30 = vld [vmem:[%s9053_s27 + $0x594] sm:$0xf0]  ;;  %v5809_v16 = vld [vmem:[%s9053_s27 + $0x5ac] sm:$0xf] }
  0xaa   :  { %1619 = vmatpush.bf16.msrb.mxu3 %v4326_v35  ;;  %v4391_v35 = vld [vmem:[%s9053_s27 + $0x1b8] sm:$0xf0]  ;;  %v4886_v38 = vor.u32 %v5807_v30, %v4885_v29  ;;  %v5665_v29 = vld [vmem:[%s9053_s27 + $0x12c] sm:$0xf] }
  0xab   :  { %1633 = vmatpush.bf16.msra.mxu0 %v4454_v44  ;;  %v5803_v44 = vld [vmem:[%s9053_s27 + $0x574] sm:$0xf0]  ;;  %v4394_v45 = vor.u32 %v5681_v34, %v4391_v35  ;;  %v4327_v30 = vld [vmem:[%s9053_s27 + $0x138] sm:$0xf0]  ;;  %v5785_v35 = vld [vmem:[%s9053_s27 + $0x4ec] sm:$0xf] }
  0xac   :  { %1606 = vmatpush.bf16.msrb.mxu1 %v4182_v48  ;;  %v5677_v48 = vld [vmem:[%s9053_s27 + $0x18c] sm:$0xf]  ;;  %v4870_v52 = vor.u32 %v5803_v44, %v4869_v43  ;;  %v4183_v34 = vld [vmem:[%s9053_s27 + $0x18] sm:$0xf0] }
  0xad   :  { %1647 = vmatpush.bf16.msra.mxu2 %v4582_v47  ;;  %v4742_v47 = vor.u32 %v5771_v41, %v4741_v40  ;;  %v4535_v40 = vld [vmem:[%s9053_s27 + $0x2d8] sm:$0xf0]  ;;  %v4330_v41 = vor.u32 %v5665_v29, %v4327_v30  ;;  %v5749_v43 = vld [vmem:[%s9053_s27 + $0x3cc] sm:$0xf] }
  0xae   :  { %1620 = vmatpush.bf16.msrb.mxu3 %v4310_v53  ;;  %v4231_v53 = vld [vmem:[%s9053_s27 + $0x78] sm:$0xf0] }
  0xaf   :  { %1634 = vmatpush.bf16.msra.mxu0 %v4438_v1  ;;  %1607 = vmatmul.bf16.vlgmr.msrb.gmra.mxu1 %v6622_v55  ;;  %v4234_v62 = vor.u32 %v5641_v51, %v4231_v53  ;;  %v4359_v1 = vld [vmem:[%s9053_s27 + $0x178] sm:$0xf0]  ;;  %v5817_v51 = vld [vmem:[%s9053_s27 + $0x5ec] sm:$0xf] }
  0xb0   :  { %1655 = vmatpush.bf16.msra.mxu1 %v4806_v56  ;;  %v4725_v56 = vld [vmem:[%s9053_s27 + $0x448] sm:$0xf]  ;;  %v4362_v10 = vor.u32 %v5673_v0, %v4359_v1  ;;  %v4663_v44 = vld [vmem:[%s9053_s27 + $0x3d8] sm:$0xf0]  ;;  %v5781_v53 = vld [vmem:[%s9053_s27 + $0x4cc] sm:$0xf] }
  0xb1   :  { %1621 = vmatmul.bf16.vlgmr.msrb.gmra.mxu3 %v6658_v8  ;;  %1648 = vmatpush.bf16.msra.mxu2 %v4566_v5  ;;  %v4726_v63 = vor.u32 %v5767_v57, %v4725_v56  ;;  %v4709_v5 = vld [vmem:[%s9053_s27 + $0x428] sm:$0xf]  ;;  %v4666_v56 = vor.u32 %v5749_v43, %v4663_v44  ;;  %v4791_v57 = vld [vmem:[%s9053_s27 + $0x4d8] sm:$0xf0]  ;;  %v5765_v43 = vld [vmem:[%s9053_s27 + $0x44c] sm:$0xf] }
  0xb2   :  { %1669 = vmatpush.bf16.msra.mxu3 %v4934_v61  ;;  %1635 = vmatmul.bf16.vlgmr.msra.gmra.mxu0 %v6620_v54  ;;  %v4378_v61 = vor.u32 %v5677_v48, %v4375_v49  ;;  %v4538_v49 = vor.u32 %v5717_v39, %v4535_v40  ;;  %v4794_v1 = vor.u32 %v5781_v53, %v4791_v57  ;;  %v4743_v30 = vld [vmem:[%s9053_s27 + $0x478] sm:$0xf0]  ;;  %v5801_v40 = vld [vmem:[%s9053_s27 + $0x56c] sm:$0xf] }
  0xb3   :  { %1690 = vmatpush.bf16.msrb.mxu0 %v4950_v13  ;;  %v5797_v53 = vld [vmem:[%s9053_s27 + $0x54c] sm:$0xf] }
  0xb4   :  { %1656 = vmatpush.bf16.msra.mxu1 %v4790_v7  ;;  %1649 = vmatmul.bf16.vlgmr.msra.gmra.mxu2 %v6633_v60  ;;  %v4837_v7 = vld [vmem:[%s9053_s27 + $0x528] sm:$0xf] }
  0xb5   :  { %1697 = vmatpush.bf16.msrb.mxu2 %v4298_v6  ;;  %v5763_v6 = vld [vmem:[%s9053_s27 + $0x434] sm:$0xf0]  ;;  %v4838_v17 = vor.u32 %v5795_v9, %v4837_v7  ;;  %v4775_v7 = vld [vmem:[%s9053_s27 + $0x4b8] sm:$0xf0]  ;;  %v5709_v9 = vld [vmem:[%s9053_s27 + $0x28c] sm:$0xf] }
  0xb6   :  { %1670 = vmatpush.bf16.msra.mxu3 %v4918_v12  ;;  %v4218_v12 = vor.u32 %v5637_v2, %v4215_v4  ;;  %v4710_v13 = vor.u32 %v5763_v6, %v4709_v5  ;;  %v4522_v2 = vor.u32 %v5713_v58, %v4519_v59  ;;  %v4919_v4 = vld [vmem:[%s9053_s27 + $0x5d8] sm:$0xf0]  ;;  %v5777_v5 = vld [vmem:[%s9053_s27 + $0x4ac] sm:$0xf] }
  0xb7   :  { %1711 = vmatpush.bf16.msra.mxu0 %v4426_v19  ;;  %v5759_v19 = vld [vmem:[%s9053_s27 + $0x414] sm:$0xf0]  ;;  %v4778_v14 = vor.u32 %v5777_v5, %v4775_v7  ;;  %v4855_v58 = vld [vmem:[%s9053_s27 + $0x558] sm:$0xf0]  ;;  %v5761_v59 = vld [vmem:[%s9053_s27 + $0x42c] sm:$0xf] }
  0xb8   :  { %1657 = vmatpush.bf16.msra.mxu1 %v4774_v21  ;;  %v5791_v21 = vld [vmem:[%s9053_s27 + $0x514] sm:$0xf0]  ;;  %v4694_v28 = vor.u32 %v5759_v19, %v4693_v18  ;;  %v5773_v18 = vld [vmem:[%s9053_s27 + $0x48c] sm:$0xf]  ;;  %v4759_v19 = vld [vmem:[%s9053_s27 + $0x498] sm:$0xf0] }
  0xb9   :  { %1698 = vmatpush.bf16.msrb.mxu2 %v4282_v20  ;;  %v4821_v20 = vld [vmem:[%s9053_s27 + $0x508] sm:$0xf]  ;;  %v5821_v5 = vld [vmem:[%s9053_s27 + $0x60c] sm:$0xf] }
  0xba   :  { %1671 = vmatpush.bf16.msra.mxu3 %v4902_v25  ;;  %v5753_v25 = vld [vmem:[%s9053_s27 + $0x3ec] sm:$0xf] }
  0xbb   :  { %1712 = vmatpush.bf16.msra.mxu0 %v4410_v31  ;;  %v4822_v31 = vor.u32 %v5791_v21, %v4821_v20  ;;  %v4682_v36 = vor.u32 %v5753_v25, %v4679_v26  ;;  %v5705_v20 = vld [vmem:[%s9053_s27 + $0x26c] sm:$0xf]  ;;  %v4487_v21 = vld [vmem:[%s9053_s27 + $0x278] sm:$0xf0]  ;;  %v4762_v25 = vor.u32 %v5773_v18, %v4759_v19 }
  0xbc   :  { %1658 = vmatpush.bf16.msra.mxu1 %v4758_v33  ;;  %v5629_v33 = vld [vmem:[%s9053_s27 + $0xc] sm:$0xf]  ;;  %v4490_v26 = vor.u32 %v5705_v20, %v4487_v21  ;;  %v4823_v21 = vld [vmem:[%s9053_s27 + $0x518] sm:$0xf0] }
  0xbd   :  { %1699 = vmatpush.bf16.msrb.mxu2 %v4266_v32  ;;  %v4554_v32 = vor.u32 %v5721_v22, %v4551_v23  ;;  %v5737_v22 = vld [vmem:[%s9053_s27 + $0x36c] sm:$0xf]  ;;  %v4615_v23 = vld [vmem:[%s9053_s27 + $0x378] sm:$0xf0] }
  0xbe   :  { %1672 = vmatpush.bf16.msra.mxu3 %v4886_v38  ;;  %v4807_v38 = vld [vmem:[%s9053_s27 + $0x4f8] sm:$0xf0]  ;;  %v4618_v29 = vor.u32 %v5737_v22, %v4615_v23  ;;  %v5789_v20 = vld [vmem:[%s9053_s27 + $0x50c] sm:$0xf]  ;;  %v5025_v23 = vld [vmem:[%s9034_s3 + $0x70] sm:$0xf] }
  0xbf   :  { %1713 = vmatpush.bf16.msra.mxu0 %v4394_v45  ;;  %v4186_v45 = vor.u32 %v5629_v33, %v4183_v34  ;;  %v4810_v48 = vor.u32 %v5785_v35, %v4807_v38  ;;  %v5733_v33 = vld [vmem:[%s9053_s27 + $0x34c] sm:$0xf]  ;;  %v4599_v34 = vld [vmem:[%s9053_s27 + $0x358] sm:$0xf0]  ;;  %v7557_v35 = vld [vmem:[#allocation2] sm:$0xf] }
  0xc0   :  { %1659 = vmatpush.bf16.msra.mxu1 %v4742_v47  ;;  %v4311_v47 = vld [vmem:[%s9053_s27 + $0x118] sm:$0xf0]  ;;  %v4602_v44 = vor.u32 %v5733_v33, %v4599_v34  ;;  %v5837_v33 = vld [vmem:[%s9034_s3 + $0x64] sm:$0xf0] }
  0xc1   :  { %1700 = vmatpush.bf16.msrb.mxu2 %v4250_v46  ;;  %v5661_v46 = vld [vmem:[%s9053_s27 + $0x10c] sm:$0xf] }
  0xc2   :  { %1673 = vmatpush.bf16.msra.mxu3 %v4870_v52  ;;  %4957 = vmatmul.msk.bf16.vlgmr.msrb.gmra.mxu0 %vm1399_vm0, %v6749_v50  ;;  %v4935_v52 = vld [vmem:[%s9053_s27 + $0x5f8] sm:$0xf0] }
  0xc3   :  { %1714 = vmatpush.bf16.msra.mxu0 %v4378_v61  ;;  %v4314_v61 = vor.u32 %v5661_v46, %v4311_v47  ;;  %v4938_v0 = vor.u32 %v5817_v51, %v4935_v52  ;;  %v5697_v46 = vld [vmem:[%s9053_s27 + $0x22c] sm:$0xf]  ;;  %v4455_v47 = vld [vmem:[%s9053_s27 + $0x238] sm:$0xf0]  ;;  %v376_v51 = vperm.slane %v7557_v35, 0 }
  0xc4   :  { %1660 = vmatpush.bf16.msra.mxu1 %v4726_v63  ;;  %v4647_v63 = vld [vmem:[%s9053_s27 + $0x3b8] sm:$0xf0]  ;;  %v4458_v57 = vor.u32 %v5697_v46, %v4455_v47  ;;  %v5833_v46 = vld [vmem:[%s9034_s3 + $0x44] sm:$0xf0] }
  0xc5   :  { %1701 = vmatpush.bf16.msrb.mxu2 %v4234_v62  ;;  %v5745_v62 = vld [vmem:[%s9053_s27 + $0x3ac] sm:$0xf] }
  0xc6   :  { %1674 = vmatpush.bf16.msra.mxu3 %v4854_v3  ;;  %v5813_v3 = vld [vmem:[%s9053_s27 + $0x5cc] sm:$0xf]  ;;  %v4650_v6 = vor.u32 %v5745_v62, %v4647_v63 }
  0xc7   :  { %1715 = vmatpush.bf16.msra.mxu0 %v4362_v10  ;;  %v4503_v10 = vld [vmem:[%s9053_s27 + $0x298] sm:$0xf0] }
  0xc8   :  { %1661 = vmatpush.bf16.msra.mxu1 %v4710_v13  ;;  %v4922_v13 = vor.u32 %v5813_v3, %v4919_v4  ;;  %v4506_v15 = vor.u32 %v5709_v9, %v4503_v10  ;;  %v4567_v4 = vld [vmem:[%s9053_s27 + $0x318] sm:$0xf0]  ;;  %v4858_v9 = vor.u32 %v5797_v53, %v4855_v58  ;;  %v4993_v53 = vld [vmem:[%s9034_s3 + $0x30] sm:$0xf] }
  0xc9   :  { %1702 = vmatpush.bf16.msrb.mxu2 %v4218_v12  ;;  %v4631_v12 = vld [vmem:[%s9053_s27 + $0x398] sm:$0xf0] }
  0xca   :  { %1675 = vmatpush.bf16.msra.mxu3 %v4838_v17  ;;  %v4903_v17 = vld [vmem:[%s9053_s27 + $0x5b8] sm:$0xf0] }
  0xcb   :  { %1716 = vmatpush.bf16.msra.mxu0 %v4346_v24  ;;  %v4906_v24 = vor.u32 %v5809_v16, %v4903_v17  ;;  %v4695_v16 = vld [vmem:[%s9053_s27 + $0x418] sm:$0xf0] }
  0xcc   :  { %1662 = vmatpush.bf16.msra.mxu1 %v4694_v28  ;;  %v5769_v28 = vld [vmem:[%s9053_s27 + $0x46c] sm:$0xf] }
  0xcd   :  { %1703 = vmatpush.bf16.msrb.mxu2 %v4202_v27  ;;  %v5805_v27 = vld [vmem:[%s9053_s27 + $0x58c] sm:$0xf]  ;;  %v4746_v38 = vor.u32 %v5769_v28, %v4743_v30 }
  0xce   :  { %1676 = vmatpush.bf16.msra.mxu3 %v4822_v31  ;;  %v5701_v31 = vld [vmem:[%s9053_s27 + $0x24c] sm:$0xf] }
  0xcf   :  { %1717 = vmatpush.bf16.msra.mxu0 %v4330_v41  ;;  %1663 = vmatmul.bf16.vlgmr.msra.gmra.mxu1 %v6846_v37  ;;  %v4871_v41 = vld [vmem:[%s9053_s27 + $0x578] sm:$0xf0]  ;;  %v1412_v62 = vpop.f32.mrf.mxu0 }
  0xd0   :  { %1725 = vmatpush.bf16.msrb.mxu1 %v4554_v32  ;;  %v4471_v32 = vld [vmem:[%s9053_s27 + $0x258] sm:$0xf0]  ;;  %v4874_v52 = vor.u32 %v5801_v40, %v4871_v41  ;;  %v1413_v18 = vadd.f32 %v1412_v62, %v376_v51 }
  0xd1   :  { %1677 = vmatmul.bf16.vlgmr.msra.gmra.mxu3 %v6857_v42  ;;  %1704 = vmatpush.bf16.msrb.mxu2 %v4186_v45  ;;  %v4474_v39 = vor.u32 %v5701_v31, %v4471_v32  ;;  %v4727_v45 = vld [vmem:[%s9053_s27 + $0x458] sm:$0xf0]  ;;  %v5017_v32 = vld [vmem:[%s9034_s3 + $0x60] sm:$0xf] }
  0xd2   :  { %1739 = vmatpush.bf16.msrb.mxu3 %v4682_v36  ;;  %v1426_v3 = vpop.f32.mrf.mxu1 }
  0xd3   :  { %1718 = vmatpush.bf16.msra.mxu0 %v4314_v61  ;;  %v4711_v61 = vld [vmem:[%s9053_s27 + $0x438] sm:$0xf0]  ;;  %v1440_v7 = vpop.f32.mrf.mxu2  ;;  %v1427_v22 = vadd.f32 %v1426_v3, %v1413_v18 }
  0xd4   :  { %1726 = vmatpush.bf16.msrb.mxu1 %v4538_v49  ;;  %1705 = vmatmul.bf16.vlgmr.msrb.gmra.mxu2 %v6622_v55  ;;  %v4634_v55 = vor.u32 %v5741_v11, %v4631_v12  ;;  %v4583_v49 = vld [vmem:[%s9053_s27 + $0x338] sm:$0xf0]  ;;  %v4714_v10 = vor.u32 %v5761_v59, %v4711_v61  ;;  %v5793_v12 = vld [vmem:[%s9053_s27 + $0x52c] sm:$0xf]  ;;  %v1454_v28 = vpop.f32.mrf.mxu3 }
  0xd5   :  { %1753 = vmatpush.bf16.msra.mxu2 %v4810_v48  ;;  %v5729_v48 = vld [vmem:[%s9053_s27 + $0x32c] sm:$0xf]  ;;  %v1441_v30 = vadd.f32 %v1440_v7, %v1427_v22  ;;  %v5825_v22 = vld [vmem:[%s9034_s3 + $0x4] sm:$0xf0] }
  0xd6   :  { %1740 = vmatpush.bf16.msrb.mxu3 %v4666_v56  ;;  %1719 = vmatmul.bf16.vlgmr.msra.gmra.mxu0 %v6658_v8  ;;  %v4887_v8 = vld [vmem:[%s9053_s27 + $0x598] sm:$0xf0]  ;;  %v4730_v56 = vor.u32 %v5765_v43, %v4727_v45  ;;  %v4586_v63 = vor.u32 %v5729_v48, %v4583_v49 }
  0xd7   :  { %1767 = vmatpush.bf16.msrb.mxu0 %v4938_v0  ;;  %v4890_v36 = vor.u32 %v5805_v27, %v4887_v8  ;;  %v5693_v0 = vld [vmem:[%s9053_s27 + $0x20c] sm:$0xf] }
  0xd8   :  { %1727 = vmatpush.bf16.msrb.mxu1 %v4522_v2  ;;  %v5725_v2 = vld [vmem:[%s9053_s27 + $0x30c] sm:$0xf] }
  0xd9   :  { %1754 = vmatpush.bf16.msra.mxu2 %v4794_v1  ;;  %v4439_v1 = vld [vmem:[%s9053_s27 + $0x218] sm:$0xf0] }
  0xda   :  { %1741 = vmatpush.bf16.msrb.mxu3 %v4650_v6  ;;  %v4951_v6 = vld [vmem:[%s9053_s27 + $0x618] sm:$0xf0]  ;;  %v4442_v11 = vor.u32 %v5693_v0, %v4439_v1  ;;  %v1428_v8 = vpop.f32.mrf.mxu1  ;;  %v4985_v1 = vld [vmem:[%s9034_s3 + $0x20] sm:$0xf] }
  0xdb   :  { %1768 = vmatpush.bf16.msrb.mxu0 %v4922_v13  ;;  %v4839_v13 = vld [vmem:[%s9053_s27 + $0x538] sm:$0xf0]  ;;  %v4954_v17 = vor.u32 %v5821_v5, %v4951_v6 }
  0xdc   :  { %1728 = vmatpush.bf16.msrb.mxu1 %v4506_v15  ;;  %v5757_v15 = vld [vmem:[%s9053_s27 + $0x40c] sm:$0xf]  ;;  %v1456_v47 = vpop.f32.mrf.mxu3 }
  0xdd   :  { %1755 = vmatpush.bf16.msra.mxu2 %v4778_v14  ;;  %v4570_v14 = vor.u32 %v5725_v2, %v4567_v4  ;;  %v4698_v19 = vor.u32 %v5757_v15, %v4695_v16 }
  0xde   :  { %1742 = vmatpush.bf16.msrb.mxu3 %v4634_v55  ;;  %v4842_v55 = vor.u32 %v5793_v12, %v4839_v13  ;;  %v5827_v12 = vld [vmem:[%s9034_s3 + $0x14] sm:$0xf0] }
  0xdf   :  { %1769 = vmatpush.bf16.msrb.mxu0 %v4906_v24  ;;  %v5839_v24 = vld [vmem:[%s9034_s3 + $0x74] sm:$0xf0] }
  0xe0   :  { %1729 = vmatpush.bf16.msrb.mxu1 %v4490_v26  ;;  %v4826_v26 = vor.u32 %v5789_v20, %v4823_v21  ;;  %v5026_v27 = vor.u32 %v5839_v24, %v5025_v23  ;;  %v4969_v21 = vld [vmem:[%s9034_s3] sm:$0xf] }
  0xe1   :  { %1756 = vmatpush.bf16.msra.mxu2 %v4762_v25  ;;  %v1414_v25 = vpop.f32.mrf.mxu0  ;;  %v4970_v24 = vor.u32 %v5825_v22, %v4969_v21 }
  0xe2   :  { %1743 = vmatpush.bf16.msrb.mxu3 %v4618_v29  ;;  %v1442_v29 = vpop.f32.mrf.mxu2  ;;  %v1415_v31 = vadd.f32 %v1414_v25, %v376_v51  ;;  %v5838_v25 = vld [vmem:[%s9034_s3 + $0x74] sm:$0xf] }
  0xe3   :  { %1770 = vmatpush.bf16.msrb.mxu0 %v4890_v36  ;;  %v5009_v36 = vld [vmem:[%s9034_s3 + $0x50] sm:$0xf] }
  0xe4   :  { %1730 = vmatpush.bf16.msrb.mxu1 %v4474_v39  ;;  %v1429_v34 = vadd.f32 %v1428_v8, %v1415_v31 }
  0xe5   :  { %1757 = vmatpush.bf16.msra.mxu2 %v4746_v38  ;;  %v5835_v38 = vld [vmem:[%s9034_s3 + $0x54] sm:$0xf0] }
  0xe6   :  { %1744 = vmatpush.bf16.msrb.mxu3 %v4602_v44  ;;  %v5010_v40 = vor.u32 %v5835_v38, %v5009_v36  ;;  %v1443_v44 = vadd.f32 %v1442_v29, %v1429_v34  ;;  %v5019_v34 = vld [vmem:[%s9034_s3 + $0x68] sm:$0xf0] }
  0xe7   :  { %1771 = vmatpush.bf16.msrb.mxu0 %v4874_v52 }
  0xe8   :  { %1731 = vmatpush.bf16.msrb.mxu1 %v4458_v57  ;;  %v1457_v51 = vadd.f32 %v1456_v47, %v1443_v44  ;;  %v5831_v57 = vld [vmem:[%s9034_s3 + $0x34] sm:$0xf0]  ;;  %v5011_v47 = vld [vmem:[%s9034_s3 + $0x58] sm:$0xf0] }
  0xe9   :  { %1758 = vmatpush.bf16.msra.mxu2 %v4730_v56  ;;  %v4994_v62 = vor.u32 %v5831_v57, %v4993_v53 }
  0xea   :  { %1745 = vmatpush.bf16.msrb.mxu3 %v4586_v63 }
  0xeb   :  { %1772 = vmatpush.bf16.msrb.mxu0 %v4858_v9  ;;  %v1468_v39 = vpop.f32.mrf.mxu0 }
  0xec   :  { %1732 = vmatpush.bf16.msrb.mxu1 %v4442_v11  ;;  %v1482_v43 = vpop.f32.mrf.mxu1  ;;  %v4977_v11 = vld [vmem:[%s9034_s3 + $0x10] sm:$0xf] }
  0xed   :  { %1759 = vmatpush.bf16.msra.mxu2 %v4714_v10  ;;  %v4978_v15 = vor.u32 %v5827_v12, %v4977_v11 }
  0xee   :  { %1746 = vmatpush.bf16.msrb.mxu3 %v4570_v14 }
  0xef   :  { %1773 = vmatpush.bf16.msrb.mxu0 %v4842_v55  ;;  %1733 = vmatmul.bf16.vlgmr.msrb.gmra.mxu1 %v6620_v54  ;;  %v5018_v54 = vor.u32 %v5837_v33, %v5017_v32  ;;  %v377_v55 = vperm.slane %v7557_v35, 1 }
  0xf0   :  { %1788 = vmatpush.bf16.msra.mxu1 %v4954_v17 }
  0xf1   :  { %1747 = vmatmul.bf16.vlgmr.msrb.gmra.mxu3 %v6633_v60  ;;  %1760 = vmatpush.bf16.msra.mxu2 %v4698_v19  ;;  %v1455_v60 = vadd.f32 %v1454_v28, %v1441_v30 }
  0xf2   :  { %2541 = vmatpush.bf16.msra.mxu3 %v5026_v27 }
  0xf3   :  { %1774 = vmatpush.bf16.msrb.mxu0 %v4826_v26  ;;  %v1469_v41 = vadd.f32 %v1468_v39, %v1455_v60  ;;  %v1470_v56 = vpop.f32.mrf.mxu0  ;;  %v5027_v26 = vld [vmem:[%s9034_s3 + $0x78] sm:$0xf0]  ;;  %v5836_v60 = vld [vmem:[%s9034_s3 + $0x64] sm:$0xf] }
  0xf4   :  { %1761 = vmatmul.bf16.vlgmr.msra.gmra.mxu2 %v6846_v37  ;;  %v1496_v37 = vpop.f32.mrf.mxu2  ;;  %v1471_v59 = vadd.f32 %v1470_v56, %v1457_v51  ;;  %v1484_v61 = vpop.f32.mrf.mxu1  ;;  %v5030_v29 = vor.u32 %v5838_v25, %v5027_v26 }
  0xf5   :  { %v1483_v45 = vadd.f32 %v1482_v43, %v1469_v41  ;;  %v1510_v14 = vpop.f32.mrf.mxu3 }
  0xf6   :  { %2542 = vmatpush.bf16.msra.mxu3 %v5018_v54  ;;  %1775 = vmatmul.bf16.vlgmr.msrb.gmra.mxu0 %v6857_v42  ;;  %v5001_v42 = vld [vmem:[%s9034_s3 + $0x40] sm:$0xf]  ;;  %v1485_v0 = vadd.f32 %v1484_v61, %v1471_v59  ;;  %v1511_v31 = vadd.f32 %v1510_v14, %v377_v55 }
  0xf7   :  { %v5002_v48 = vor.u32 %v5833_v46, %v5001_v42  ;;  %v7660_v49 = vadd.f32 %v1496_v37, %v1483_v45  ;;  %v5834_v46 = vld [vmem:[%s9034_s3 + $0x54] sm:$0xf] }
  0xf8   :  { %v5014_v57 = vor.u32 %v5834_v46, %v5011_v47  ;;  %v5849_v46 = vld [vmem:[%s9034_s3 + $0xc4] sm:$0xf0] }
  0xf9   :  { %v7663_v52 = vmul.f32 0.70710677, %v7660_v49 }
  0xfa   :  { %2543 = vmatpush.bf16.msra.mxu3 %v5010_v40  ;;  %v5022_v40 = vor.u32 %v5836_v60, %v5019_v34 }
  0xfb   :  { %v1811_v58 = vmul.f32 %v7663_v52, %v7663_v52 }
  0xfc   :  { %v1498_v2 = vpop.f32.mrf.mxu2 }
  0xfd   :  { %v7675_v63 = vmin.f32 %v1811_v58, 16.0  ;;  %v7685_v6 = vadd.f32 %v1498_v2, %v1485_v0  ;;  %v1512_v37 = vpop.f32.mrf.mxu3  ;;  %v5855_v2 = vld [vmem:[%s9034_s3 + $0xf4] sm:$0xf0] }
  0xfe   :  { %2544 = vmatpush.bf16.msra.mxu3 %v5002_v48  ;;  %v1513_v0 = vadd.f32 %v1512_v37, %v377_v55  ;;  %v5830_v55 = vld [vmem:[%s9034_s3 + $0x34] sm:$0xf] }
  0xff   :  { %4958 = vmatmul.msk.bf16.vlgmr.msra.gmra.mxu1 %vm1399_vm0, %v6749_v50  ;;  %v5829_v50 = vld [vmem:[%s9034_s3 + $0x24] sm:$0xf0]  ;;  %v1813_v4 = vmul.f32 2.1237322e-06, %v7675_v63  ;;  %v1824_v5 = vmul.f32 3.8918573e-05, %v7675_v63 }
 0x100   :  { %v4986_v3 = vor.u32 %v5829_v50, %v4985_v1  ;;  %v7688_v10 = vmul.f32 0.70710677, %v7685_v6  ;;  %v5089_v50 = vld [vmem:[%s9034_s3 + $0xf0] sm:$0xf] }
 0x101   :  { %v1814_v7 = vadd.f32 0.00028619796, %v1813_v4  ;;  %v1825_v9 = vadd.f32 0.001143296, %v1824_v5  ;;  %v5832_v5 = vld [vmem:[%s9034_s3 + $0x44] sm:$0xf]  ;;  %v5090_v11 = vor.u32 %v5855_v2, %v5089_v50 }
 0x102   :  { %2545 = vmatpush.bf16.msra.mxu3 %v4994_v62  ;;  %v1971_v17 = vmul.f32 %v7688_v10, %v7688_v10 }
 0x103   :  { %v1826_v13 = vmul.f32 %v1825_v9, %v7675_v63  ;;  %v1815_v16 = vmul.f32 %v1814_v7, %v7675_v63  ;;  %v5003_v7 = vld [vmem:[%s9034_s3 + $0x48] sm:$0xf0]  ;;  %2555 = vmatpush.bf16.msrb.mxu1 %v5090_v11 }
 0x104   :  { %v7701_v19 = vmin.f32 %v1971_v17, 16.0  ;;  %v1524_v20 = vpop.f32.mrf.mxu2  ;;  %v5006_v12 = vor.u32 %v5832_v5, %v5003_v7  ;;  %v5081_v17 = vld [vmem:[%s9034_s3 + $0xe0] sm:$0xf]  ;;  %v5057_v5 = vld [vmem:[%s9034_s3 + $0xb0] sm:$0xf] }
 0x105   :  { %v1827_v18 = vadd.f32 0.014752088, %v1826_v13  ;;  %v1816_v27 = vadd.f32 0.0036580483, %v1815_v16  ;;  %v1525_v43 = vadd.f32 %v1524_v20, %v1511_v31  ;;  %v5847_v7 = vld [vmem:[%s9034_s3 + $0xb4] sm:$0xf0] }
 0x106   :  { %2546 = vmatpush.bf16.msra.mxu3 %v4986_v3  ;;  %v1973_v8 = vmul.f32 2.1237322e-06, %v7701_v19  ;;  %v1984_v28 = vmul.f32 3.8918573e-05, %v7701_v19 }
 0x107   :  { %v1828_v23 = vmul.f32 %v1827_v18, %v7675_v63  ;;  %v1817_v36 = vmul.f32 %v1816_v27, %v7675_v63  ;;  %v5853_v18 = vld [vmem:[%s9034_s3 + $0xe4] sm:$0xf0] }
 0x108   :  { %v1974_v32 = vadd.f32 0.00028619796, %v1973_v8  ;;  %v1985_v33 = vadd.f32 0.001143296, %v1984_v28 }
 0x109   :  { %v1829_v30 = vadd.f32 0.112945676, %v1828_v23  ;;  %v1818_v48 = vadd.f32 0.05243302, %v1817_v36  ;;  %v5082_v23 = vor.u32 %v5853_v18, %v5081_v17  ;;  %v5828_v36 = vld [vmem:[%s9034_s3 + $0x24] sm:$0xf] }
 0x10a   :  { %2547 = vmatpush.bf16.msra.mxu3 %v4978_v15  ;;  %v1975_v38 = vmul.f32 %v1974_v32, %v7701_v19  ;;  %v1986_v39 = vmul.f32 %v1985_v33, %v7701_v19  ;;  %v5073_v32 = vld [vmem:[%s9034_s3 + $0xd0] sm:$0xf]  ;;  %v5851_v33 = vld [vmem:[%s9034_s3 + $0xd4] sm:$0xf0] }
 0x10b   :  { %v1830_v54 = vmul.f32 %v1829_v30, %v7675_v63  ;;  %v1538_v53 = vpop.f32.mrf.mxu0  ;;  %v1819_v3 = vmul.f32 %v1818_v48, %v7675_v63  ;;  %2556 = vmatpush.bf16.msrb.mxu1 %v5082_v23  ;;  %v5049_v23 = vld [vmem:[%s9034_s3 + $0xa0] sm:$0xf] }
 0x10c   :  { %v1976_v44 = vadd.f32 0.0036580483, %v1975_v38  ;;  %v1987_v45 = vadd.f32 0.014752088, %v1986_v39  ;;  %v1526_v56 = vpop.f32.mrf.mxu2  ;;  %v1539_v59 = vadd.f32 %v1538_v53, %v1525_v43  ;;  %v1552_v1 = vpop.f32.mrf.mxu1  ;;  %v4987_v38 = vld [vmem:[%s9034_s3 + $0x28] sm:$0xf0]  ;;  %v5074_v43 = vor.u32 %v5851_v33, %v5073_v32 }
 0x10d   :  { %v1831_v41 = vadd.f32 0.4994258, %v1830_v54  ;;  %v1527_v15 = vadd.f32 %v1526_v56, %v1513_v0  ;;  %v1820_v20 = vadd.f32 0.18741608, %v1819_v3 }
 0x10e   :  { %2548 = vmatpush.bf16.msra.mxu3 %v4970_v24  ;;  %v1988_v51 = vmul.f32 %v1987_v45, %v7701_v19  ;;  %v1977_v61 = vmul.f32 %v1976_v44, %v7701_v19  ;;  %v1553_v9 = vadd.f32 %v1552_v1, %v1539_v59  ;;  %v4995_v24 = vld [vmem:[%s9034_s3 + $0x38] sm:$0xf0]  ;;  %v4990_v44 = vor.u32 %v5828_v36, %v4987_v38 }
 0x10f   :  { %v1832_v42 = vmul.f32 %v1831_v41, %v7675_v63  ;;  %v4998_v27 = vor.u32 %v5830_v55, %v4995_v24  ;;  %v1821_v54 = vmul.f32 %v1820_v20, %v7675_v63  ;;  %2557 = vmatpush.bf16.msrb.mxu1 %v5074_v43  ;;  %v4979_v59 = vld [vmem:[%s9034_s3 + $0x18] sm:$0xf0]  ;;  %v5845_v24 = vld [vmem:[%s9034_s3 + $0xa4] sm:$0xf0] }
 0x110   :  { %v1989_v62 = vadd.f32 0.112945676, %v1988_v51  ;;  %v1978_v13 = vadd.f32 0.05243302, %v1977_v61 }
 0x111   :  { %v7736_v58 = vadd.f32 1.0, %v1832_v42  ;;  %v5065_v42 = vld [vmem:[%s9034_s3 + $0xc0] sm:$0xf]  ;;  %v1822_v47 = vadd.f32 1.1283791, %v1821_v54 }
 0x112   :  { %2597 = vmatpush.bf16.msrb.mxu3 %v5030_v29  ;;  %v1990_v4 = vmul.f32 %v1989_v62, %v7701_v19  ;;  %v1979_v28 = vmul.f32 %v1978_v13, %v7701_v19  ;;  %v5066_v56 = vor.u32 %v5849_v46, %v5065_v42  ;;  %v5824_v13 = vld [vmem:[%s9034_s3 + $0x4] sm:$0xf] }
 0x113   :  { %5999 = vrcp.f32 %v7736_v58  ;;  %v1540_v22 = vpop.f32.mrf.mxu0  ;;  %v1843_v39 = vand.u32 2147483647, %v7736_v58  ;;  %vm1839_vm2 = vweird.f32 %v7736_v58 }
 0x114   :  { %v1991_v14 = vadd.f32 0.4994258, %v1990_v4  ;;  %v1566_v16 = vpop.f32.mrf.mxu3  ;;  %v1541_v31 = vadd.f32 %v1540_v22, %v1527_v15  ;;  %v1554_v34 = vpop.f32.mrf.mxu1  ;;  %v1980_v63 = vadd.f32 0.18741608, %v1979_v28  ;;  %2558 = vmatpush.bf16.msrb.mxu1 %v5066_v56  ;;  %v5854_v56 = vld [vmem:[%s9034_s3 + $0xf4] sm:$0xf] }
 0x115   :  { %v1567_v26 = vadd.f32 %v1566_v16, %v1553_v9  ;;  %vm1844_vm4 = vcmp.eq.f32.partialorder %v1843_v39, 8.507059e+37  ;;  %v1823_v9 = vmul.f32 %v1822_v47, %v7663_v52  ;;  %v5033_v47 = vld [vmem:[%s9034_s3 + $0x80] sm:$0xf] }
 0x116   :  { %2598 = vmatpush.bf16.msrb.mxu3 %v5022_v40  ;;  %v1992_v21 = vmul.f32 %v1991_v14, %v7701_v19  ;;  %v1845_v40 = vand.u32 2147483648, %v7736_v58  ;;  %v1555_v45 = vadd.f32 %v1554_v34, %v1541_v31  ;;  %v1981_v50 = vmul.f32 %v1980_v63, %v7701_v19  ;;  %v4971_v14 = vld [vmem:[%s9034_s3 + $0x8] sm:$0xf0] }
 0x117   :  { %v1580_v30 = vpop.f32.mrf.mxu2  ;;  %v5058_v19 = vor.u32 %v5847_v7, %v5057_v5  ;;  %v4974_v16 = vor.u32 %v5824_v13, %v4971_v14  ;;  %v5083_v14 = vld [vmem:[%s9034_s3 + $0xe8] sm:$0xf0] }
 0x118   :  { %v7769_v29 = vadd.f32 1.0, %v1992_v21  ;;  %v1581_v41 = vadd.f32 %v1580_v30, %v1567_v26  ;;  %v1846_v61 = vor.u32 1.1754944e-38, %v1845_v40  ;;  %v1982_v18 = vadd.f32 1.1283791, %v1981_v50  ;;  %v5843_v40 = vld [vmem:[%s9034_s3 + $0x94] sm:$0xf0] }
 0x119   :  { %v6000_v25 = vpop.eup %5999  ;;  %2559 = vmatpush.bf16.msrb.mxu1 %v5058_v19  ;;  %v5091_v50 = vld [vmem:[%s9034_s3 + $0xf8] sm:$0xf0] }
 0x11a   :  { %2599 = vmatpush.bf16.msrb.mxu3 %v5014_v57  ;;  %v1835_v8 = vmul.f32 %v6000_v25, %v7736_v58  ;;  %6001 = vrcp.f32 %v7769_v29  ;;  %vm1840_vm1 = vweird.f32 %v6000_v25  ;;  %v5826_v57 = vld [vmem:[%s9034_s3 + $0x14] sm:$0xf]  ;;  %v2005_v52 = vand.u32 2147483648, %v7769_v29 }
 0x11b   :  { %v1594_v53 = vpop.f32.mrf.mxu0  ;;  %vm1841_vm3 = vmor %vm1839_vm2, %vm1840_vm1  ;;  %v4982_v0 = vor.u32 %v5826_v57, %v4979_v59  ;;  %v2003_v21 = vand.u32 2147483647, %v7769_v29  ;;  %vm1999_vm6 = vweird.f32 %v7769_v29  ;;  %v1983_v54 = vmul.f32 %v1982_v18, %v7688_v10 }
 0x11c   :  { %v1836_v60 = vsub.f32 1.0, %v1835_v8  ;;  %v1568_v51 = vpop.f32.mrf.mxu3  ;;  %v7801_v62 = vadd.f32 %v1594_v53, %v1581_v41  ;;  %v2006_v31 = vor.u32 1.1754944e-38, %v2005_v52  ;;  %v1799_v57 = vmul.f32 0.5, %v7685_v6 }
 0x11d   :  { %v1569_v4 = vadd.f32 %v1568_v51, %v1555_v45  ;;  %vm2004_vm8 = vcmp.eq.f32.partialorder %v2003_v21, 8.507059e+37  ;;  %v5094_v5 = vor.u32 %v5854_v56, %v5091_v50 }
 0x11e   :  { %2600 = vmatpush.bf16.msrb.mxu3 %v5006_v12  ;;  %v1837_v37 = vmul.f32 %v6000_v25, %v1836_v60  ;;  %v7813_v11 = vmul.f32 0.70710677, %v7801_v62 }
 0x11f   :  { %v1582_v12 = vpop.f32.mrf.mxu2 }
 0x120   :  { %v1838_v48 = vadd.f32 %v6000_v25, %v1837_v37  ;;  %v6002_v1 = vpop.eup %6001  ;;  %v1851_v55 = vmul.f32 %v7813_v11, %v7813_v11  ;;  %v1583_v22 = vadd.f32 %v1582_v12, %v1569_v4  ;;  %v1795_v37 = vmul.f32 0.5, %v7660_v49 }
 0x121   :  { %v1995_v3 = vmul.f32 %v6002_v1, %v7769_v29  ;;  %vm2000_vm5 = vweird.f32 %v6002_v1  ;;  %v5041_v29 = vld [vmem:[%s9034_s3 + $0x90] sm:$0xf] }
 0x122   :  { %2601 = vmatpush.bf16.msrb.mxu3 %v4998_v27  ;;  %v1842_v58 = vsel %vm1841_vm3, %v6000_v25, %v1838_v48  ;;  %v7831_v25 = vmin.f32 %v1851_v55, 16.0  ;;  %v5050_v27 = vor.u32 %v5845_v24, %v5049_v23  ;;  %vm2001_vm7 = vmor %vm1999_vm6, %vm2000_vm5  ;;  %v5042_v43 = vor.u32 %v5843_v40, %v5041_v29  ;;  %v5841_v48 = vld [vmem:[%s9034_s3 + $0x84] sm:$0xf0]  ;;  %v5075_v23 = vld [vmem:[%s9034_s3 + $0xd8] sm:$0xf0] }
 0x123   :  { %v1847_v2 = vsel %vm1844_vm4, %v1846_v61, %v1842_v58  ;;  %v1996_v15 = vsub.f32 1.0, %v1995_v3  ;;  %v1596_v26 = vpop.f32.mrf.mxu0  ;;  %v5034_v49 = vor.u32 %v5841_v48, %v5033_v47  ;;  %v5067_v29 = vld [vmem:[%s9034_s3 + $0xc8] sm:$0xf0] }
 0x124   :  { %v1848_v17 = vmul.f32 %v1847_v2, %v1823_v9  ;;  %v7834_v28 = vadd.f32 %v1596_v26, %v1583_v22  ;;  %v1853_v32 = vmul.f32 2.1237322e-06, %v7831_v25  ;;  %v1864_v33 = vmul.f32 3.8918573e-05, %v7831_v25  ;;  %2560 = vmatpush.bf16.msrb.mxu1 %v5050_v27  ;;  %v5852_v9 = vld [vmem:[%s9034_s3 + $0xe4] sm:$0xf] }
 0x125   :  { %v1997_v20 = vmul.f32 %v6002_v1, %v1996_v15  ;;  %v5850_v22 = vld [vmem:[%s9034_s3 + $0xd4] sm:$0xf] }
 0x126   :  { %2602 = vmatpush.bf16.msrb.mxu3 %v4990_v44  ;;  %v4959_v30 = vclamps-f32 %v1848_v17, 1.0  ;;  %v7840_v34 = vmul.f32 0.70710677, %v7834_v28  ;;  %v1854_v38 = vadd.f32 0.00028619796, %v1853_v32  ;;  %v5078_v27 = vor.u32 %v5850_v22, %v5075_v23 }
 0x127   :  { %v1998_v8 = vadd.f32 %v6002_v1, %v1997_v20  ;;  %v1865_v39 = vadd.f32 0.001143296, %v1864_v33 }
 0x128   :  { %v2011_v10 = vmul.f32 %v7840_v34, %v7840_v34  ;;  %v2131_v63 = vadd.f32 1.0, %v4959_v30  ;;  %v1855_v44 = vmul.f32 %v1854_v38, %v7831_v25  ;;  %2561 = vmatpush.bf16.msrb.mxu1 %v5042_v43 }
 0x129   :  { %v2002_v60 = vsel %vm2001_vm7, %v6002_v1, %v1998_v8  ;;  %v1866_v45 = vmul.f32 %v1865_v39, %v7831_v25 }
 0x12a   :  { %2603 = vmatpush.bf16.msrb.mxu3 %v4982_v0  ;;  %v2007_v36 = vsel %vm2004_vm8, %v2006_v31, %v2002_v60  ;;  %v7853_v46 = vmin.f32 %v2011_v10, 16.0  ;;  %v1856_v51 = vadd.f32 0.0036580483, %v1855_v44  ;;  %v2139_v1 = vmul.f32 %v2131_v63, %v1795_v37  ;;  %v5848_v60 = vld [vmem:[%s9034_s3 + $0xc4] sm:$0xf] }
 0x12b   :  { %v2008_v41 = vmul.f32 %v2007_v36, %v1983_v54  ;;  %v1867_v53 = vadd.f32 0.014752088, %v1866_v45  ;;  %v378_v54 = vperm.slane %v7557_v35, 2  ;;  %v5846_v37 = vld [vmem:[%s9034_s3 + $0xb4] sm:$0xf] }
 0x12c   :  { %v2013_v61 = vmul.f32 2.1237322e-06, %v7853_v46  ;;  %v2024_v0 = vmul.f32 3.8918573e-05, %v7853_v46  ;;  %2562 = vmatpush.bf16.msrb.mxu1 %v5034_v49  ;;  %v1857_v7 = vmul.f32 %v1856_v51, %v7831_v25  ;;  %v1608_v21 = vpop.f32.mrf.mxu1  ;;  %v5059_v63 = vld [vmem:[%s9034_s3 + $0xb8] sm:$0xf0] }
 0x12d   :  { %v4963_v42 = vclamps-f32 %v2008_v41, 1.0  ;;  %v1868_v58 = vmul.f32 %v1867_v53, %v7831_v25  ;;  %v5070_v41 = vor.u32 %v5848_v60, %v5067_v29  ;;  %v1609_v43 = vadd.f32 %v1608_v21, %v378_v54 }
 0x12e   :  { %2604 = vmatpush.bf16.msrb.mxu3 %v4974_v16  ;;  %v2014_v3 = vadd.f32 0.00028619796, %v2013_v61  ;;  %v2025_v4 = vadd.f32 0.001143296, %v2024_v0  ;;  %v5086_v16 = vor.u32 %v5852_v9, %v5083_v14  ;;  %v1858_v52 = vadd.f32 0.05243302, %v1857_v7 }
 0x12f   :  { %v2135_v59 = vadd.f32 1.0, %v4963_v42  ;;  %v1869_v6 = vadd.f32 0.112945676, %v1868_v58  ;;  %v1636_v26 = vpop.f32.mrf.mxu0  ;;  %v5062_v44 = vor.u32 %v5846_v37, %v5059_v63  ;;  %v5871_v58 = vld [vmem:[%s9034_s3 + $0x174] sm:$0xf0] }
 0x130   :  { %v2015_v12 = vmul.f32 %v2014_v3, %v7853_v46  ;;  %v2026_v19 = vmul.f32 %v2025_v4, %v7853_v46  ;;  %2611 = vmatpush.bf16.msra.mxu1 %v5094_v5  ;;  %v1859_v31 = vmul.f32 %v1858_v52, %v7831_v25 }
 0x131   :  { %v2143_v2 = vmul.f32 %v2135_v59, %v1799_v57  ;;  %v1870_v15 = vmul.f32 %v1869_v6, %v7831_v25  ;;  %v5844_v57 = vld [vmem:[%s9034_s3 + $0xa4] sm:$0xf]  ;;  %v5051_v59 = vld [vmem:[%s9034_s3 + $0xa8] sm:$0xf0] }
 0x132   :  { %v2016_v17 = vadd.f32 0.0036580483, %v2015_v12  ;;  %v2027_v18 = vadd.f32 0.014752088, %v2026_v19  ;;  %v1860_v40 = vadd.f32 0.18741608, %v1859_v31 }
 0x133   :  { %v2147_v13 = vpack.c.bf16 %v2143_v2, %v2139_v1  ;;  %v1871_v55 = vadd.f32 0.4994258, %v1870_v15  ;;  %v5054_v1 = vor.u32 %v5844_v57, %v5051_v59  ;;  %v5842_v12 = vld [vmem:[%s9034_s3 + $0x94] sm:$0xf]  ;;  %v5043_v19 = vld [vmem:[%s9034_s3 + $0x98] sm:$0xf0] }
 0x134   :  { %v2028_v20 = vmul.f32 %v2027_v18, %v7853_v46  ;;  %2612 = vmatpush.bf16.msra.mxu1 %v5086_v16  ;;  %v2017_v8 = vmul.f32 %v2016_v17, %v7853_v46  ;;  %v1622_v39 = vpop.f32.mrf.mxu3  ;;  %v1610_v47 = vpop.f32.mrf.mxu1  ;;  %v1861_v51 = vmul.f32 %v1860_v40, %v7831_v25  ;;  %v5046_v14 = vor.u32 %v5842_v12, %v5043_v19  ;;  %v5145_v15 = vld [vmem:[%s9034_s3 + $0x160] sm:$0xf]  ;;  %v5869_v16 = vld [vmem:[%s9034_s3 + $0x164] sm:$0xf0] }
 0x135   :  { %2549 = vmatmul.bf16.vlgmr.msra.gmra.mxu3 %v2147_v13  ;;  %v1872_v24 = vmul.f32 %v1871_v55, %v7831_v25  ;;  %v1623_v56 = vadd.f32 %v1622_v39, %v1609_v43  ;;  %v5153_v25 = vld [vmem:[%s9034_s3 + $0x170] sm:$0xf] }
 0x136   :  { %v2029_v30 = vadd.f32 0.112945676, %v2028_v20  ;;  %v2018_v36 = vadd.f32 0.05243302, %v2017_v8  ;;  %v1862_v50 = vadd.f32 1.1283791, %v1861_v51  ;;  %v5154_v3 = vor.u32 %v5871_v58, %v5153_v25 }
 0x137   :  { %v7891_v32 = vadd.f32 1.0, %v1872_v24  ;;  %v7913_v53 = vpop.f32.mrf.mxu0  ;;  %v1637_v7 = vadd.f32 %v1636_v26, %v1623_v56  ;;  %v1650_v6 = vpop.f32.mrf.mxu2  ;;  %v5146_v20 = vor.u32 %v5869_v16, %v5145_v15  ;;  %v5840_v8 = vld [vmem:[%s9034_s3 + $0x84] sm:$0xf]  ;;  %v5121_v58 = vld [vmem:[%s9034_s3 + $0x130] sm:$0xf] }
 0x138   :  { %v2030_v33 = vmul.f32 %v2029_v30, %v7853_v46  ;;  %2613 = vmatpush.bf16.msra.mxu1 %v5078_v27  ;;  %v2019_v45 = vmul.f32 %v2018_v36, %v7853_v46  ;;  %2569 = vmatpush.bf16.msrb.mxu2 %v5154_v3  ;;  %v1863_v24 = vmul.f32 %v1862_v50, %v7813_v11  ;;  %v5137_v11 = vld [vmem:[%s9034_s3 + $0x150] sm:$0xf]  ;;  %v5861_v15 = vld [vmem:[%s9034_s3 + $0x124] sm:$0xf0] }
 0x139   :  { %6003 = vrcp.f32 %v7891_v32  ;;  %v1885_v2 = vand.u32 2147483648, %v7891_v32  ;;  %v1883_v5 = vand.u32 2147483647, %v7891_v32  ;;  %vm1879_vm10 = vweird.f32 %v7891_v32 }
 0x13a   :  { %v2031_v38 = vadd.f32 0.4994258, %v2030_v33  ;;  %v2020_v0 = vadd.f32 0.18741608, %v2019_v45  ;;  %v1651_v27 = vadd.f32 %v1650_v6, %v1637_v7  ;;  %v5865_v45 = vld [vmem:[%s9034_s3 + $0x144] sm:$0xf0] }
 0x13b   :  { %v1886_v21 = vor.u32 1.1754944e-38, %v1885_v2  ;;  %vm1884_vm12 = vcmp.eq.f32.partialorder %v1883_v5, 8.507059e+37  ;;  %v1796_v7 = vmul.f32 0.5, %v7801_v62  ;;  %v1800_v6 = vmul.f32 0.5, %v7834_v28 }
 0x13c   :  { %v2032_v10 = vmul.f32 %v2031_v38, %v7853_v46  ;;  %2614 = vmatpush.bf16.msra.mxu1 %v5070_v41  ;;  %v1624_v9 = vpop.f32.mrf.mxu3  ;;  %v2021_v52 = vmul.f32 %v2020_v0, %v7853_v46  ;;  %v5035_v46 = vld [vmem:[%s9034_s3 + $0x88] sm:$0xf0]  ;;  %2570 = vmatpush.bf16.msrb.mxu2 %v5146_v20 }
 0x13d   :  { %v5038_v33 = vor.u32 %v5840_v8, %v5035_v46 }
 0x13e   :  { %v7910_v42 = vadd.f32 1.0, %v2032_v10  ;;  %v2022_v29 = vadd.f32 1.1283791, %v2021_v52 }
 0x13f   :  { %v6004_v48 = vpop.eup %6003  ;;  %v1692_v23 = vpop.f32.mrf.mxu0 }
 0x140   :  { %v1875_v49 = vmul.f32 %v6004_v48, %v7891_v32  ;;  %6005 = vrcp.f32 %v7910_v42  ;;  %2615 = vmatpush.bf16.msra.mxu1 %v5062_v44  ;;  %vm1880_vm9 = vweird.f32 %v6004_v48  ;;  %v2045_v36 = vand.u32 2147483648, %v7910_v42  ;;  %v5129_v44 = vld [vmem:[%s9034_s3 + $0x140] sm:$0xf]  ;;  %v1652_v51 = vpop.f32.mrf.mxu2 }
 0x141   :  { %vm1881_vm11 = vmor %vm1879_vm10, %vm1880_vm9  ;;  %v2043_v40 = vand.u32 2147483647, %v7910_v42  ;;  %vm2039_vm14 = vweird.f32 %v7910_v42 }
 0x142   :  { %v1876_v61 = vsub.f32 1.0, %v1875_v49  ;;  %v5130_v49 = vor.u32 %v5865_v45, %v5129_v44 }
 0x143   :  { %vm2044_vm1 = vcmp.eq.f32.partialorder %v2043_v40, 8.507059e+37  ;;  %v5155_v40 = vld [vmem:[%s9034_s3 + $0x178] sm:$0xf0] }
 0x144   :  { %v1877_v4 = vmul.f32 %v6004_v48, %v1876_v61  ;;  %2616 = vmatpush.bf16.msra.mxu1 %v5054_v1 }
 0x145   :  { %2605 = vmatmul.bf16.vlgmr.msrb.gmra.mxu3 %v2147_v13  ;;  %v1611_v13 = vadd.f32 %v1610_v47, %v378_v54  ;;  %v5867_v54 = vld [vmem:[%s9034_s3 + $0x154] sm:$0xf0] }
 0x146   :  { %v6006_v17 = vpop.eup %6005  ;;  %v1878_v18 = vadd.f32 %v6004_v48, %v1877_v4  ;;  %v5138_v38 = vor.u32 %v5867_v54, %v5137_v11  ;;  %v5097_v54 = vld [vmem:[%s9034_s3 + $0x100] sm:$0xf] }
 0x147   :  { %v2035_v22 = vmul.f32 %v6006_v17, %v7910_v42  ;;  %v1625_v32 = vadd.f32 %v1624_v9, %v1611_v13  ;;  %vm2040_vm13 = vweird.f32 %v6006_v17  ;;  %v2023_v42 = vmul.f32 %v2022_v29, %v7840_v34  ;;  %v1694_v1 = vpop.f32.mrf.mxu0  ;;  %v5863_v34 = vld [vmem:[%s9034_s3 + $0x134] sm:$0xf0]  ;;  %v5857_v29 = vld [vmem:[%s9034_s3 + $0x104] sm:$0xf0] }
 0x148   :  { %v1882_v26 = vsel %vm1881_vm11, %v6004_v48, %v1878_v18  ;;  %2617 = vmatpush.bf16.msra.mxu1 %v5046_v14  ;;  %2571 = vmatpush.bf16.msrb.mxu2 %v5138_v38  ;;  %vm2041_vm15 = vmor %vm2039_vm14, %vm2040_vm13  ;;  %v2046_v48 = vor.u32 1.1754944e-38, %v2045_v36  ;;  %v5122_v5 = vor.u32 %v5863_v34, %v5121_v58  ;;  %v5113_v14 = vld [vmem:[%s9034_s3 + $0x120] sm:$0xf]  ;;  %v5870_v36 = vld [vmem:[%s9034_s3 + $0x174] sm:$0xf] }
 0x149   :  { %v1887_v30 = vsel %vm1884_vm12, %v1886_v21, %v1882_v26  ;;  %v2036_v31 = vsub.f32 1.0, %v2035_v22  ;;  %v1639_v37 = vadd.f32 %v7913_v53, %v1625_v32  ;;  %v5859_v26 = vld [vmem:[%s9034_s3 + $0x114] sm:$0xf0]  ;;  %v379_v32 = vperm.slane %v7557_v35, 3 }
 0x14a   :  { %v1888_v60 = vmul.f32 %v1887_v30, %v1863_v24  ;;  %v5105_v24 = vld [vmem:[%s9034_s3 + $0x110] sm:$0xf] }
 0x14b   :  { %v2037_v39 = vmul.f32 %v6006_v17, %v2036_v31  ;;  %v1653_v61 = vadd.f32 %v1652_v51, %v1639_v37  ;;  %v5106_v30 = vor.u32 %v5859_v26, %v5105_v24  ;;  %v5158_v37 = vor.u32 %v5870_v36, %v5155_v40  ;;  %v5864_v24 = vld [vmem:[%s9034_s3 + $0x144] sm:$0xf]  ;;  %v5883_v36 = vld [vmem:[%s9034_s3 + $0x1d4] sm:$0xf0] }
 0x14c   :  { %v1664_v55 = vpop.f32.mrf.mxu1  ;;  %2618 = vmatpush.bf16.msra.mxu1 %v5038_v33  ;;  %v4960_v47 = vclamps-f32 %v1888_v60, 1.0  ;;  %2572 = vmatpush.bf16.msrb.mxu2 %v5130_v49 }
 0x14d   :  { %v1665_v41 = vadd.f32 %v1664_v55, %v1651_v27  ;;  %v2038_v43 = vadd.f32 %v6006_v17, %v2037_v39  ;;  %v5098_v39 = vor.u32 %v5857_v29, %v5097_v54  ;;  %v5201_v29 = vld [vmem:[%s9034_s3 + $0x1d0] sm:$0xf] }
 0x14e   :  { %v2132_v50 = vadd.f32 1.0, %v4960_v47  ;;  %v5202_v40 = vor.u32 %v5883_v36, %v5201_v29 }
 0x14f   :  { %v2042_v56 = vsel %vm2041_vm15, %v6006_v17, %v2038_v43  ;;  %v5114_v17 = vor.u32 %v5861_v15, %v5113_v14 }
 0x150   :  { %v2047_v57 = vsel %vm2044_vm1, %v2046_v48, %v2042_v56  ;;  %2573 = vmatpush.bf16.msrb.mxu2 %v5122_v5  ;;  %v2140_v16 = vmul.f32 %v2132_v50, %v1796_v7  ;;  %v5868_v48 = vld [vmem:[%s9034_s3 + $0x164] sm:$0xf]  ;;  %v5887_v5 = vld [vmem:[%s9034_s3 + $0x1f4] sm:$0xf0]  ;;  %v5866_v7 = vld [vmem:[%s9034_s3 + $0x154] sm:$0xf] }
 0x151   :  { %v2048_v25 = vmul.f32 %v2047_v57, %v2023_v42  ;;  %v5147_v42 = vld [vmem:[%s9034_s3 + $0x168] sm:$0xf0] }
 0x153   :  { %v4964_v2 = vclamps-f32 %v2048_v25, 1.0  ;;  %v1720_v46 = vpop.f32.mrf.mxu0 }
 0x154   :  { %v1678_v10 = vpop.f32.mrf.mxu3  ;;  %v1666_v59 = vpop.f32.mrf.mxu1  ;;  %2574 = vmatpush.bf16.msrb.mxu2 %v5114_v17 }
 0x155   :  { %v1679_v63 = vadd.f32 %v1678_v10, %v1665_v41  ;;  %v1667_v4 = vadd.f32 %v1666_v59, %v1653_v61  ;;  %v2136_v12 = vadd.f32 1.0, %v4964_v2  ;;  %v5150_v61 = vor.u32 %v5868_v48, %v5147_v42  ;;  %v5217_v2 = vld [vmem:[%s9034_s3 + $0x1f0] sm:$0xf]  ;;  %v5193_v42 = vld [vmem:[%s9034_s3 + $0x1c0] sm:$0xf] }
 0x157   :  { %v7971_v53 = vadd.f32 %v1692_v23, %v1679_v63  ;;  %v2144_v18 = vmul.f32 %v2136_v12, %v1800_v6  ;;  %v1706_v23 = vpop.f32.mrf.mxu2  ;;  %v5139_v6 = vld [vmem:[%s9034_s3 + $0x158] sm:$0xf0] }
 0x158   :  { %2575 = vmatpush.bf16.msrb.mxu2 %v5106_v30  ;;  %v1707_v43 = vadd.f32 %v1706_v23, %v379_v32  ;;  %v5142_v14 = vor.u32 %v5866_v7, %v5139_v6  ;;  %v5885_v23 = vld [vmem:[%s9034_s3 + $0x1e4] sm:$0xf0]  ;;  %v5185_v7 = vld [vmem:[%s9034_s3 + $0x1b0] sm:$0xf]  ;;  %v5879_v6 = vld [vmem:[%s9034_s3 + $0x1b4] sm:$0xf0] }
 0x159   :  { %v7974_v0 = vmul.f32 0.70710677, %v7971_v53  ;;  %v7998_v55 = vpack.c.bf16 %v2144_v18, %v2140_v16 }
 0x15a   :  { %v1721_v59 = vadd.f32 %v1720_v46, %v1707_v43  ;;  %v5131_v46 = vld [vmem:[%s9034_s3 + $0x148] sm:$0xf0] }
 0x15b   :  { %v1891_v3 = vmul.f32 %v7974_v0, %v7974_v0  ;;  %2563 = vmatmul.bf16.vlgmr.msrb.gmra.mxu1 %v7998_v55  ;;  %v1722_v58 = vpop.f32.mrf.mxu0 }
 0x15c   :  { %v1680_v9 = vpop.f32.mrf.mxu3  ;;  %2576 = vmatpush.bf16.msrb.mxu2 %v5098_v39 }
 0x15d   :  { %v7986_v19 = vmin.f32 %v1891_v3, 16.0  ;;  %v1681_v13 = vadd.f32 %v1680_v9, %v1667_v4 }
 0x15f   :  { %v1893_v62 = vmul.f32 2.1237322e-06, %v7986_v19  ;;  %v1904_v28 = vmul.f32 3.8918573e-05, %v7986_v19  ;;  %v7996_v52 = vadd.f32 %v1694_v1, %v1681_v13  ;;  %v1708_v25 = vpop.f32.mrf.mxu2  ;;  %v5218_v13 = vor.u32 %v5887_v5, %v5217_v2 }
 0x160   :  { %2625 = vmatpush.bf16.msra.mxu2 %v5158_v37 }
 0x161   :  { %v1894_v20 = vadd.f32 0.00028619796, %v1893_v62  ;;  %v1905_v21 = vadd.f32 0.001143296, %v1904_v28  ;;  %v8001_v22 = vmul.f32 0.70710677, %v7996_v52  ;;  %2583 = vmatpush.bf16.msra.mxu0 %v5218_v13 }
 0x163   :  { %v1895_v27 = vmul.f32 %v1894_v20, %v7986_v19  ;;  %v1906_v8 = vmul.f32 %v1905_v21, %v7986_v19  ;;  %v2051_v31 = vmul.f32 %v8001_v22, %v8001_v22  ;;  %v5209_v20 = vld [vmem:[%s9034_s3 + $0x1e0] sm:$0xf]  ;;  %v1709_v21 = vadd.f32 %v1708_v25, %v379_v32 }
 0x164   :  { %2626 = vmatpush.bf16.msra.mxu2 %v5150_v61  ;;  %v5134_v32 = vor.u32 %v5864_v24, %v5131_v46  ;;  %v5856_v46 = vld [vmem:[%s9034_s3 + $0x104] sm:$0xf] }
 0x165   :  { %v1896_v33 = vadd.f32 0.0036580483, %v1895_v27  ;;  %v1907_v11 = vadd.f32 0.014752088, %v1906_v8  ;;  %v8018_v60 = vmin.f32 %v2051_v31, 16.0  ;;  %v5210_v31 = vor.u32 %v5885_v23, %v5209_v20 }
 0x167   :  { %v1897_v38 = vmul.f32 %v1896_v33, %v7986_v19  ;;  %v1908_v35 = vmul.f32 %v1907_v11, %v7986_v19  ;;  %v2053_v41 = vmul.f32 2.1237322e-06, %v8018_v60  ;;  %v2064_v10 = vmul.f32 3.8918573e-05, %v8018_v60  ;;  %2584 = vmatpush.bf16.msra.mxu0 %v5210_v31 }
 0x168   :  { %2627 = vmatpush.bf16.msra.mxu2 %v5142_v14  ;;  %v1723_v11 = vadd.f32 %v1722_v58, %v1709_v21  ;;  %v5107_v14 = vld [vmem:[%s9034_s3 + $0x118] sm:$0xf0] }
 0x169   :  { %v1909_v63 = vadd.f32 0.112945676, %v1908_v35  ;;  %v2054_v44 = vadd.f32 0.00028619796, %v2053_v41  ;;  %v2065_v45 = vadd.f32 0.001143296, %v2064_v10 }
 0x16a   :  { %v1898_v51 = vadd.f32 0.05243302, %v1897_v38  ;;  %v5862_v38 = vld [vmem:[%s9034_s3 + $0x134] sm:$0xf]  ;;  %v5123_v41 = vld [vmem:[%s9034_s3 + $0x138] sm:$0xf0] }
 0x16b   :  { %v1910_v49 = vmul.f32 %v1909_v63, %v7986_v19  ;;  %v2055_v56 = vmul.f32 %v2054_v44, %v8018_v60  ;;  %v2066_v57 = vmul.f32 %v2065_v45, %v8018_v60  ;;  %2619 = vmatmul.bf16.vlgmr.msra.gmra.mxu1 %v7998_v55  ;;  %v5126_v44 = vor.u32 %v5862_v38, %v5123_v41 }
 0x16c   :  { %v1734_v47 = vpop.f32.mrf.mxu1  ;;  %v1899_v3 = vmul.f32 %v1898_v51, %v7986_v19  ;;  %2628 = vmatpush.bf16.msra.mxu2 %v5134_v32  ;;  %2585 = vmatpush.bf16.msra.mxu0 %v5202_v40 }
 0x16d   :  { %v1911_v1 = vadd.f32 0.4994258, %v1910_v49  ;;  %v2056_v50 = vadd.f32 0.0036580483, %v2055_v56  ;;  %v2067_v34 = vadd.f32 0.014752088, %v2066_v57  ;;  %v1735_v12 = vadd.f32 %v1734_v47, %v1721_v59 }
 0x16e   :  { %v1900_v26 = vadd.f32 0.18741608, %v1899_v3  ;;  %v5881_v56 = vld [vmem:[%s9034_s3 + $0x1c4] sm:$0xf0]  ;;  %v5860_v57 = vld [vmem:[%s9034_s3 + $0x124] sm:$0xf] }
 0x16f   :  { %v1912_v4 = vmul.f32 %v1911_v1, %v7986_v19  ;;  %v2068_v9 = vmul.f32 %v2067_v34, %v8018_v60  ;;  %v2057_v17 = vmul.f32 %v2056_v50, %v8018_v60  ;;  %v5115_v1 = vld [vmem:[%s9034_s3 + $0x128] sm:$0xf0] }
 0x170   :  { %v1901_v35 = vmul.f32 %v1900_v26, %v7986_v19  ;;  %2629 = vmatpush.bf16.msra.mxu2 %v5126_v44  ;;  %v5118_v5 = vor.u32 %v5860_v57, %v5115_v1  ;;  %v5873_v1 = vld [vmem:[%s9034_s3 + $0x184] sm:$0xf0] }
 0x171   :  { %v8057_v15 = vadd.f32 1.0, %v1912_v4  ;;  %v2069_v18 = vadd.f32 0.112945676, %v2068_v9  ;;  %v2058_v55 = vadd.f32 0.05243302, %v2057_v17  ;;  %v5194_v4 = vor.u32 %v5881_v56, %v5193_v42 }
 0x172   :  { %v1902_v59 = vadd.f32 1.1283791, %v1901_v35  ;;  %v5858_v9 = vld [vmem:[%s9034_s3 + $0x114] sm:$0xf]  ;;  %v5186_v17 = vor.u32 %v5879_v6, %v5185_v7 }
 0x173   :  { %6007 = vrcp.f32 %v8057_v15  ;;  %v2070_v27 = vmul.f32 %v2069_v18, %v8018_v60  ;;  %v1776_v54 = vpop.f32.mrf.mxu0  ;;  %v2059_v51 = vmul.f32 %v2058_v55, %v8018_v60  ;;  %v1923_v58 = vand.u32 2147483647, %v8057_v15  ;;  %2586 = vmatpush.bf16.msra.mxu0 %v5194_v4  ;;  %v5099_v55 = vld [vmem:[%s9034_s3 + $0x108] sm:$0xf0] }
 0x174   :  { %v1748_v16 = vpop.f32.mrf.mxu3  ;;  %v1736_v28 = vpop.f32.mrf.mxu1  ;;  %v1925_v50 = vand.u32 2147483648, %v8057_v15  ;;  %vm1919_vm3 = vweird.f32 %v8057_v15  ;;  %2630 = vmatpush.bf16.msra.mxu2 %v5118_v5  ;;  %v5110_v18 = vor.u32 %v5858_v9, %v5107_v14  ;;  %v1903_v23 = vmul.f32 %v1902_v59, %v7974_v0 }
 0x175   :  { %v1749_v62 = vadd.f32 %v1748_v16, %v1735_v12  ;;  %v2071_v33 = vadd.f32 0.4994258, %v2070_v27  ;;  %v1737_v43 = vadd.f32 %v1736_v28, %v1723_v11  ;;  %v2060_v12 = vadd.f32 0.18741608, %v2059_v51 }
 0x176   :  { %vm1924_vm5 = vcmp.eq.f32.partialorder %v1923_v58, 8.507059e+37  ;;  %v5102_v35 = vor.u32 %v5856_v46, %v5099_v55  ;;  %v5886_v58 = vld [vmem:[%s9034_s3 + $0x1f4] sm:$0xf] }
 0x177   :  { %v1762_v8 = vpop.f32.mrf.mxu2  ;;  %v2072_v39 = vmul.f32 %v2071_v33, %v8018_v60  ;;  %v2061_v31 = vmul.f32 %v2060_v12, %v8018_v60  ;;  %2587 = vmatpush.bf16.msra.mxu0 %v5186_v17  ;;  %v5882_v55 = vld [vmem:[%s9034_s3 + $0x1d4] sm:$0xf] }
 0x178   :  { %v1763_v30 = vadd.f32 %v1762_v8, %v1749_v62  ;;  %v1926_v62 = vor.u32 1.1754944e-38, %v1925_v50  ;;  %v5877_v8 = vld [vmem:[%s9034_s3 + $0x1a4] sm:$0xf0]  ;;  %2631 = vmatpush.bf16.msra.mxu2 %v5110_v18  ;;  %v5219_v50 = vld [vmem:[%s9034_s3 + $0x1f8] sm:$0xf0] }
 0x179   :  { %v6008_v10 = vpop.eup %6007  ;;  %v8090_v47 = vadd.f32 1.0, %v2072_v39  ;;  %v5222_v9 = vor.u32 %v5886_v58, %v5219_v50  ;;  %v5884_v18 = vld [vmem:[%s9034_s3 + $0x1e4] sm:$0xf] }
 0x17a   :  { %v1777_v63 = vadd.f32 %v1776_v54, %v1763_v30  ;;  %v1915_v45 = vmul.f32 %v6008_v10, %v8057_v15  ;;  %vm1920_vm2 = vweird.f32 %v6008_v10  ;;  %v5177_v15 = vld [vmem:[%s9034_s3 + $0x1a0] sm:$0xf] }
 0x17b   :  { %6009 = vrcp.f32 %v8090_v47  ;;  %vm1921_vm4 = vmor %vm1919_vm3, %vm1920_vm2  ;;  %v1778_v28 = vpop.f32.mrf.mxu0  ;;  %v2083_v33 = vand.u32 2147483647, %v8090_v47  ;;  %v5178_v29 = vor.u32 %v5877_v8, %v5177_v15  ;;  %v2085_v60 = vand.u32 2147483648, %v8090_v47 }
 0x17c   :  { %v1750_v37 = vpop.f32.mrf.mxu3  ;;  %v1790_v48 = vpop.f32.mrf.mxu1  ;;  %v1916_v25 = vsub.f32 1.0, %v1915_v45  ;;  %vm2079_vm7 = vweird.f32 %v8090_v47  ;;  %2632 = vmatpush.bf16.msra.mxu2 %v5102_v35 }
 0x17d   :  { %v1751_v19 = vadd.f32 %v1750_v37, %v1737_v43  ;;  %v8093_v49 = vadd.f32 %v1790_v48, %v1777_v63  ;;  %v5169_v37 = vld [vmem:[%s9034_s3 + $0x190] sm:$0xf]  ;;  %v5875_v63 = vld [vmem:[%s9034_s3 + $0x194] sm:$0xf0]  ;;  %2588 = vmatpush.bf16.msra.mxu0 %v5178_v29  ;;  %vm2084_vm8 = vcmp.eq.f32.partialorder %v2083_v33, 8.507059e+37 }
 0x17e   :  { %v1917_v2 = vmul.f32 %v6008_v10, %v1916_v25  ;;  %v5170_v48 = vor.u32 %v5875_v63, %v5169_v37 }
 0x17f   :  { %v1764_v61 = vpop.f32.mrf.mxu2  ;;  %v8111_v34 = vmul.f32 0.70710677, %v8093_v49 }
 0x180   :  { %v1765_v3 = vadd.f32 %v1764_v61, %v1751_v19  ;;  %v1918_v16 = vadd.f32 %v6008_v10, %v1917_v2  ;;  %v2086_v19 = vor.u32 1.1754944e-38, %v2085_v60 }
 0x181   :  { %v1931_v13 = vmul.f32 %v8111_v34, %v8111_v34  ;;  %v6010_v21 = vpop.eup %6009  ;;  %2589 = vmatpush.bf16.msra.mxu0 %v5170_v48  ;;  %v5187_v48 = vld [vmem:[%s9034_s3 + $0x1b8] sm:$0xf0] }
 0x182   :  { %v1922_v24 = vsel %vm1921_vm4, %v6008_v10, %v1918_v16  ;;  %v1779_v26 = vadd.f32 %v1778_v28, %v1765_v3  ;;  %v2075_v0 = vmul.f32 %v6010_v21, %v8090_v47  ;;  %v2062_v10 = vadd.f32 1.1283791, %v2061_v31  ;;  %v5161_v47 = vld [vmem:[%s9034_s3 + $0x180] sm:$0xf] }
 0x183   :  { %v8129_v20 = vmin.f32 %v1931_v13, 16.0  ;;  %v1927_v30 = vsel %vm1924_vm5, %v1926_v62, %v1922_v24  ;;  %vm2080_vm6 = vweird.f32 %v6010_v21  ;;  %v5162_v6 = vor.u32 %v5873_v1, %v5161_v47  ;;  %v5211_v62 = vld [vmem:[%s9034_s3 + $0x1e8] sm:$0xf0] }
 0x184   :  { %v1792_v27 = vpop.f32.mrf.mxu1  ;;  %v2076_v36 = vsub.f32 1.0, %v2075_v0  ;;  %v1928_v39 = vmul.f32 %v1927_v30, %v1903_v23  ;;  %vm2081_vm9 = vmor %vm2079_vm7, %vm2080_vm6  ;;  %v2063_v25 = vmul.f32 %v2062_v10, %v8001_v22  ;;  %v1797_v24 = vmul.f32 0.5, %v7971_v53  ;;  %v5203_v53 = vld [vmem:[%s9034_s3 + $0x1d8] sm:$0xf0]  ;;  %v5179_v47 = vld [vmem:[%s9034_s3 + $0x1a8] sm:$0xf0] }
 0x185   :  { %v1933_v32 = vmul.f32 2.1237322e-06, %v8129_v20  ;;  %v1944_v11 = vmul.f32 3.8918573e-05, %v8129_v20  ;;  %v8149_v54 = vadd.f32 %v1792_v27, %v1779_v26  ;;  %2590 = vmatpush.bf16.msra.mxu0 %v5162_v6  ;;  %v1801_v26 = vmul.f32 0.5, %v7996_v52 }
 0x186   :  { %v2077_v43 = vmul.f32 %v6010_v21, %v2076_v36  ;;  %v4961_v56 = vclamps-f32 %v1928_v39, 1.0  ;;  %v5214_v15 = vor.u32 %v5884_v18, %v5211_v62  ;;  %v5206_v29 = vor.u32 %v5882_v55, %v5203_v53  ;;  %v5880_v39 = vld [vmem:[%s9034_s3 + $0x1c4] sm:$0xf] }
 0x187   :  { %v1934_v38 = vadd.f32 0.00028619796, %v1933_v32  ;;  %v1945_v40 = vadd.f32 0.001143296, %v1944_v11  ;;  %v8153_v41 = vmul.f32 0.70710677, %v8149_v54 }
 0x188   :  { %v2078_v51 = vadd.f32 %v6010_v21, %v2077_v43  ;;  %v2133_v16 = vadd.f32 1.0, %v4961_v56 }
 0x189   :  { %v1946_v44 = vmul.f32 %v1945_v40, %v8129_v20  ;;  %v2091_v45 = vmul.f32 %v8153_v41, %v8153_v41  ;;  %v1935_v42 = vmul.f32 %v1934_v38, %v8129_v20  ;;  %2639 = vmatpush.bf16.msrb.mxu0 %v5222_v9  ;;  %v5195_v40 = vld [vmem:[%s9034_s3 + $0x1c8] sm:$0xf0] }
 0x18a   :  { %v2082_v61 = vsel %vm2081_vm9, %v6010_v21, %v2078_v51  ;;  %v2141_v31 = vmul.f32 %v2133_v16, %v1797_v24  ;;  %v5198_v43 = vor.u32 %v5880_v39, %v5195_v40  ;;  %v5925_v39 = vld [vmem:[%s9046_s15 + $0x128] sm:$0xf0] }
 0x18b   :  { %v1947_v57 = vadd.f32 0.014752088, %v1946_v44  ;;  %v8166_v59 = vmin.f32 %v2091_v45, 16.0  ;;  %v2087_v2 = vsel %vm2084_vm8, %v2086_v19, %v2082_v61  ;;  %v1936_v7 = vadd.f32 0.0036580483, %v1935_v42 }
 0x18c   :  { %v2088_v5 = vmul.f32 %v2087_v2, %v2063_v25  ;;  %v5878_v45 = vld [vmem:[%s9034_s3 + $0x1b4] sm:$0xf] }
 0x18d   :  { %v1948_v3 = vmul.f32 %v1947_v57, %v8129_v20  ;;  %v2093_v4 = vmul.f32 2.1237322e-06, %v8166_v59  ;;  %v2104_v22 = vmul.f32 3.8918573e-05, %v8166_v59  ;;  %v1937_v8 = vmul.f32 %v1936_v7, %v8129_v20  ;;  %2640 = vmatpush.bf16.msrb.mxu0 %v5214_v15  ;;  %v5876_v57 = vld [vmem:[%s9034_s3 + $0x1a4] sm:$0xf] }
 0x18e   :  { %v4965_v17 = vclamps-f32 %v2088_v5, 1.0  ;;  %v5190_v19 = vor.u32 %v5878_v45, %v5187_v48  ;;  %v5182_v50 = vor.u32 %v5876_v57, %v5179_v47  ;;  %v8263_v45 = vld [vmem:[#allocation4] sm:$0x3]  ;;  %v5923_v47 = vld [vmem:[%s9046_s15 + $0x11c] sm:$0xf] }
 0x18f   :  { %v1949_v12 = vadd.f32 0.112945676, %v1948_v3  ;;  %v2094_v13 = vadd.f32 0.00028619796, %v2093_v4  ;;  %v2105_v14 = vadd.f32 0.001143296, %v2104_v22 }
 0x190   :  { %v2137_v27 = vadd.f32 1.0, %v4965_v17  ;;  %v1938_v36 = vadd.f32 0.05243302, %v1937_v8  ;;  %v5874_v3 = vld [vmem:[%s9034_s3 + $0x194] sm:$0xf] }
 0x191   :  { %v1950_v28 = vmul.f32 %v1949_v12, %v8129_v20  ;;  %v2095_v21 = vmul.f32 %v2094_v13, %v8166_v59  ;;  %v2106_v23 = vmul.f32 %v2105_v14, %v8166_v59  ;;  %2641 = vmatpush.bf16.msrb.mxu0 %v5206_v29  ;;  %v5171_v4 = vld [vmem:[%s9034_s3 + $0x198] sm:$0xf0]  ;;  %v5163_v14 = vld [vmem:[%s9034_s3 + $0x188] sm:$0xf0]  ;;  %v1802_v29 = vmul.f32 0.5, %v8149_v54 }
 0x192   :  { %v2145_v0 = vmul.f32 %v2137_v27, %v1801_v26  ;;  %v1939_v37 = vmul.f32 %v1938_v36, %v8129_v20  ;;  %v5174_v12 = vor.u32 %v5874_v3, %v5171_v4  ;;  %v5920_v54 = vld [vmem:[%s9046_s15 + $0x100] sm:$0xf0]  ;;  %v5965_v4 = vld [vmem:[%s9046_s15 + $0x268] sm:$0xf0] }
 0x193   :  { %v1951_v46 = vadd.f32 0.4994258, %v1950_v28  ;;  %v2107_v30 = vadd.f32 0.014752088, %v2106_v23  ;;  %v2096_v32 = vadd.f32 0.0036580483, %v2095_v21 }
 0x194   :  { %v2149_v11 = vpack.c.bf16 %v2145_v0, %v2141_v31  ;;  %v1940_v56 = vadd.f32 0.18741608, %v1939_v37  ;;  %v5915_v37 = vld [vmem:[%s9046_s15 + $0xd8] sm:$0xf0] }
 0x195   :  { %v1952_v52 = vmul.f32 %v1951_v46, %v8129_v20  ;;  %v2108_v33 = vmul.f32 %v2107_v30, %v8166_v59  ;;  %v2097_v35 = vmul.f32 %v2096_v32, %v8166_v59  ;;  %2642 = vmatpush.bf16.msrb.mxu0 %v5198_v43  ;;  %v5329_v43 = vld [vmem:[%s9046_s15 + $0xc8] sm:$0xf] }
 0x196   :  { %2577 = vmatmul.bf16.vlgmr.msrb.gmra.mxu2 %v2149_v11  ;;  %v1941_v2 = vmul.f32 %v1940_v56, %v8129_v20  ;;  %v5872_v20 = vld [vmem:[%s9034_s3 + $0x184] sm:$0xf]  ;;  %v2217_v56 = vperm.slane %v8263_v45, 0 }
 0x197   :  { %v1953_v60 = vadd.f32 1.0, %v1952_v52  ;;  %v2109_v38 = vadd.f32 0.112945676, %v2108_v33  ;;  %v2098_v63 = vadd.f32 0.05243302, %v2097_v35  ;;  %v5166_v23 = vor.u32 %v5872_v20, %v5163_v14 }
 0x198   :  { %v1942_v13 = vadd.f32 1.1283791, %v1941_v2  ;;  %v5269_v20 = vld [vmem:[%s9046_s15 + $0x50] sm:$0xf]  ;;  %v5900_v14 = vld [vmem:[%s9046_s15 + $0x60] sm:$0xf0] }
 0x199   :  { %6011 = vrcp.f32 %v1953_v60  ;;  %v2110_v10 = vmul.f32 %v2109_v38, %v8166_v59  ;;  %v2099_v61 = vmul.f32 %v2098_v63, %v8166_v59  ;;  %2643 = vmatpush.bf16.msrb.mxu0 %v5190_v19  ;;  %v1965_v5 = vand.u32 2147483648, %v1953_v60  ;;  %v5309_v19 = vld [vmem:[%s9046_s15 + $0xa0] sm:$0xf] }
 0x19a   :  { %v1963_v6 = vand.u32 2147483647, %v1953_v60  ;;  %vm1959_vm11 = vweird.f32 %v1953_v60  ;;  %v1943_v24 = vmul.f32 %v1942_v13, %v8111_v34  ;;  %v5330_v63 = vor.u32 %v5915_v37, %v5329_v43 }
 0x19b   :  { %v2111_v44 = vadd.f32 0.4994258, %v2110_v10  ;;  %v2100_v7 = vadd.f32 0.18741608, %v2099_v61  ;;  %v1966_v18 = vor.u32 1.1754944e-38, %v1965_v5 }
 0x19c   :  { %vm1964_vm13 = vcmp.eq.f32.partialorder %v1963_v6, 8.507059e+37  ;;  %v5351_v5 = vld [vmem:[%s9046_s15 + $0x104] sm:$0xf0] }
 0x19d   :  { %v2112_v51 = vmul.f32 %v2111_v44, %v8166_v59  ;;  %2644 = vmatpush.bf16.msrb.mxu0 %v5182_v50  ;;  %v2101_v62 = vmul.f32 %v2100_v7, %v8166_v59  ;;  %v5529_v50 = vld [vmem:[%s9046_s15 + $0x258] sm:$0xf] }
 0x19e   :  { %v5530_v6 = vor.u32 %v5965_v4, %v5529_v50  ;;  %v5945_v50 = vld [vmem:[%s9046_s15 + $0x1c8] sm:$0xf0] }
 0x19f   :  { %v6012_v42 = vpop.eup %6011  ;;  %v2113_v1 = vadd.f32 1.0, %v2112_v51  ;;  %v2102_v27 = vadd.f32 1.1283791, %v2101_v62  ;;  %v5960_v62 = vld [vmem:[%s9046_s15 + $0x240] sm:$0xf0] }
 0x1a0   :  { %v1955_v25 = vmul.f32 %v6012_v42, %v1953_v60  ;;  %vm1960_vm10 = vweird.f32 %v6012_v42  ;;  %3357 = vmatpush.bf16.msrb.mxu1 %v5530_v6  ;;  %v5898_v6 = vld [vmem:[%s9046_s15 + $0x54] sm:$0xf] }
 0x1a1   :  { %6013 = vrcp.f32 %v2113_v1  ;;  %vm1961_vm12 = vmor %vm1959_vm11, %vm1960_vm10  ;;  %2645 = vmatpush.bf16.msrb.mxu0 %v5174_v12  ;;  %v2125_v15 = vand.u32 2147483648, %v2113_v1  ;;  %v2123_v30 = vand.u32 2147483647, %v2113_v1  ;;  %vm2119_vm15 = vweird.f32 %v2113_v1 }
 0x1a2   :  { %v1956_v58 = vsub.f32 1.0, %v1955_v25  ;;  %v2103_v32 = vmul.f32 %v2102_v27, %v8153_v41  ;;  %v5369_v41 = vld [vmem:[%s9046_s15 + $0x118] sm:$0xf]  ;;  %v5371_v25 = vld [vmem:[%s9046_s15 + $0x12c] sm:$0xf0] }
 0x1a3   :  { %v2126_v59 = vor.u32 1.1754944e-38, %v2125_v15  ;;  %vm2124_vm2 = vcmp.eq.f32.partialorder %v2123_v30, 8.507059e+37  ;;  %v5370_v40 = vor.u32 %v5925_v39, %v5369_v41  ;;  %v5374_v61 = vor.u32 %v5923_v47, %v5371_v25  ;;  %v5489_v30 = vld [vmem:[%s9046_s15 + $0x208] sm:$0xf] }
 0x1a4   :  { %v1957_v22 = vmul.f32 %v6012_v42, %v1956_v58  ;;  %v5905_v58 = vld [vmem:[%s9046_s15 + $0x88] sm:$0xf0] }
 0x1a5   :  { %2646 = vmatpush.bf16.msrb.mxu0 %v5166_v23  ;;  %3343 = vmatpush.bf16.msra.mxu3 %v5370_v40 }
 0x1a6   :  { %v1958_v9 = vadd.f32 %v6012_v42, %v1957_v22  ;;  %2633 = vmatmul.bf16.vlgmr.msra.gmra.mxu2 %v2149_v11  ;;  %v1798_v11 = vmul.f32 0.5, %v8093_v49  ;;  %v5349_v49 = vld [vmem:[%s9046_s15 + $0xf0] sm:$0xf]  ;;  %v5918_v22 = vld [vmem:[%s9046_s15 + $0xf4] sm:$0xf] }
 0x1a7   :  { %v6014_v16 = vpop.eup %6013  ;;  %v5350_v10 = vor.u32 %v5920_v54, %v5349_v49  ;;  %3371 = vmatpush.bf16.msrb.mxu2 %v5374_v61  ;;  %v5950_v49 = vld [vmem:[%s9046_s15 + $0x1f0] sm:$0xf0]  ;;  %v5903_v54 = vld [vmem:[%s9046_s15 + $0x7c] sm:$0xf] }
 0x1a8   :  { %v1962_v17 = vsel %vm1961_vm12, %v6012_v42, %v1958_v9  ;;  %v2115_v28 = vmul.f32 %v6014_v16, %v2113_v1  ;;  %vm2120_vm14 = vweird.f32 %v6014_v16  ;;  %v5910_v42 = vld [vmem:[%s9046_s15 + $0xb0] sm:$0xf0]  ;;  %v5289_v1 = vld [vmem:[%s9046_s15 + $0x78] sm:$0xf]  ;;  %v5354_v9 = vor.u32 %v5918_v22, %v5351_v5 }
 0x1a9   :  { %v1967_v21 = vsel %vm1964_vm13, %v1966_v18, %v1962_v17  ;;  %vm2121_vm1 = vmor %vm2119_vm15, %vm2120_vm14  ;;  %3344 = vmatpush.bf16.msra.mxu3 %v5350_v10  ;;  %v5310_v57 = vor.u32 %v5910_v42, %v5309_v19  ;;  %v5290_v3 = vor.u32 %v5905_v58, %v5289_v1  ;;  %v5270_v18 = vor.u32 %v5900_v14, %v5269_v20  ;;  %v5926_v1 = vld [vmem:[%s9046_s15 + $0x130] sm:$0xf0]  ;;  %v5449_v58 = vld [vmem:[%s9046_s15 + $0x1b8] sm:$0xf] }
 0x1aa   :  { %v2116_v26 = vsub.f32 1.0, %v2115_v28  ;;  %v1968_v8 = vmul.f32 %v1967_v21, %v1943_v24  ;;  %v5913_v28 = vld [vmem:[%s9046_s15 + $0xcc] sm:$0xf]  ;;  %v5331_v21 = vld [vmem:[%s9046_s15 + $0xdc] sm:$0xf0] }
 0x1ab   :  { %3372 = vmatpush.bf16.msrb.mxu2 %v5354_v9  ;;  %v5334_v27 = vor.u32 %v5913_v28, %v5331_v21  ;;  %v5271_v9 = vld [vmem:[%s9046_s15 + $0x64] sm:$0xf0]  ;;  %v5958_v14 = vld [vmem:[%s9046_s15 + $0x234] sm:$0xf]  ;;  %v5921_v21 = vld [vmem:[%s9046_s15 + $0x108] sm:$0xf0] }
 0x1ac   :  { %v2117_v46 = vmul.f32 %v6014_v16, %v2116_v26  ;;  %v4962_v0 = vclamps-f32 %v1968_v8, 1.0  ;;  %v5249_v8 = vld [vmem:[%s9046_s15 + $0x28] sm:$0xf]  ;;  %v5274_v20 = vor.u32 %v5898_v6, %v5271_v9 }
 0x1ad   :  { %3345 = vmatpush.bf16.msra.mxu3 %v5330_v63  ;;  %v5291_v63 = vld [vmem:[%s9046_s15 + $0x8c] sm:$0xf0] }
 0x1ae   :  { %v2118_v31 = vadd.f32 %v6014_v16, %v2117_v46  ;;  %v2134_v34 = vadd.f32 1.0, %v4962_v0  ;;  %v5895_v46 = vld [vmem:[%s9046_s15 + $0x38] sm:$0xf0] }
 0x1af   :  { %3373 = vmatpush.bf16.msrb.mxu2 %v5334_v27  ;;  %v5250_v0 = vor.u32 %v5895_v46, %v5249_v8 }
 0x1b0   :  { %v2122_v55 = vsel %vm2121_vm1, %v6014_v16, %v2118_v31  ;;  %v2142_v60 = vmul.f32 %v2134_v34, %v1798_v11  ;;  %v5509_v16 = vld [vmem:[%s9046_s15 + $0x230] sm:$0xf]  ;;  %v2218_v34 = vperm.slane %v8263_v45, 1 }
 0x1b1   :  { %v2127_v53 = vsel %vm2124_vm2, %v2126_v59, %v2122_v55  ;;  %3346 = vmatpush.bf16.msra.mxu3 %v5310_v57  ;;  %v5510_v26 = vor.u32 %v5960_v62, %v5509_v16  ;;  %v5377_v57 = vld [vmem:[%s9046_s15 + $0x120] sm:$0xf]  ;;  %v5511_v16 = vld [vmem:[%s9046_s15 + $0x244] sm:$0xf0] }
 0x1b2   :  { %v2128_v52 = vmul.f32 %v2127_v53, %v2103_v32  ;;  %v5955_v32 = vld [vmem:[%s9046_s15 + $0x218] sm:$0xf0]  ;;  %v5908_v53 = vld [vmem:[%s9046_s15 + $0xa4] sm:$0xf]  ;;  %v5378_v4 = vor.u32 %v5926_v1, %v5377_v57  ;;  %v5514_v28 = vor.u32 %v5958_v14, %v5511_v16 }
 0x1b3   :  { %3358 = vmatpush.bf16.msrb.mxu1 %v5510_v26  ;;  %v5490_v55 = vor.u32 %v5955_v32, %v5489_v30  ;;  %v5893_v30 = vld [vmem:[%s9046_s15 + $0x2c] sm:$0xf] }
 0x1b4   :  { %v4966_v33 = vclamps-f32 %v2128_v52, 1.0  ;;  %v5311_v52 = vld [vmem:[%s9046_s15 + $0xb4] sm:$0xf0] }
 0x1b5   :  { %3347 = vmatpush.bf16.msra.mxu3 %v5290_v3 }
 0x1b6   :  { %v2138_v36 = vadd.f32 1.0, %v4966_v33 }
 0x1b7   :  { %3359 = vmatpush.bf16.msrb.mxu1 %v5490_v55  ;;  %v5251_v55 = vld [vmem:[%s9046_s15 + $0x3c] sm:$0xf0] }
 0x1b8   :  { %v2146_v38 = vmul.f32 %v2138_v36, %v1802_v29  ;;  %v2550_v44 = vpop.f32.mrf.mxu3  ;;  %v5314_v29 = vor.u32 %v5908_v53, %v5311_v52  ;;  %v5953_v53 = vld [vmem:[%s9046_s15 + $0x20c] sm:$0xf] }
 0x1b9   :  { %v2551_v2 = vadd.f32 %v2550_v44, %v2217_v56  ;;  %3348 = vmatpush.bf16.msra.mxu3 %v5270_v18  ;;  %v5963_v44 = vld [vmem:[%s9046_s15 + $0x25c] sm:$0xf] }
 0x1ba   :  { %v2150_v35 = vpack.c.bf16 %v2146_v38, %v2142_v60  ;;  %v5229_v60 = vld [vmem:[%s9046_s15] sm:$0xf]  ;;  %v5890_v38 = vld [vmem:[%s9046_s15 + $0x10] sm:$0xf0]  ;;  %3374 = vmatpush.bf16.msrb.mxu2 %v5314_v29  ;;  %v5254_v29 = vor.u32 %v5893_v30, %v5251_v55 }
 0x1bb   :  { %v5230_v40 = vor.u32 %v5890_v38, %v5229_v60  ;;  %v5337_v60 = vld [vmem:[%s9046_s15 + $0xd0] sm:$0xf]  ;;  %v5916_v38 = vld [vmem:[%s9046_s15 + $0xe0] sm:$0xf0] }
 0x1bc   :  { %2591 = vmatmul.bf16.vlgmr.msra.gmra.mxu0 %v2150_v35 }
 0x1bd   :  { %3349 = vmatpush.bf16.msra.mxu3 %v5250_v0 }
 0x1c0   :  { %v2552_v7 = vpop.f32.mrf.mxu3 }
 0x1c1   :  { %v2553_v31 = vadd.f32 %v2552_v7, %v2217_v56  ;;  %3350 = vmatpush.bf16.msra.mxu3 %v5230_v40  ;;  %v5294_v56 = vor.u32 %v5903_v54, %v5291_v63  ;;  %v5450_v7 = vor.u32 %v5945_v50, %v5449_v58  ;;  %v5338_v54 = vor.u32 %v5916_v38, %v5337_v60  ;;  %v5409_v63 = vld [vmem:[%s9046_s15 + $0x168] sm:$0xf] }
 0x1c3   :  { %3375 = vmatpush.bf16.msrb.mxu2 %v5294_v56 }
 0x1c5   :  { %3399 = vmatpush.bf16.msrb.mxu3 %v5378_v4  ;;  %v5317_v4 = vld [vmem:[%s9046_s15 + $0xa8] sm:$0xf] }
 0x1c7   :  { %3376 = vmatpush.bf16.msrb.mxu2 %v5274_v20 }
 0x1c8   :  { %v2606_v36 = vpop.f32.mrf.mxu3 }
 0x1c9   :  { %v2607_v47 = vadd.f32 %v2606_v36, %v2218_v34  ;;  %v5491_v36 = vld [vmem:[%s9046_s15 + $0x21c] sm:$0xf0] }
 0x1cb   :  { %3377 = vmatpush.bf16.msrb.mxu2 %v5254_v29  ;;  %v5943_v29 = vld [vmem:[%s9046_s15 + $0x1bc] sm:$0xf] }
 0x1cc   :  { %2647 = vmatmul.bf16.vlgmr.msrb.gmra.mxu0 %v2150_v35  ;;  %v5469_v35 = vld [vmem:[%s9046_s15 + $0x1e0] sm:$0xf] }
 0x1cd   :  { %v5470_v37 = vor.u32 %v5950_v49, %v5469_v35  ;;  %v5494_v49 = vor.u32 %v5953_v53, %v5491_v36  ;;  %v5451_v36 = vld [vmem:[%s9046_s15 + $0x1cc] sm:$0xf0] }
 0x1cf   :  { %3360 = vmatpush.bf16.msrb.mxu1 %v5470_v37 }
 0x1d3   :  { %3361 = vmatpush.bf16.msrb.mxu1 %v5450_v7 }
 0x1d8   :  { %v2564_v48 = vpop.f32.mrf.mxu1 }
 0x1d9   :  { %v2565_v12 = vadd.f32 %v2564_v48, %v2551_v2  ;;  %v5531_v48 = vld [vmem:[%s9046_s15 + $0x26c] sm:$0xf0] }
 0x1da   :  { %v5534_v61 = vor.u32 %v5963_v44, %v5531_v48 }
 0x1dc   :  { %3385 = vmatpush.bf16.msra.mxu0 %v5534_v61 }
 0x1e0   :  { %v2566_v13 = vpop.f32.mrf.mxu1  ;;  %3386 = vmatpush.bf16.msra.mxu0 %v5514_v28 }
 0x1e1   :  { %v2567_v33 = vadd.f32 %v2566_v13, %v2553_v31  ;;  %v2608_v31 = vpop.f32.mrf.mxu3 }
 0x1e4   :  { %3387 = vmatpush.bf16.msra.mxu0 %v5494_v49  ;;  %v5906_v49 = vld [vmem:[%s9046_s15 + $0x90] sm:$0xf0] }
 0x1e8   :  { %v2620_v10 = vpop.f32.mrf.mxu1 }
 0x1e9   :  { %v2621_v22 = vadd.f32 %v2620_v10, %v2607_v47  ;;  %v2609_v10 = vadd.f32 %v2608_v31, %v2218_v34  ;;  %v5935_v34 = vld [vmem:[%s9046_s15 + $0x178] sm:$0xf0]  ;;  %v5888_v47 = vld [vmem:[%s9046_s15 + $0x4] sm:$0xf] }
 0x1ea   :  { %v5410_v50 = vor.u32 %v5935_v34, %v5409_v63 }
 0x1f0   :  { %v2622_v35 = vpop.f32.mrf.mxu1 }
 0x1f1   :  { %v2623_v56 = vadd.f32 %v2622_v35, %v2609_v10 }
 0x219   :  { %v2578_v51 = vpop.f32.mrf.mxu2 }
 0x21a   :  { %v2579_v17 = vadd.f32 %v2578_v51, %v2565_v12 }
 0x221   :  { %v2580_v23 = vpop.f32.mrf.mxu2 }
 0x222   :  { %v2581_v41 = vadd.f32 %v2580_v23, %v2567_v33  ;;  %v5429_v23 = vld [vmem:[%s9046_s15 + $0x190] sm:$0xf] }
 0x229   :  { %v2634_v25 = vpop.f32.mrf.mxu2 }
 0x22a   :  { %v2635_v18 = vadd.f32 %v2634_v25, %v2621_v22  ;;  %v5231_v25 = vld [vmem:[%s9046_s15 + $0x14] sm:$0xf0] }
 0x22b   :  { %v5234_v6 = vor.u32 %v5888_v47, %v5231_v25  ;;  %v5966_v47 = vld [vmem:[%s9046_s15 + $0x270] sm:$0xf0] }
 0x22d   :  { %3378 = vmatpush.bf16.msrb.mxu2 %v5234_v6 }
 0x231   :  { %v2636_v44 = vpop.f32.mrf.mxu2 }
 0x232   :  { %v2637_v22 = vadd.f32 %v2636_v44, %v2623_v56 }
 0x239   :  { %v2592_v24 = vpop.f32.mrf.mxu0 }
 0x23a   :  { %v8314_v15 = vadd.f32 %v2592_v24, %v2579_v17  ;;  %v5357_v17 = vld [vmem:[%s9046_s15 + $0xf8] sm:$0xf]  ;;  %v5940_v24 = vld [vmem:[%s9046_s15 + $0x1a0] sm:$0xf0] }
 0x23b   :  { %v5358_v8 = vor.u32 %v5921_v21, %v5357_v17  ;;  %v5430_v46 = vor.u32 %v5940_v24, %v5429_v23  ;;  %v5924_v21 = vld [vmem:[%s9046_s15 + $0x124] sm:$0xf]  ;;  %v5379_v23 = vld [vmem:[%s9046_s15 + $0x134] sm:$0xf0] }
 0x23c   :  { %v8326_v59 = vmul.f32 0.70710677, %v8314_v15 }
 0x23d   :  { %3400 = vmatpush.bf16.msrb.mxu3 %v5358_v8  ;;  %3362 = vmatpush.bf16.msrb.mxu1 %v5430_v46  ;;  %v5389_v46 = vld [vmem:[%s9046_s15 + $0x140] sm:$0xf] }
 0x23e   :  { %v2661_v11 = vmul.f32 %v8326_v59, %v8326_v59 }
 0x240   :  { %v8349_v39 = vmin.f32 %v2661_v11, 16.0 }
 0x241   :  { %v2594_v43 = vpop.f32.mrf.mxu0  ;;  %3401 = vmatpush.bf16.msrb.mxu3 %v5338_v54  ;;  %3363 = vmatpush.bf16.msrb.mxu1 %v5410_v50 }
 0x242   :  { %v2663_v51 = vmul.f32 2.1237322e-06, %v8349_v39  ;;  %v2674_v19 = vmul.f32 3.8918573e-05, %v8349_v39  ;;  %v8368_v42 = vadd.f32 %v2594_v43, %v2581_v41 }
 0x244   :  { %v2664_v2 = vadd.f32 0.00028619796, %v2663_v51  ;;  %v2675_v3 = vadd.f32 0.001143296, %v2674_v19  ;;  %v8385_v5 = vmul.f32 0.70710677, %v8368_v42 }
 0x246   :  { %v2665_v12 = vmul.f32 %v2664_v2, %v8349_v39  ;;  %v2676_v13 = vmul.f32 %v2675_v3, %v8349_v39  ;;  %v2741_v62 = vmul.f32 %v8385_v5, %v8385_v5  ;;  %v5948_v2 = vld [vmem:[%s9046_s15 + $0x1e4] sm:$0xf]  ;;  %v5471_v3 = vld [vmem:[%s9046_s15 + $0x1f4] sm:$0xf0] }
 0x247   :  { %v5474_v9 = vor.u32 %v5948_v2, %v5471_v3 }
 0x248   :  { %v2666_v26 = vadd.f32 0.0036580483, %v2665_v12  ;;  %v2677_v27 = vadd.f32 0.014752088, %v2676_v13  ;;  %v8418_v0 = vmin.f32 %v2741_v62, 16.0 }
 0x249   :  { %v2648_v32 = vpop.f32.mrf.mxu0  ;;  %v5911_v12 = vld [vmem:[%s9046_s15 + $0xb8] sm:$0xf0]  ;;  %3388 = vmatpush.bf16.msra.mxu0 %v5474_v9 }
 0x24a   :  { %v2667_v52 = vmul.f32 %v2666_v26, %v8349_v39  ;;  %v2678_v33 = vmul.f32 %v2677_v27, %v8349_v39  ;;  %v8428_v11 = vadd.f32 %v2648_v32, %v2635_v18  ;;  %v2743_v41 = vmul.f32 2.1237322e-06, %v8418_v0  ;;  %v5930_v32 = vld [vmem:[%s9046_s15 + $0x150] sm:$0xf0] }
 0x24b   :  { %v2754_v40 = vmul.f32 3.8918573e-05, %v8418_v0  ;;  %v5318_v17 = vor.u32 %v5911_v12, %v5317_v4 }
 0x24c   :  { %v2668_v43 = vadd.f32 0.05243302, %v2667_v52  ;;  %v2679_v37 = vadd.f32 0.112945676, %v2678_v33  ;;  %v2744_v48 = vadd.f32 0.00028619796, %v2743_v41  ;;  %v5382_v33 = vor.u32 %v5924_v21, %v5379_v23 }
 0x24d   :  { %v2755_v51 = vadd.f32 0.001143296, %v2754_v40  ;;  %v8447_v19 = vmul.f32 0.70710677, %v8428_v11  ;;  %3402 = vmatpush.bf16.msrb.mxu3 %v5318_v17  ;;  %v5297_v40 = vld [vmem:[%s9046_s15 + $0x80] sm:$0xf] }
 0x24e   :  { %v2669_v57 = vmul.f32 %v2668_v43, %v8349_v39  ;;  %v2680_v45 = vmul.f32 %v2679_v37, %v8349_v39  ;;  %v2745_v61 = vmul.f32 %v2744_v48, %v8418_v0  ;;  %3427 = vmatpush.bf16.msra.mxu2 %v5382_v33  ;;  %v5390_v43 = vor.u32 %v5930_v32, %v5389_v46  ;;  %v5537_v37 = vld [vmem:[%s9046_s15 + $0x260] sm:$0xf]  ;;  %v5961_v33 = vld [vmem:[%s9046_s15 + $0x248] sm:$0xf0] }
 0x24f   :  { %v2756_v1 = vmul.f32 %v2755_v51, %v8418_v0  ;;  %v2701_v58 = vmul.f32 %v8447_v19, %v8447_v19  ;;  %v5454_v51 = vor.u32 %v5943_v29, %v5451_v36  ;;  %v5298_v34 = vor.u32 %v5906_v49, %v5297_v40 }
 0x250   :  { %v2681_v7 = vadd.f32 0.4994258, %v2680_v45  ;;  %v2746_v13 = vadd.f32 0.0036580483, %v2745_v61  ;;  %v2670_v18 = vadd.f32 0.18741608, %v2669_v57  ;;  %3364 = vmatpush.bf16.msrb.mxu1 %v5390_v43 }
 0x251   :  { %v2757_v20 = vadd.f32 0.014752088, %v2756_v1  ;;  %v8476_v14 = vmin.f32 %v2701_v58, 16.0  ;;  %v2650_v16 = vpop.f32.mrf.mxu0  ;;  %3389 = vmatpush.bf16.msra.mxu0 %v5454_v51  ;;  %v5538_v58 = vor.u32 %v5966_v47, %v5537_v37  ;;  %3403 = vmatpush.bf16.msrb.mxu3 %v5298_v34  ;;  %v5933_v37 = vld [vmem:[%s9046_s15 + $0x16c] sm:$0xf]  ;;  %v8609_v47 = vmul.f32 0.5, %v8314_v15 }
 0x252   :  { %v2682_v62 = vmul.f32 %v2681_v7, %v8349_v39  ;;  %v8479_v28 = vadd.f32 %v2650_v16, %v2637_v22  ;;  %v2747_v24 = vmul.f32 %v2746_v13, %v8418_v0  ;;  %v2671_v60 = vmul.f32 %v2670_v18, %v8349_v39  ;;  %v5359_v13 = vld [vmem:[%s9046_s15 + $0x10c] sm:$0xf0]  ;;  %v5938_v18 = vld [vmem:[%s9046_s15 + $0x194] sm:$0xf]  ;;  %v5896_v34 = vld [vmem:[%s9046_s15 + $0x40] sm:$0xf0] }
 0x253   :  { %v2758_v26 = vmul.f32 %v2757_v20, %v8418_v0  ;;  %v2703_v27 = vmul.f32 2.1237322e-06, %v8476_v14  ;;  %v2714_v8 = vmul.f32 3.8918573e-05, %v8476_v14 }
 0x254   :  { %v8494_v30 = vadd.f32 1.0, %v2682_v62  ;;  %v8497_v31 = vmul.f32 0.70710677, %v8479_v28  ;;  %v2748_v55 = vadd.f32 0.05243302, %v2747_v24  ;;  %3413 = vmatpush.bf16.msra.mxu1 %v5538_v58 }
 0x255   :  { %v2759_v53 = vadd.f32 0.112945676, %v2758_v26  ;;  %v2704_v52 = vadd.f32 0.00028619796, %v2703_v27  ;;  %v2715_v10 = vadd.f32 0.001143296, %v2714_v8 }
 0x256   :  { %6015 = vrcp.f32 %v8494_v30  ;;  %v2749_v38 = vmul.f32 %v2748_v55, %v8418_v0  ;;  %v2693_v54 = vand.u32 2147483647, %v8494_v30  ;;  %v2781_v39 = vmul.f32 %v8497_v31, %v8497_v31  ;;  %v5431_v26 = vld [vmem:[%s9046_s15 + $0x1a4] sm:$0xf0]  ;;  %v5277_v27 = vld [vmem:[%s9046_s15 + $0x58] sm:$0xf] }
 0x257   :  { %v2760_v35 = vmul.f32 %v2759_v53, %v8418_v0  ;;  %v2705_v41 = vmul.f32 %v2704_v52, %v8476_v14  ;;  %v2695_v63 = vand.u32 2147483648, %v8494_v30  ;;  %v2716_v57 = vmul.f32 %v2715_v10, %v8476_v14  ;;  %v5901_v53 = vld [vmem:[%s9046_s15 + $0x68] sm:$0xf0]  ;;  %v5517_v52 = vld [vmem:[%s9046_s15 + $0x238] sm:$0xf] }
 0x258   :  { %v2750_v44 = vadd.f32 0.18741608, %v2749_v38  ;;  %v8527_v45 = vmin.f32 %v2781_v39, 16.0  ;;  %v8532_v25 = vadd.f32 1.1283791, %v2671_v60  ;;  %vm8540_vm3 = vcmp.eq.f32.partialorder %v2693_v54, 8.507059e+37 }
 0x259   :  { %v2761_v48 = vadd.f32 0.4994258, %v2760_v35  ;;  %v2706_v56 = vadd.f32 0.0036580483, %v2705_v41  ;;  %v2717_v3 = vadd.f32 0.014752088, %v2716_v57  ;;  %vm2689_vm5 = vweird.f32 %v8494_v30 }
 0x25a   :  { %v2751_v61 = vmul.f32 %v2750_v44, %v8418_v0  ;;  %v2783_v4 = vmul.f32 2.1237322e-06, %v8527_v45  ;;  %v2794_v22 = vmul.f32 3.8918573e-05, %v8527_v45  ;;  %v2696_v9 = vor.u32 1.1754944e-38, %v2695_v63 }
 0x25b   :  { %v2762_v1 = vmul.f32 %v2761_v48, %v8418_v0  ;;  %v2707_v2 = vmul.f32 %v2706_v56, %v8476_v14  ;;  %v5919_v0 = vld [vmem:[%s9046_s15 + $0xfc] sm:$0xf]  ;;  %v2718_v20 = vmul.f32 %v2717_v3, %v8476_v14  ;;  %v5914_v60 = vld [vmem:[%s9046_s15 + $0xd4] sm:$0xf]  ;;  %v5339_v38 = vld [vmem:[%s9046_s15 + $0xe4] sm:$0xf0]  ;;  %v5434_v49 = vor.u32 %v5938_v18, %v5431_v26 }
 0x25c   :  { %v6016_v50 = vpop.eup %6015  ;;  %v2784_v16 = vadd.f32 0.00028619796, %v2783_v4  ;;  %v2795_v17 = vadd.f32 0.001143296, %v2794_v22  ;;  %v8556_v21 = vadd.f32 1.1283791, %v2751_v61  ;;  %v5362_v55 = vor.u32 %v5919_v0, %v5359_v13 }
 0x25d   :  { %v2685_v7 = vmul.f32 %v6016_v50, %v8494_v30  ;;  %v8544_v12 = vadd.f32 1.0, %v2762_v1  ;;  %v2708_v23 = vadd.f32 0.05243302, %v2707_v2  ;;  %vm2690_vm4 = vweird.f32 %v6016_v50  ;;  %3390 = vmatpush.bf16.msra.mxu0 %v5434_v49  ;;  %v5411_v56 = vld [vmem:[%s9046_s15 + $0x17c] sm:$0xf0] }
 0x25e   :  { %v2719_v24 = vadd.f32 0.112945676, %v2718_v20  ;;  %v2785_v46 = vmul.f32 %v2784_v16, %v8527_v45  ;;  %v2796_v32 = vmul.f32 %v2795_v17, %v8527_v45  ;;  %3428 = vmatpush.bf16.msra.mxu2 %v5362_v55  ;;  %vm8587_vm6 = vmor %vm2689_vm5, %vm2690_vm4  ;;  %v5278_v39 = vor.u32 %v5901_v53, %v5277_v27  ;;  %v5257_v57 = vld [vmem:[%s9046_s15 + $0x30] sm:$0xf]  ;;  %v5956_v2 = vld [vmem:[%s9046_s15 + $0x220] sm:$0xf0] }
 0x25f   :  { %v2686_v62 = vsub.f32 1.0, %v2685_v7  ;;  %6017 = vrcp.f32 %v8544_v12  ;;  %v2773_v29 = vand.u32 2147483647, %v8544_v12  ;;  %v2709_v41 = vmul.f32 %v2708_v23, %v8476_v14  ;;  %v5909_v22 = vld [vmem:[%s9046_s15 + $0xac] sm:$0xf] }
 0x260   :  { %v2720_v36 = vmul.f32 %v2719_v24, %v8476_v14  ;;  %v2797_v40 = vadd.f32 0.014752088, %v2796_v32  ;;  %v2786_v10 = vadd.f32 0.0036580483, %v2785_v46  ;;  %v5518_v43 = vor.u32 %v5961_v33, %v5517_v52  ;;  %3404 = vmatpush.bf16.msrb.mxu3 %v5278_v39  ;;  %v5319_v7 = vld [vmem:[%s9046_s15 + $0xbc] sm:$0xf0] }
 0x261   :  { %v2687_v8 = vmul.f32 %v6016_v50, %v2686_v62  ;;  %v5342_v51 = vor.u32 %v5914_v60, %v5339_v38  ;;  %v2775_v58 = vand.u32 2147483648, %v8544_v12  ;;  %v2673_v15 = vmul.f32 %v8532_v25, %v8326_v59  ;;  %v5928_v17 = vld [vmem:[%s9046_s15 + $0x144] sm:$0xf]  ;;  %v5391_v24 = vld [vmem:[%s9046_s15 + $0x154] sm:$0xf0] }
 0x262   :  { %v2721_v54 = vadd.f32 0.4994258, %v2720_v36  ;;  %v2798_v48 = vmul.f32 %v2797_v40, %v8527_v45  ;;  %3414 = vmatpush.bf16.msra.mxu1 %v5518_v43  ;;  %v5414_v0 = vor.u32 %v5933_v37, %v5411_v56  ;;  %v5258_v13 = vor.u32 %v5896_v34, %v5257_v57  ;;  %v5237_v26 = vld [vmem:[%s9046_s15 + $0x8] sm:$0xf]  ;;  %v5891_v27 = vld [vmem:[%s9046_s15 + $0x18] sm:$0xf0] }
 0x263   :  { %v2688_v35 = vadd.f32 %v6016_v50, %v2687_v8  ;;  %3429 = vmatpush.bf16.msra.mxu2 %v5342_v51  ;;  %v2787_v59 = vmul.f32 %v2786_v10, %v8527_v45  ;;  %v5322_v23 = vor.u32 %v5909_v22, %v5319_v7  ;;  %v8650_v8 = vmul.f32 0.5, %v8368_v42  ;;  %v5477_v32 = vld [vmem:[%s9046_s15 + $0x1e8] sm:$0xf]  ;;  %v5951_v55 = vld [vmem:[%s9046_s15 + $0x1f8] sm:$0xf0] }
 0x264   :  { %v2722_v3 = vmul.f32 %v2721_v54, %v8476_v14  ;;  %v2799_v4 = vadd.f32 0.112945676, %v2798_v48  ;;  %3391 = vmatpush.bf16.msra.mxu0 %v5414_v0  ;;  %3405 = vmatpush.bf16.msrb.mxu3 %v5258_v13  ;;  %v2776_v46 = vor.u32 1.1754944e-38, %v2775_v58  ;;  %vm2769_vm8 = vweird.f32 %v8544_v12  ;;  %v5904_v42 = vld [vmem:[%s9046_s15 + $0x84] sm:$0xf] }
 0x265   :  { %v8594_v63 = vpop.eup %6017  ;;  %v2692_v44 = vsel %vm8587_vm6, %v6016_v50, %v2688_v35  ;;  %v5497_v50 = vld [vmem:[%s9046_s15 + $0x210] sm:$0xf]  ;;  %v5299_v36 = vld [vmem:[%s9046_s15 + $0x94] sm:$0xf0]  ;;  %v2753_v60 = vmul.f32 %v8556_v21, %v8385_v5  ;;  %v2788_v38 = vadd.f32 0.05243302, %v2787_v59  ;;  %v5394_v35 = vor.u32 %v5928_v17, %v5391_v24 }
 0x266   :  { %v2697_v61 = vsel %vm8540_vm3, %v2696_v9, %v2692_v44  ;;  %v2765_v1 = vmul.f32 %v8594_v63, %v8544_v12  ;;  %v2710_v9 = vadd.f32 0.18741608, %v2709_v41  ;;  %v8631_v16 = vadd.f32 1.0, %v2722_v3  ;;  %v5964_v41 = vld [vmem:[%s9046_s15 + $0x264] sm:$0xf] }
 0x267   :  { %v2698_v20 = vmul.f32 %v2697_v61, %v2673_v15  ;;  %v2800_v25 = vmul.f32 %v2799_v4, %v8527_v45  ;;  %vm2770_vm7 = vweird.f32 %v8594_v63  ;;  %v5498_v62 = vor.u32 %v5956_v2, %v5497_v50  ;;  %3430 = vmatpush.bf16.msra.mxu2 %v5322_v23  ;;  %v5539_v40 = vld [vmem:[%s9046_s15 + $0x274] sm:$0xf0]  ;;  %v5457_v21 = vld [vmem:[%s9046_s15 + $0x1c0] sm:$0xf]  ;;  %v5946_v43 = vld [vmem:[%s9046_s15 + $0x1d0] sm:$0xf0] }
 0x268   :  { %v2766_v6 = vsub.f32 1.0, %v2765_v1  ;;  %6019 = vrcp.f32 %v8631_v16  ;;  %v2711_v52 = vmul.f32 %v2710_v9, %v8476_v14  ;;  %vm2771_vm9 = vmor %vm2769_vm8, %vm2770_vm7  ;;  %v5238_v14 = vor.u32 %v5891_v27, %v5237_v26  ;;  %3392 = vmatpush.bf16.msra.mxu0 %v5394_v35  ;;  %v5899_v12 = vld [vmem:[%s9046_s15 + $0x5c] sm:$0xf]  ;;  %v5519_v58 = vld [vmem:[%s9046_s15 + $0x24c] sm:$0xf0] }
 0x269   :  { %v2801_v33 = vadd.f32 0.4994258, %v2800_v25  ;;  %3415 = vmatpush.bf16.msra.mxu1 %v5498_v62  ;;  %v5223_v49 = vclamps-f32 %v2698_v20, 1.0  ;;  %vm2774_vm10 = vcmp.eq.f32.partialorder %v2773_v29, 8.507059e+37  ;;  %v5478_v10 = vor.u32 %v5951_v55, %v5477_v32  ;;  %v5279_v29 = vld [vmem:[%s9046_s15 + $0x6c] sm:$0xf0] }
 0x26a   :  { %v2767_v18 = vmul.f32 %v8594_v63, %v2766_v6  ;;  %3406 = vmatpush.bf16.msrb.mxu3 %v5238_v14  ;;  %v5302_v39 = vor.u32 %v5904_v42, %v5299_v36  ;;  %v5542_v48 = vor.u32 %v5964_v41, %v5539_v40  ;;  %v2733_v56 = vand.u32 2147483647, %v8631_v16  ;;  %v5959_v1 = vld [vmem:[%s9046_s15 + $0x23c] sm:$0xf]  ;;  %v5437_v3 = vld [vmem:[%s9046_s15 + $0x198] sm:$0xf] }
 0x26b   :  { %v2802_v5 = vmul.f32 %v2801_v33, %v8527_v45  ;;  %v2789_v57 = vmul.f32 %v2788_v38, %v8527_v45  ;;  %v5458_v34 = vor.u32 %v5946_v43, %v5457_v21  ;;  %v5282_v61 = vor.u32 %v5899_v12, %v5279_v29  ;;  %v5941_v4 = vld [vmem:[%s9046_s15 + $0x1a8] sm:$0xf0]  ;;  %v5385_v22 = vld [vmem:[%s9046_s15 + $0x128] sm:$0xf]  ;;  %v5927_v7 = vld [vmem:[%s9046_s15 + $0x138] sm:$0xf0] }
 0x26c   :  { %v2768_v53 = vadd.f32 %v8594_v63, %v2767_v18  ;;  %3431 = vmatpush.bf16.msra.mxu2 %v5302_v39  ;;  %v2821_v50 = vadd.f32 1.0, %v5223_v49  ;;  %3441 = vmatpush.bf16.msrb.mxu0 %v5542_v48  ;;  %v5894_v6 = vld [vmem:[%s9046_s15 + $0x34] sm:$0xf]  ;;  %v5522_v13 = vor.u32 %v5959_v1, %v5519_v58  ;;  %v5259_v20 = vld [vmem:[%s9046_s15 + $0x44] sm:$0xf0]  ;;  %v2735_v25 = vand.u32 2147483648, %v8631_v16 }
 0x26d   :  { %v8696_v44 = vadd.f32 1.0, %v2802_v5  ;;  %3416 = vmatpush.bf16.msra.mxu1 %v5478_v10  ;;  %v5954_v59 = vld [vmem:[%s9046_s15 + $0x214] sm:$0xf]  ;;  %v2790_v17 = vadd.f32 0.18741608, %v2789_v57  ;;  %v5438_v18 = vor.u32 %v5941_v4, %v5437_v3  ;;  %v5262_v62 = vor.u32 %v5894_v6, %v5259_v20 }
 0x26e   :  { %v2772_v30 = vsel %vm2771_vm9, %v8594_v63, %v2768_v53  ;;  %v8694_v63 = vadd.f32 1.1283791, %v2711_v52  ;;  %v8698_v51 = vpop.eup %6019  ;;  %v5499_v23 = vld [vmem:[%s9046_s15 + $0x224] sm:$0xf0]  ;;  %v2825_v24 = vmul.f32 %v2821_v50, %v8609_v47  ;;  %v5936_v32 = vld [vmem:[%s9046_s15 + $0x180] sm:$0xf0]  ;;  %v5386_v55 = vor.u32 %v5927_v7, %v5385_v22 }
 0x26f   :  { %v2777_v54 = vsel %vm2774_vm10, %v2776_v46, %v2772_v30  ;;  %v2725_v15 = vmul.f32 %v8698_v51, %v8631_v16  ;;  %6021 = vrcp.f32 %v8696_v44  ;;  %vm2730_vm11 = vweird.f32 %v8698_v51  ;;  %v5417_v46 = vld [vmem:[%s9046_s15 + $0x170] sm:$0xf]  ;;  %v5365_v47 = vld [vmem:[%s9046_s15 + $0x100] sm:$0xf]  ;;  %v5922_v36 = vld [vmem:[%s9046_s15 + $0x110] sm:$0xf0] }
 0x270   :  { %v2778_v37 = vmul.f32 %v2777_v54, %v2753_v60  ;;  %3432 = vmatpush.bf16.msra.mxu2 %v5282_v61  ;;  %3442 = vmatpush.bf16.msrb.mxu0 %v5522_v13  ;;  %v5502_v53 = vor.u32 %v5954_v59, %v5499_v23  ;;  %v5239_v52 = vld [vmem:[%s9046_s15 + $0x1c] sm:$0xf0]  ;;  %vm2729_vm12 = vweird.f32 %v8631_v16  ;;  %v5949_v60 = vld [vmem:[%s9046_s15 + $0x1ec] sm:$0xf]  ;;  %v2736_v14 = vor.u32 1.1754944e-38, %v2735_v25 }
 0x271   :  { %v2726_v0 = vsub.f32 1.0, %v2725_v15  ;;  %3417 = vmatpush.bf16.msra.mxu1 %v5458_v34  ;;  %v5479_v38 = vld [vmem:[%s9046_s15 + $0x1fc] sm:$0xf0]  ;;  %vm2731_vm13 = vmor %vm2729_vm12, %vm2730_vm11  ;;  %v2791_v41 = vmul.f32 %v2790_v17, %v8527_v45  ;;  %v5418_v16 = vor.u32 %v5936_v32, %v5417_v46  ;;  %vm2734_vm14 = vcmp.eq.f32.partialorder %v2733_v56, 8.507059e+37  ;;  %v5397_v5 = vld [vmem:[%s9046_s15 + $0x148] sm:$0xf] }
 0x272   :  { %v5225_v2 = vclamps-f32 %v2778_v37, 1.0  ;;  %v5931_v45 = vld [vmem:[%s9046_s15 + $0x158] sm:$0xf0]  ;;  %v5366_v54 = vor.u32 %v5922_v36, %v5365_v47  ;;  %v5345_v10 = vld [vmem:[%s9046_s15 + $0xd8] sm:$0xf]  ;;  %v5482_v43 = vor.u32 %v5949_v60, %v5479_v38  ;;  %v2713_v12 = vmul.f32 %v8694_v63, %v8447_v19 }
 0x273   :  { %v2727_v27 = vmul.f32 %v8698_v51, %v2726_v0  ;;  %v5917_v39 = vld [vmem:[%s9046_s15 + $0xe8] sm:$0xf0]  ;;  %v5944_v37 = vld [vmem:[%s9046_s15 + $0x1c4] sm:$0xf]  ;;  %v5459_v48 = vld [vmem:[%s9046_s15 + $0x1d4] sm:$0xf0]  ;;  %v5398_v57 = vor.u32 %v5931_v45, %v5397_v5  ;;  %vm2809_vm1 = vweird.f32 %v8696_v44 }
 0x274   :  { %v2823_v9 = vadd.f32 1.0, %v5225_v2  ;;  %3433 = vmatpush.bf16.msra.mxu2 %v5262_v62  ;;  %3443 = vmatpush.bf16.msrb.mxu0 %v5502_v53  ;;  %v2815_v56 = vand.u32 2147483648, %v8696_v44  ;;  %v2813_v19 = vand.u32 2147483647, %v8696_v44  ;;  %v5346_v63 = vor.u32 %v5917_v39, %v5345_v10  ;;  %v5325_v1 = vld [vmem:[%s9046_s15 + $0xb0] sm:$0xf] }
 0x275   :  { %v2728_v42 = vadd.f32 %v8698_v51, %v2727_v27  ;;  %v6022_v35 = vpop.eup %6021  ;;  %3418 = vmatpush.bf16.msra.mxu1 %v5438_v18  ;;  %v5462_v58 = vor.u32 %v5944_v37, %v5459_v48  ;;  %v5912_v2 = vld [vmem:[%s9046_s15 + $0xc0] sm:$0xf0]  ;;  %v5939_v15 = vld [vmem:[%s9046_s15 + $0x19c] sm:$0xf]  ;;  %v5439_v3 = vld [vmem:[%s9046_s15 + $0x1ac] sm:$0xf0] }
 0x276   :  { %v2827_v26 = vmul.f32 %v2823_v9, %v8650_v8  ;;  %v5889_v8 = vld [vmem:[%s9046_s15 + $0xc] sm:$0xf]  ;;  %v2805_v30 = vmul.f32 %v6022_v35, %v8696_v44  ;;  %vm2810_vm15 = vweird.f32 %v6022_v35  ;;  %v2816_v4 = vor.u32 1.1754944e-38, %v2815_v56  ;;  %v5305_v0 = vld [vmem:[%s9046_s15 + $0x88] sm:$0xf] }
 0x277   :  { %v5242_v40 = vor.u32 %v5889_v8, %v5239_v52  ;;  %v2732_v49 = vsel %vm2731_vm13, %v8698_v51, %v2728_v42  ;;  %v2792_v51 = vadd.f32 1.1283791, %v2791_v41  ;;  %vm2811_vm2 = vmor %vm2809_vm1, %vm2810_vm15  ;;  %vm2814_vm3 = vcmp.eq.f32.partialorder %v2813_v19, 8.507059e+37  ;;  %v5907_v59 = vld [vmem:[%s9046_s15 + $0x98] sm:$0xf0] }
 0x278   :  { %v8755_v33 = vpack.c.bf16 %v2827_v26, %v2825_v24  ;;  %v2737_v21 = vsel %vm2734_vm14, %v2736_v14, %v2732_v49  ;;  %v2806_v29 = vsub.f32 1.0, %v2805_v30  ;;  %3444 = vmatpush.bf16.msrb.mxu0 %v5482_v43  ;;  %v5326_v9 = vor.u32 %v5912_v2, %v5325_v1  ;;  %v5419_v25 = vld [vmem:[%s9046_s15 + $0x184] sm:$0xf0]  ;;  %v5967_v26 = vld [vmem:[%s9046_s15 + $0x278] sm:$0xf0] }
 0x279   :  { %3419 = vmatpush.bf16.msra.mxu1 %v5418_v16  ;;  %3434 = vmatpush.bf16.msra.mxu2 %v5242_v40  ;;  %v2738_v34 = vmul.f32 %v2737_v21, %v2713_v12  ;;  %v2793_v7 = vmul.f32 %v2792_v51, %v8497_v31  ;;  %v5442_v13 = vor.u32 %v5939_v15, %v5439_v3  ;;  %v5934_v31 = vld [vmem:[%s9046_s15 + $0x174] sm:$0xf]  ;;  %v2654_v62 = vmul.f32 0.5, %v8428_v11  ;;  %v5545_v24 = vld [vmem:[%s9046_s15 + $0x268] sm:$0xf] }
 0x27a   :  { %3351 = vmatmul.bf16.vlgmr.msra.gmra.mxu3 %v8755_v33  ;;  %3379 = vmatmul.bf16.vlgmr.msrb.gmra.mxu2 %v8755_v33  ;;  %v2807_v61 = vmul.f32 %v6022_v35, %v2806_v29  ;;  %v5306_v23 = vor.u32 %v5907_v59, %v5305_v0  ;;  %v5422_v27 = vor.u32 %v5934_v31, %v5419_v25  ;;  %v2656_v46 = vmul.f32 0.5, %v8479_v28  ;;  %v5902_v11 = vld [vmem:[%s9046_s15 + $0x70] sm:$0xf0]  ;;  %v5929_v47 = vld [vmem:[%s9046_s15 + $0x14c] sm:$0xf] }
 0x27b   :  { %3455 = vmatpush.bf16.msra.mxu3 %v5386_v55  ;;  %v5224_v22 = vclamps-f32 %v2738_v34, 1.0  ;;  %v5285_v55 = vld [vmem:[%s9046_s15 + $0x60] sm:$0xf]  ;;  %v5546_v28 = vor.u32 %v5967_v26, %v5545_v24  ;;  %v5962_v38 = vld [vmem:[%s9046_s15 + $0x250] sm:$0xf0] }
 0x27c   :  { %v2808_v50 = vadd.f32 %v6022_v35, %v2807_v61  ;;  %3445 = vmatpush.bf16.msrb.mxu0 %v5462_v58  ;;  %v5399_v53 = vld [vmem:[%s9046_s15 + $0x15c] sm:$0xf0]  ;;  %v5286_v42 = vor.u32 %v5902_v11, %v5285_v55  ;;  %v5897_v14 = vld [vmem:[%s9046_s15 + $0x48] sm:$0xf0]  ;;  %v5505_v49 = vld [vmem:[%s9046_s15 + $0x218] sm:$0xf] }
 0x27d   :  { %3420 = vmatpush.bf16.msra.mxu1 %v5398_v57  ;;  %v2822_v17 = vadd.f32 1.0, %v5224_v22  ;;  %v5525_v36 = vld [vmem:[%s9046_s15 + $0x240] sm:$0xf]  ;;  %v5402_v41 = vor.u32 %v5929_v47, %v5399_v53  ;;  %v5957_v30 = vld [vmem:[%s9046_s15 + $0x228] sm:$0xf0] }
 0x27e   :  { %v2812_v6 = vsel %vm2811_vm2, %v6022_v35, %v2808_v50  ;;  %v5265_v35 = vld [vmem:[%s9046_s15 + $0x38] sm:$0xf]  ;;  %v5526_v16 = vor.u32 %v5962_v38, %v5525_v36  ;;  %v5245_v5 = vld [vmem:[%s9046_s15 + $0x10] sm:$0xf]  ;;  %v5892_v45 = vld [vmem:[%s9046_s15 + $0x20] sm:$0xf0]  ;;  %v5506_v21 = vor.u32 %v5957_v30, %v5505_v49 }
 0x27f   :  { %3456 = vmatpush.bf16.msra.mxu3 %v5366_v54  ;;  %v2817_v44 = vsel %vm2814_vm3, %v2816_v4, %v2812_v6  ;;  %v2826_v8 = vmul.f32 %v2822_v17, %v2654_v62  ;;  %v5266_v40 = vor.u32 %v5897_v14, %v5265_v35  ;;  %v5246_v54 = vor.u32 %v5892_v45, %v5245_v5  ;;  %v5485_v10 = vld [vmem:[%s9046_s15 + $0x1f0] sm:$0xf]  ;;  %v5952_v39 = vld [vmem:[%s9046_s15 + $0x200] sm:$0xf0]  ;;  %v5465_v12 = vld [vmem:[%s9046_s15 + $0x1c8] sm:$0xf] }
 0x280   :  { %v2818_v20 = vmul.f32 %v2817_v44, %v2793_v7  ;;  %3446 = vmatpush.bf16.msrb.mxu0 %v5442_v13  ;;  %v5486_v43 = vor.u32 %v5952_v39, %v5485_v10  ;;  %v5947_v29 = vld [vmem:[%s9046_s15 + $0x1d8] sm:$0xf0]  ;;  %v5445_v48 = vld [vmem:[%s9046_s15 + $0x1a0] sm:$0xf]  ;;  %v5942_v51 = vld [vmem:[%s9046_s15 + $0x1b0] sm:$0xf0] }
 0x281   :  { %v5466_v37 = vor.u32 %v5947_v29, %v5465_v12  ;;  %v5446_v56 = vor.u32 %v5942_v51, %v5445_v48  ;;  %v5425_v57 = vld [vmem:[%s9046_s15 + $0x178] sm:$0xf]  ;;  %v5405_v61 = vld [vmem:[%s9046_s15 + $0x150] sm:$0xf]  ;;  %v5932_v19 = vld [vmem:[%s9046_s15 + $0x160] sm:$0xf0] }
 0x282   :  { %v5226_v18 = vclamps-f32 %v2818_v20, 1.0  ;;  %v5994_v13 = vld [vmem:[#allocation12] ss:$0 sm:$0xff]  ;;  %v3545_v36 = vld [vmem:[#allocation13 + $0x40] sm:$0xff]  ;;  %v3538_v38 = vld [vmem:[#allocation13 + $0x8] sm:$0xff] }
 0x283   :  { %3457 = vmatpush.bf16.msra.mxu3 %v5346_v63  ;;  %v5406_v63 = vor.u32 %v5932_v19, %v5405_v61  ;;  %v3540_v35 = vld [vmem:[#allocation13 + $0x18] sm:$0xff] }
 0x284   :  { %v2824_v32 = vadd.f32 1.0, %v5226_v18  ;;  %3447 = vmatpush.bf16.msrb.mxu0 %v5422_v27  ;;  %v3544_v14 = vld [vmem:[#allocation13 + $0x38] sm:$0xff] }
 0x286   :  { %v2828_v52 = vmul.f32 %v2824_v32, %v2656_v46 }
 0x287   :  { %3458 = vmatpush.bf16.msra.mxu3 %v5326_v9 }
 0x288   :  { %v2830_v60 = vpack.c.bf16 %v2828_v52, %v2826_v8  ;;  %3448 = vmatpush.bf16.msrb.mxu0 %v5402_v41  ;;  %v3546_v41 = vld [vmem:[#allocation13 + $0x48] sm:$0xff] }
 0x28a   :  { %3407 = vmatmul.bf16.vlgmr.msrb.gmra.mxu3 %v8755_v33  ;;  %3435 = vmatmul.bf16.vlgmr.msra.gmra.mxu2 %v8755_v33 }
 0x28b   :  { %3459 = vmatpush.bf16.msra.mxu3 %v5306_v23  ;;  %3365 = vmatmul.bf16.vlgmr.msrb.gmra.mxu1 %v2830_v60 }
 0x28c   :  { %3393 = vmatmul.bf16.vlgmr.msra.gmra.mxu0 %v2830_v60  ;;  %3469 = vmatpush.bf16.msrb.mxu1 %v5546_v28  ;;  %v3542_v28 = vld [vmem:[#allocation13 + $0x28] sm:$0xff] }
 0x28d   :  { %3567 = vmatpush.msrb.mxu2 %v3542_v28 }
 0x28f   :  { %3460 = vmatpush.bf16.msra.mxu3 %v5286_v42  ;;  %v3543_v42 = vld [vmem:[#allocation13 + $0x30] sm:$0xff] }
 0x290   :  { %3470 = vmatpush.bf16.msrb.mxu1 %v5526_v16  ;;  %3590 = vmatpush.msra.mxu0 %v3543_v42  ;;  %v3539_v16 = vld [vmem:[#allocation13 + $0x10] sm:$0xff] }
 0x292   :  { %3591 = vmatpush.msra.mxu0 %v3538_v38 }
 0x293   :  { %3461 = vmatpush.bf16.msra.mxu3 %v5266_v40  ;;  %v3541_v40 = vld [vmem:[#allocation13 + $0x20] sm:$0xff] }
 0x294   :  { %3471 = vmatpush.bf16.msrb.mxu1 %v5506_v21 }
 0x297   :  { %3462 = vmatpush.bf16.msra.mxu3 %v5246_v54 }
 0x298   :  { %3472 = vmatpush.bf16.msrb.mxu1 %v5486_v43 }
 0x29a   :  { %3463 = vmatmul.bf16.vlgmr.msra.gmra.mxu3 %v8755_v33  ;;  %v5937_v33 = vld [vmem:[%s9046_s15 + $0x188] sm:$0xf0] }
 0x29b   :  { %3421 = vmatmul.bf16.vlgmr.msra.gmra.mxu1 %v2830_v60  ;;  %v5426_v34 = vor.u32 %v5937_v33, %v5425_v57  ;;  %3636 = vmatpush.msrb.mxu3 %v3545_v36 }
 0x29c   :  { %3449 = vmatmul.bf16.vlgmr.msrb.gmra.mxu0 %v2830_v60  ;;  %3473 = vmatpush.bf16.msrb.mxu1 %v5466_v37 }
 0x29d   :  { %3637 = vmatpush.msrb.mxu3 %v3540_v35  ;;  %3659 = vmatpush.msrb.mxu0 %v3546_v41  ;;  %v5975_v35 = vld [vmem:[%s9038_s7 + $0x38] sm:$0xff] }
 0x29f   :  { %3660 = vmatpush.msrb.mxu0 %v3541_v40 }
 0x2a0   :  { %3474 = vmatpush.bf16.msrb.mxu1 %v5446_v56 }
 0x2a4   :  { %3475 = vmatpush.bf16.msrb.mxu1 %v5426_v34 }
 0x2a8   :  { %3476 = vmatpush.bf16.msrb.mxu1 %v5406_v63 }
 0x2ab   :  { %3477 = vmatmul.bf16.vlgmr.msrb.gmra.mxu1 %v2830_v60  ;;  %v3537_v60 = vld [vmem:[#allocation13] sm:$0xff] }
 0x2ac   :  { %3568 = vmatpush.msrb.mxu2 %v3537_v60  ;;  %3847 = vmatpush.bf16.msra.mxu1 %v5975_v35 }
 0x2ae   :  { %3613 = vmatpush.msra.mxu2 %v3544_v14 }
 0x2b0   :  { %3614 = vmatpush.msra.mxu2 %v3539_v16 }
 0x2fd   :  { %v3352_v1 = vpop.f32.mrf.mxu3 }
 0x305   :  { %v3354_v58 = vpop.f32.mrf.mxu3 }
 0x308   :  { %v3366_v50 = vpop.f32.mrf.mxu1 }
 0x309   :  { %v8900_v2 = vadd.f32 %v3366_v50, %v3352_v1 }
 0x30d   :  { %v3408_v4 = vpop.f32.mrf.mxu3 }
 0x310   :  { %v3368_v15 = vpop.f32.mrf.mxu1 }
 0x311   :  { %v8902_v3 = vadd.f32 %v3368_v15, %v3354_v58  ;;  %v3394_v15 = vpop.f32.mrf.mxu0 }
 0x315   :  { %v3410_v6 = vpop.f32.mrf.mxu3 }
 0x318   :  { %v3422_v22 = vpop.f32.mrf.mxu1 }
 0x319   :  { %v8904_v7 = vadd.f32 %v3422_v22, %v3408_v4  ;;  %v3380_v4 = vpop.f32.mrf.mxu2  ;;  %v3396_v22 = vpop.f32.mrf.mxu0 }
 0x31d   :  { %v3464_v0 = vpop.f32.mrf.mxu3 }
 0x320   :  { %v3424_v44 = vpop.f32.mrf.mxu1 }
 0x321   :  { %v8906_v9 = vadd.f32 %v3424_v44, %v3410_v6  ;;  %v3382_v6 = vpop.f32.mrf.mxu2  ;;  %v3450_v44 = vpop.f32.mrf.mxu0 }
 0x322   :  { %v3397_v60 = vadd.f32 %v3396_v22, %v3382_v6  ;;  %v5970_v6 = vld [vmem:[%s9038_s7 + $0x10] sm:$0xff] }
 0x325   :  { %v3466_v17 = vpop.f32.mrf.mxu3 }
 0x328   :  { %v3478_v20 = vpop.f32.mrf.mxu1 }
 0x329   :  { %v3479_v59 = vadd.f32 %v3478_v20, %v3464_v0  ;;  %v3436_v0 = vpop.f32.mrf.mxu2 }
 0x32b   :  { %v3487_v31 = vadd.f32 %v5994_v13, %v3479_v59 }
 0x32d   :  { %v3489_v25 = vsel %vm1399_vm0, %v3487_v31, -inf }
 0x32e   :  { %3490 = vmax.xlane.f32.xlu0 %v3489_v25 }
 0x330   :  { %v3480_v18 = vpop.f32.mrf.mxu1 }
 0x331   :  { %v3481_v62 = vadd.f32 %v3480_v18, %v3466_v17  ;;  %v3438_v20 = vpop.f32.mrf.mxu2  ;;  %v5995_v17 = vld [vmem:[%s9037_s6] ss:$0 sm:$0xff] }
 0x333   :  { %v3488_v23 = vadd.f32 %v5994_v13, %v3481_v62  ;;  %v3452_v13 = vpop.f32.mrf.mxu0 }
 0x334   :  { %v3453_v40 = vadd.f32 %v3452_v13, %v3438_v20 }
 0x335   :  { %v3492_v24 = vsel %vm1399_vm0, %v3488_v23, -inf }
 0x336   :  { %3493 = vmax.xlane.f32.xlu0 %v3492_v24 }
 0x3a1   :  { %v3491_v26 = vpop.xlane.xlu0 %3490 }
 0x3a2   :  { %v3495_v27 = vsub.f32 %v3487_v31, %v3491_v26  ;;  %v3395_v26 = vadd.f32 %v3394_v15, %v3380_v4 }
 0x3a4   :  { %v3497_v46 = vmul.f32 1.442695, %v3495_v27 }
 0x3a6   :  { %6023 = vpow2.f32 %v3497_v46 }
 0x3a9   :  { %v3494_v32 = vpop.xlane.xlu0 %3493 }
 0x3aa   :  { %v3496_v55 = vsub.f32 %v3488_v23, %v3494_v32 }
 0x3ac   :  { %v6024_v11 = vpop.eup %6023  ;;  %v3499_v47 = vmul.f32 1.442695, %v3496_v55 }
 0x3ad   :  { %v3501_v53 = vsel %vm1399_vm0, %v6024_v11, 0.0 }
 0x3ae   :  { %6025 = vpow2.f32 %v3499_v47  ;;  %3502 = vadd.xlane.f32.xlu1 %v3501_v53 }
 0x3b4   :  { %v6026_v8 = vpop.eup %6025 }
 0x3b5   :  { %v3504_v52 = vsel %vm1399_vm0, %v6026_v8, 0.0 }
 0x3b6   :  { %3505 = vadd.xlane.f32.xlu1 %v3504_v52 }
 0x421   :  { %v3503_v49 = vpop.xlane.xlu1 %3502 }
 0x422   :  { %6027 = vrcp.f32 %v3503_v49  ;;  %v3518_v54 = vand.u32 2147483648, %v3503_v49  ;;  %v3516_v39 = vand.u32 2147483647, %v3503_v49  ;;  %vm3512_vm5 = vweird.f32 %v3503_v49 }
 0x424   :  { %v3519_v29 = vor.u32 1.1754944e-38, %v3518_v54  ;;  %vm3517_vm7 = vcmp.eq.f32.partialorder %v3516_v39, 8.507059e+37 }
 0x428   :  { %v6028_v30 = vpop.eup %6027 }
 0x429   :  { %v3508_v5 = vmul.f32 %v6028_v30, %v3503_v49  ;;  %v3506_v45 = vpop.xlane.xlu1 %3505  ;;  %vm3513_vm4 = vweird.f32 %v6028_v30 }
 0x42a   :  { %6029 = vrcp.f32 %v3506_v45  ;;  %vm3514_vm6 = vmor %vm3512_vm5, %vm3513_vm4  ;;  %v3533_v33 = vand.u32 2147483648, %v3506_v45  ;;  %v3531_v61 = vand.u32 2147483647, %v3506_v45  ;;  %vm3527_vm9 = vweird.f32 %v3506_v45 }
 0x42b   :  { %v3509_v21 = vsub.f32 1.0, %v3508_v5  ;;  %v5974_v5 = vld [vmem:[%s9038_s7 + $0x30] sm:$0xff] }
 0x42c   :  { %v3534_v63 = vor.u32 1.1754944e-38, %v3533_v33  ;;  %vm3532_vm11 = vcmp.eq.f32.partialorder %v3531_v61, 8.507059e+37  ;;  %3848 = vmatpush.bf16.msra.mxu1 %v5974_v5 }
 0x42d   :  { %v3510_v10 = vmul.f32 %v6028_v30, %v3509_v21 }
 0x42f   :  { %v3511_v43 = vadd.f32 %v6028_v30, %v3510_v10 }
 0x430   :  { %v6030_v12 = vpop.eup %6029 }
 0x431   :  { %v3515_v37 = vsel %vm3514_vm6, %v6028_v30, %v3511_v43  ;;  %v3523_v48 = vmul.f32 %v6030_v12, %v3506_v45  ;;  %vm3528_vm8 = vweird.f32 %v6030_v12 }
 0x432   :  { %v3520_v51 = vsel %vm3517_vm7, %v3519_v29, %v3515_v37  ;;  %vm3529_vm10 = vmor %vm3527_vm9, %vm3528_vm8 }
 0x433   :  { %v3524_v56 = vsub.f32 1.0, %v3523_v48  ;;  %v3521_v57 = vmul.f32 %v6024_v11, %v3520_v51  ;;  %v3451_v11 = vadd.f32 %v3450_v44, %v3436_v0  ;;  %v5972_v51 = vld [vmem:[%s9038_s7 + $0x20] sm:$0xff] }
 0x435   :  { %v3525_v34 = vmul.f32 %v6030_v12, %v3524_v56  ;;  %5547 = vmatmul.msk.f32.vlgmr.msrb.gmra.mxu2 %vm1399_vm0, %v3521_v57  ;;  %5549 = vmatmul.msk.f32.vlgmr.msra.gmra.mxu0 %vm1399_vm0, %v3521_v57 }
 0x436   :  { %5553 = vmatmul.msk.f32.vlgmr.msrb.gmra.mxu3 %vm1399_vm0, %v3521_v57 }
 0x437   :  { %v3526_v19 = vadd.f32 %v6030_v12, %v3525_v34 }
 0x439   :  { %v3530_v1 = vsel %vm3529_vm10, %v6030_v12, %v3526_v19  ;;  %v5973_v12 = vld [vmem:[%s9038_s7 + $0x28] sm:$0xff]  ;;  %v5971_v19 = vld [vmem:[%s9038_s7 + $0x18] sm:$0xff] }
 0x43a   :  { %v3535_v58 = vsel %vm3532_vm11, %v3534_v63, %v3530_v1  ;;  %3849 = vmatpush.bf16.msra.mxu1 %v5973_v12 }
 0x43b   :  { %v3536_v50 = vmul.f32 %v6026_v8, %v3535_v58 }
 0x43d   :  { %5548 = vmatmul.msk.f32.gmra.mxu2 %vm1399_vm0, %v3536_v50  ;;  %5550 = vmatmul.msk.f32.gmra.mxu0 %vm1399_vm0, %v3536_v50 }
 0x43e   :  { %5554 = vmatmul.msk.f32.gmra.mxu3 %vm1399_vm0, %v3536_v50  ;;  %3850 = vmatpush.bf16.msra.mxu1 %v5972_v51 }
 0x442   :  { %3851 = vmatpush.bf16.msra.mxu1 %v5971_v19 }
 0x445   :  { %5551 = vmatmul.msk.f32.vlgmr.msra.gmra.mxu2 %vm1399_vm0, %v3521_v57  ;;  %5555 = vmatmul.msk.f32.vlgmr.msrb.gmra.mxu0 %vm1399_vm0, %v3521_v57 }
 0x446   :  { %3852 = vmatpush.bf16.msra.mxu1 %v5970_v6  ;;  %v5996_v6 = vld [vmem:[#allocation7] ss:$0 sm:$0xff] }
 0x44d   :  { %5552 = vmatmul.msk.f32.gmra.mxu2 %vm1399_vm0, %v3536_v50  ;;  %5556 = vmatmul.msk.f32.gmra.mxu0 %vm1399_vm0, %v3536_v50 }
 0x4b2   :  { %v3593_v59 = vpop.f32.mrf.mxu0 }
 0x4b3   :  { %v3678_v32 = vmul.f32 %v3593_v59, %v3395_v26 }
 0x4b8   :  { %v3570_v31 = vpop.f32.mrf.mxu2 }
 0x4b9   :  { %v3674_v23 = vmul.f32 %v3570_v31, %v8900_v2  ;;  %v3639_v46 = vpop.f32.mrf.mxu3 }
 0x4ba   :  { %v3596_v25 = vpop.f32.mrf.mxu0  ;;  %v3686_v52 = vmul.f32 %v3639_v46, %v3451_v11 }
 0x4bb   :  { %v3679_v14 = vmul.f32 %v3596_v25, %v3397_v60 }
 0x4c0   :  { %v3573_v18 = vpop.f32.mrf.mxu2 }
 0x4c1   :  { %v3675_v28 = vmul.f32 %v3573_v18, %v8902_v3 }
 0x4c2   :  { %v3662_v62 = vpop.f32.mrf.mxu0 }
 0x4c3   :  { %v3672_v24 = vmul.f32 %v5995_v17, %v3662_v62 }
 0x4c5   :  { %v3676_v27 = vadd.f32 %v3674_v23, %v3672_v24 }
 0x4c7   :  { %v3680_v47 = vadd.f32 %v3678_v32, %v3676_v27  ;;  %v5968_v27 = vld [vmem:[%s9038_s7] sm:$0xff] }
 0x4c8   :  { %v3616_v55 = vpop.f32.mrf.mxu2 }
 0x4c9   :  { %v3682_v53 = vmul.f32 %v3616_v55, %v8904_v7  ;;  %v3642_v7 = vpop.f32.mrf.mxu3 }
 0x4ca   :  { %v3665_v8 = vpop.f32.mrf.mxu0  ;;  %v3687_v45 = vmul.f32 %v3642_v7, %v3453_v40 }
 0x4cb   :  { %v3684_v42 = vadd.f32 %v3682_v53, %v3680_v47  ;;  %v3673_v36 = vmul.f32 %v5995_v17, %v3665_v8  ;;  %v5969_v17 = vld [vmem:[%s9038_s7 + $0x8] sm:$0xff] }
 0x4cc   :  { %3853 = vmatpush.bf16.msra.mxu1 %v5969_v17 }
 0x4cd   :  { %v8928_v38 = vadd.f32 %v3686_v52, %v3684_v42  ;;  %v3677_v2 = vadd.f32 %v3675_v28, %v3673_v36 }
 0x4cf   :  { %v8934_v41 = vmul.f32 0.70710677, %v8928_v38  ;;  %v3681_v49 = vadd.f32 %v3679_v14, %v3677_v2 }
 0x4d0   :  { %v3619_v16 = vpop.f32.mrf.mxu2  ;;  %3854 = vmatpush.bf16.msra.mxu1 %v5968_v27 }
 0x4d1   :  { %v3694_v3 = vmul.f32 %v8934_v41, %v8934_v41  ;;  %v3683_v30 = vmul.f32 %v3619_v16, %v8906_v9 }
 0x4d3   :  { %v3695_v21 = vmin.f32 %v3694_v3, 16.0  ;;  %v3685_v54 = vadd.f32 %v3683_v30, %v3681_v49 }
 0x4d5   :  { %v3696_v10 = vmul.f32 2.1237322e-06, %v3695_v21  ;;  %v3707_v39 = vmul.f32 3.8918573e-05, %v3695_v21  ;;  %v8942_v43 = vadd.f32 %v3687_v45, %v3685_v54 }
 0x4d7   :  { %v3697_v29 = vadd.f32 0.00028619796, %v3696_v10  ;;  %v3708_v37 = vadd.f32 0.001143296, %v3707_v39  ;;  %v8948_v9 = vmul.f32 0.70710677, %v8942_v43 }
 0x4d9   :  { %v3709_v48 = vmul.f32 %v3708_v37, %v3695_v21  ;;  %v3734_v56 = vmul.f32 %v8948_v9, %v8948_v9  ;;  %v3698_v57 = vmul.f32 %v3697_v29, %v3695_v21 }
 0x4db   :  { %v3710_v33 = vadd.f32 0.014752088, %v3709_v48  ;;  %v3735_v34 = vmin.f32 %v3734_v56, 16.0  ;;  %v3699_v58 = vadd.f32 0.0036580483, %v3698_v57 }
 0x4dd   :  { %v3711_v61 = vmul.f32 %v3710_v33, %v3695_v21  ;;  %v3736_v63 = vmul.f32 2.1237322e-06, %v3735_v34  ;;  %v3747_v1 = vmul.f32 3.8918573e-05, %v3735_v34  ;;  %v3700_v13 = vmul.f32 %v3699_v58, %v3695_v21 }
 0x4de   :  { %v3691_v58 = vmul.f32 0.5, %v8942_v43 }
 0x4df   :  { %v3712_v50 = vadd.f32 0.112945676, %v3711_v61  ;;  %v3737_v15 = vadd.f32 0.00028619796, %v3736_v63  ;;  %v3748_v4 = vadd.f32 0.001143296, %v3747_v1 }
 0x4e0   :  { %v3701_v62 = vadd.f32 0.05243302, %v3700_v13  ;;  %v3690_v1 = vmul.f32 0.5, %v8928_v38 }
 0x4e1   :  { %v3713_v22 = vmul.f32 %v3712_v50, %v3695_v21  ;;  %v3738_v44 = vmul.f32 %v3737_v15, %v3735_v34  ;;  %v3749_v0 = vmul.f32 %v3748_v4, %v3735_v34 }
 0x4e2   :  { %v3702_v32 = vmul.f32 %v3701_v62, %v3695_v21 }
 0x4e3   :  { %v3714_v20 = vadd.f32 0.4994258, %v3713_v22  ;;  %v3739_v59 = vadd.f32 0.0036580483, %v3738_v44  ;;  %v3750_v31 = vadd.f32 0.014752088, %v3749_v0 }
 0x4e4   :  { %v3703_v8 = vadd.f32 0.18741608, %v3702_v32  ;;  %v5979_v32 = vld [vmem:[%s9040_s9 + $0x18] sm:$0xff] }
 0x4e5   :  { %v3715_v25 = vmul.f32 %v3714_v20, %v3695_v21  ;;  %v3751_v18 = vmul.f32 %v3750_v31, %v3735_v34  ;;  %v3740_v24 = vmul.f32 %v3739_v59, %v3735_v34  ;;  %3994 = vmatpush.bf16.msrb.mxu2 %v5979_v32 }
 0x4e6   :  { %v3704_v60 = vmul.f32 %v3703_v8, %v3695_v21 }
 0x4e7   :  { %v3716_v23 = vadd.f32 1.0, %v3715_v25  ;;  %v3752_v26 = vadd.f32 0.112945676, %v3751_v18  ;;  %v3741_v55 = vadd.f32 0.05243302, %v3740_v24 }
 0x4e8   :  { %v3705_v40 = vadd.f32 1.1283791, %v3704_v60 }
 0x4e9   :  { %6031 = vrcp.f32 %v3716_v23  ;;  %v3753_v46 = vmul.f32 %v3752_v26, %v3735_v34  ;;  %v3742_v28 = vmul.f32 %v3741_v55, %v3735_v34  ;;  %v3728_v35 = vand.u32 2147483648, %v3716_v23 }
 0x4ea   :  { %v3726_v7 = vand.u32 2147483647, %v3716_v23  ;;  %vm3722_vm12 = vweird.f32 %v3716_v23  ;;  %v3706_v10 = vmul.f32 %v3705_v40, %v8934_v41  ;;  %v5977_v40 = vld [vmem:[%s9040_s9 + $0x8] sm:$0xff] }
 0x4eb   :  { %v3754_v11 = vadd.f32 0.4994258, %v3753_v46  ;;  %v3743_v14 = vadd.f32 0.18741608, %v3742_v28  ;;  %v3729_v30 = vor.u32 1.1754944e-38, %v3728_v35 }
 0x4ec   :  { %vm3727_vm14 = vcmp.eq.f32.partialorder %v3726_v7, 8.507059e+37 }
 0x4ed   :  { %v3755_v47 = vmul.f32 %v3754_v11, %v3735_v34  ;;  %v3744_v5 = vmul.f32 %v3743_v14, %v3735_v34 }
 0x4ef   :  { %v6032_v53 = vpop.eup %6031  ;;  %v3756_v42 = vadd.f32 1.0, %v3755_v47  ;;  %v3745_v21 = vadd.f32 1.1283791, %v3744_v5 }
 0x4f0   :  { %v3718_v52 = vmul.f32 %v6032_v53, %v3716_v23  ;;  %vm3723_vm0 = vweird.f32 %v6032_v53 }
 0x4f1   :  { %6033 = vrcp.f32 %v3756_v42  ;;  %vm3724_vm13 = vmor %vm3722_vm12, %vm3723_vm0  ;;  %v3768_v12 = vand.u32 2147483648, %v3756_v42  ;;  %v3766_v48 = vand.u32 2147483647, %v3756_v42  ;;  %vm3762_vm1 = vweird.f32 %v3756_v42 }
 0x4f2   :  { %v3719_v36 = vsub.f32 1.0, %v3718_v52  ;;  %v3746_v33 = vmul.f32 %v3745_v21, %v8948_v9  ;;  %vm3986_vm0 = vcmask 523264  }
 0x4f3   :  { %v3769_v56 = vor.u32 1.1754944e-38, %v3768_v12  ;;  %vm3767_vm3 = vcmp.eq.f32.partialorder %v3766_v48, 8.507059e+37 }
 0x4f4   :  { %v3720_v2 = vmul.f32 %v6032_v53, %v3719_v36 }
 0x4f6   :  { %v3721_v16 = vadd.f32 %v6032_v53, %v3720_v2 }
 0x4f7   :  { %v6034_v3 = vpop.eup %6033 }
 0x4f8   :  { %v3725_v49 = vsel %vm3724_vm13, %v6032_v53, %v3721_v16  ;;  %v3758_v45 = vmul.f32 %v6034_v3, %v3756_v42  ;;  %vm3763_vm15 = vweird.f32 %v6034_v3  ;;  %v5978_v42 = vld [vmem:[%s9040_s9 + $0x10] sm:$0xff] }
 0x4f9   :  { %v3730_v54 = vsel %vm3727_vm14, %v3729_v30, %v3725_v49  ;;  %vm3764_vm2 = vmor %vm3762_vm1, %vm3763_vm15  ;;  %3995 = vmatpush.bf16.msrb.mxu2 %v5978_v42  ;;  %v5997_v42 = vld [vmem:[#allocation9] ss:$0 sm:$0xff] }
 0x4fa   :  { %v3759_v39 = vsub.f32 1.0, %v3758_v45  ;;  %v3731_v29 = vmul.f32 %v3730_v54, %v3706_v10  ;;  %v5976_v54 = vld [vmem:[%s9040_s9] sm:$0xff] }
 0x4fc   :  { %v3760_v37 = vmul.f32 %v6034_v3, %v3759_v39  ;;  %v5557_v57 = vclamps-f32 %v3731_v29, 1.0 }
 0x4fd   :  { %3996 = vmatpush.bf16.msrb.mxu2 %v5977_v40 }
 0x4fe   :  { %v3761_v51 = vadd.f32 %v6034_v3, %v3760_v37  ;;  %v3774_v63 = vadd.f32 1.0, %v5557_v57 }
 0x500   :  { %v3765_v34 = vsel %vm3764_vm2, %v6034_v3, %v3761_v51  ;;  %v3776_v15 = vmul.f32 %v3774_v63, %v3690_v1 }
 0x501   :  { %v3770_v61 = vsel %vm3767_vm3, %v3769_v56, %v3765_v34  ;;  %3997 = vmatpush.bf16.msrb.mxu2 %v5976_v54 }
 0x502   :  { %v3771_v19 = vmul.f32 %v3770_v61, %v3746_v33 }
 0x504   :  { %v5558_v41 = vclamps-f32 %v3771_v19, 1.0 }
 0x506   :  { %v3775_v50 = vadd.f32 1.0, %v5558_v41 }
 0x508   :  { %v3777_v4 = vmul.f32 %v3775_v50, %v3691_v58 }
 0x50a   :  { %v3778_v22 = vpack.c.bf16 %v3777_v4, %v3776_v15 }
 0x50c   :  { %3855 = vmatmul.bf16.vlgmr.msra.gmra.mxu1 %v3778_v22 }
 0x589   :  { %v3856_v44 = vpop.f32.mrf.mxu1 }
 0x58a   :  { %v8971_v0 = vadd.f32 %v5996_v6, %v3856_v44 }
 0x58c   :  { %v8974_v9 = vmul.f32 0.70710677, %v8971_v0 }
 0x58e   :  { %v3865_v13 = vmul.f32 %v8974_v9, %v8974_v9 }
 0x590   :  { %v3866_v20 = vmin.f32 %v3865_v13, 16.0 }
 0x591   :  { %v3858_v59 = vpop.f32.mrf.mxu1 }
 0x592   :  { %v3867_v38 = vmul.f32 2.1237322e-06, %v3866_v20  ;;  %v3878_v31 = vmul.f32 3.8918573e-05, %v3866_v20  ;;  %v8978_v43 = vadd.f32 %v5996_v6, %v3858_v59 }
 0x594   :  { %v3868_v25 = vadd.f32 0.00028619796, %v3867_v38  ;;  %v3879_v17 = vadd.f32 0.001143296, %v3878_v31  ;;  %v8981_v18 = vmul.f32 0.70710677, %v8978_v43 }
 0x596   :  { %v3880_v62 = vmul.f32 %v3879_v17, %v3866_v20  ;;  %v3905_v23 = vmul.f32 %v8981_v18, %v8981_v18  ;;  %v3869_v24 = vmul.f32 %v3868_v25, %v3866_v20 }
 0x598   :  { %v3881_v26 = vadd.f32 0.014752088, %v3880_v62  ;;  %v3906_v27 = vmin.f32 %v3905_v23, 16.0  ;;  %v3870_v47 = vadd.f32 0.0036580483, %v3869_v24 }
 0x59a   :  { %v3882_v46 = vmul.f32 %v3881_v26, %v3866_v20  ;;  %v3907_v55 = vmul.f32 2.1237322e-06, %v3906_v27  ;;  %v3918_v11 = vmul.f32 3.8918573e-05, %v3906_v27  ;;  %v3871_v2 = vmul.f32 %v3870_v47, %v3866_v20 }
 0x59b   :  { %v3862_v47 = vmul.f32 0.5, %v8978_v43 }
 0x59c   :  { %v3883_v53 = vadd.f32 0.112945676, %v3882_v46  ;;  %v3908_v8 = vadd.f32 0.00028619796, %v3907_v55  ;;  %v3919_v52 = vadd.f32 0.001143296, %v3918_v11 }
 0x59d   :  { %v3872_v49 = vadd.f32 0.05243302, %v3871_v2  ;;  %v3861_v11 = vmul.f32 0.5, %v8971_v0 }
 0x59e   :  { %v3884_v28 = vmul.f32 %v3883_v53, %v3866_v20  ;;  %v3909_v36 = vmul.f32 %v3908_v8, %v3906_v27  ;;  %v3920_v60 = vmul.f32 %v3919_v52, %v3906_v27 }
 0x59f   :  { %v3873_v39 = vmul.f32 %v3872_v49, %v3866_v20 }
 0x5a0   :  { %v3885_v35 = vadd.f32 0.4994258, %v3884_v28  ;;  %v3910_v14 = vadd.f32 0.0036580483, %v3909_v36  ;;  %v3921_v7 = vadd.f32 0.014752088, %v3920_v60 }
 0x5a1   :  { %v3874_v48 = vadd.f32 0.18741608, %v3873_v39 }
 0x5a2   :  { %v3886_v16 = vmul.f32 %v3885_v35, %v3866_v20  ;;  %v3922_v3 = vmul.f32 %v3921_v7, %v3906_v27  ;;  %v3911_v5 = vmul.f32 %v3910_v14, %v3906_v27 }
 0x5a3   :  { %v3875_v34 = vmul.f32 %v3874_v48, %v3866_v20 }
 0x5a4   :  { %v3887_v30 = vadd.f32 1.0, %v3886_v16  ;;  %v3923_v45 = vadd.f32 0.112945676, %v3922_v3  ;;  %v3912_v21 = vadd.f32 0.05243302, %v3911_v5 }
 0x5a5   :  { %v3876_v58 = vadd.f32 1.1283791, %v3875_v34 }
 0x5a6   :  { %6035 = vrcp.f32 %v3887_v30  ;;  %v3924_v10 = vmul.f32 %v3923_v45, %v3906_v27  ;;  %v3913_v56 = vmul.f32 %v3912_v21, %v3906_v27  ;;  %v3899_v19 = vand.u32 2147483648, %v3887_v30 }
 0x5a7   :  { %v3897_v41 = vand.u32 2147483647, %v3887_v30  ;;  %vm3893_vm5 = vweird.f32 %v3887_v30  ;;  %v3877_v13 = vmul.f32 %v3876_v58, %v8974_v9 }
 0x5a8   :  { %v3925_v12 = vadd.f32 0.4994258, %v3924_v10  ;;  %v3914_v63 = vadd.f32 0.18741608, %v3913_v56  ;;  %v3900_v4 = vor.u32 1.1754944e-38, %v3899_v19 }
 0x5a9   :  { %vm3898_vm7 = vcmp.eq.f32.partialorder %v3897_v41, 8.507059e+37  ;;  %v5981_v41 = vld [vmem:[%s9042_s11 + $0x8] sm:$0xff] }
 0x5aa   :  { %v3926_v29 = vmul.f32 %v3925_v12, %v3906_v27  ;;  %v3915_v22 = vmul.f32 %v3914_v63, %v3906_v27  ;;  %4123 = vmatpush.bf16.msra.mxu3 %v5981_v41 }
 0x5ac   :  { %v6036_v37 = vpop.eup %6035  ;;  %v3927_v57 = vadd.f32 1.0, %v3926_v29  ;;  %v3916_v20 = vadd.f32 1.1283791, %v3915_v22  ;;  %v5980_v22 = vld [vmem:[%s9042_s11] sm:$0xff] }
 0x5ad   :  { %v3889_v51 = vmul.f32 %v6036_v37, %v3887_v30  ;;  %vm3894_vm4 = vweird.f32 %v6036_v37 }
 0x5ae   :  { %6037 = vrcp.f32 %v3927_v57  ;;  %vm3895_vm6 = vmor %vm3893_vm5, %vm3894_vm4  ;;  %v3939_v38 = vand.u32 2147483648, %v3927_v57  ;;  %v3937_v17 = vand.u32 2147483647, %v3927_v57  ;;  %vm3933_vm9 = vweird.f32 %v3927_v57  ;;  %4124 = vmatpush.bf16.msra.mxu3 %v5980_v22 }
 0x5af   :  { %v3890_v33 = vsub.f32 1.0, %v3889_v51  ;;  %v3917_v26 = vmul.f32 %v3916_v20, %v8981_v18  ;;  %vm4113_vm5 = vcmask 261120  }
 0x5b0   :  { %v3940_v23 = vor.u32 1.1754944e-38, %v3939_v38  ;;  %vm3938_vm11 = vcmp.eq.f32.partialorder %v3937_v17, 8.507059e+37 }
 0x5b1   :  { %v3891_v61 = vmul.f32 %v6036_v37, %v3890_v33 }
 0x5b3   :  { %v3892_v1 = vadd.f32 %v6036_v37, %v3891_v61 }
 0x5b4   :  { %v6038_v50 = vpop.eup %6037 }
 0x5b5   :  { %v3896_v15 = vsel %vm3895_vm6, %v6036_v37, %v3892_v1  ;;  %v3929_v6 = vmul.f32 %v6038_v50, %v3927_v57  ;;  %vm3934_vm8 = vweird.f32 %v6038_v50  ;;  %vm4131_vm6 = vcmask 80896  }
 0x5b6   :  { %v3901_v44 = vsel %vm3898_vm7, %v3900_v4, %v3896_v15  ;;  %vm3935_vm10 = vmor %vm3933_vm9, %vm3934_vm8 }
 0x5b7   :  { %v3930_v59 = vsub.f32 1.0, %v3929_v6  ;;  %v3902_v31 = vmul.f32 %v3901_v44, %v3877_v13 }
 0x5b9   :  { %v3931_v25 = vmul.f32 %v6038_v50, %v3930_v59  ;;  %v5591_v24 = vclamps-f32 %v3902_v31, 1.0 }
 0x5bb   :  { %v3932_v62 = vadd.f32 %v6038_v50, %v3931_v25  ;;  %v3945_v55 = vadd.f32 1.0, %v5591_v24 }
 0x5bd   :  { %v3936_v27 = vsel %vm3935_vm10, %v6038_v50, %v3932_v62  ;;  %v3947_v8 = vmul.f32 %v3945_v55, %v3861_v11 }
 0x5be   :  { %v3941_v46 = vsel %vm3938_vm11, %v3940_v23, %v3936_v27 }
 0x5bf   :  { %v3942_v32 = vmul.f32 %v3941_v46, %v3917_v26 }
 0x5c1   :  { %v5592_v9 = vclamps-f32 %v3942_v32, 1.0 }
 0x5c3   :  { %v3946_v53 = vadd.f32 1.0, %v5592_v9 }
 0x5c5   :  { %v3948_v52 = vmul.f32 %v3946_v53, %v3862_v47 }
 0x5c7   :  { %v3949_v28 = vpack.c.bf16 %v3948_v52, %v3947_v8 }
 0x5c9   :  { %5609 = vmatmul.msk.bf16.vlgmr.msrb.gmra.mxu2 %vm3986_vm0, %v3949_v28 }
 0x64c   :  { %v3999_v36 = vpop.f32.mrf.mxu2 }
 0x64d   :  { %v9001_v60 = vadd.f32 %v5997_v42, %v3999_v36 }
 0x64f   :  { %v9004_v18 = vmul.f32 0.70710677, %v9001_v60 }
 0x651   :  { %v4008_v2 = vmul.f32 %v9004_v18, %v9004_v18 }
 0x653   :  { %v4009_v35 = vmin.f32 %v4008_v2, 16.0 }
 0x654   :  { %v4001_v0 = vpop.f32.mrf.mxu2 }
 0x655   :  { %v4010_v14 = vmul.f32 2.1237322e-06, %v4009_v35  ;;  %v4021_v43 = vmul.f32 3.8918573e-05, %v4009_v35  ;;  %v9008_v7 = vadd.f32 %v5997_v42, %v4001_v0 }
 0x657   :  { %v4011_v16 = vadd.f32 0.00028619796, %v4010_v14  ;;  %v4022_v40 = vadd.f32 0.001143296, %v4021_v43  ;;  %v9011_v3 = vmul.f32 0.70710677, %v9008_v7 }
 0x659   :  { %v4023_v49 = vmul.f32 %v4022_v40, %v4009_v35  ;;  %v4048_v30 = vmul.f32 %v9011_v3, %v9011_v3  ;;  %v4012_v5 = vmul.f32 %v4011_v16, %v4009_v35 }
 0x65b   :  { %v4024_v45 = vadd.f32 0.014752088, %v4023_v49  ;;  %v4049_v54 = vmin.f32 %v4048_v30, 16.0  ;;  %v4013_v12 = vadd.f32 0.0036580483, %v4012_v5 }
 0x65d   :  { %v4025_v10 = vmul.f32 %v4024_v45, %v4009_v35  ;;  %v4050_v39 = vmul.f32 2.1237322e-06, %v4049_v54  ;;  %v4061_v21 = vmul.f32 3.8918573e-05, %v4049_v54  ;;  %v4014_v33 = vmul.f32 %v4013_v12, %v4009_v35 }
 0x65f   :  { %v4026_v29 = vadd.f32 0.112945676, %v4025_v10  ;;  %v4051_v37 = vadd.f32 0.00028619796, %v4050_v39  ;;  %v4062_v48 = vadd.f32 0.001143296, %v4061_v21 }
 0x660   :  { %v4015_v58 = vadd.f32 0.05243302, %v4014_v33  ;;  %v4004_v39 = vmul.f32 0.5, %v9001_v60  ;;  %v4005_v21 = vmul.f32 0.5, %v9008_v7 }
 0x661   :  { %v4027_v51 = vmul.f32 %v4026_v29, %v4009_v35  ;;  %v4052_v56 = vmul.f32 %v4051_v37, %v4049_v54  ;;  %v4063_v57 = vmul.f32 %v4062_v48, %v4049_v54 }
 0x662   :  { %v4016_v44 = vmul.f32 %v4015_v58, %v4009_v35 }
 0x663   :  { %v4028_v34 = vadd.f32 0.4994258, %v4027_v51  ;;  %v4053_v61 = vadd.f32 0.0036580483, %v4052_v56  ;;  %v4064_v19 = vadd.f32 0.014752088, %v4063_v57 }
 0x664   :  { %v4017_v31 = vadd.f32 0.18741608, %v4016_v44  ;;  %v5998_v51 = vld [vmem:[#allocation10] ss:$0 sm:$0xff] }
 0x665   :  { %v4029_v63 = vmul.f32 %v4028_v34, %v4009_v35  ;;  %v4065_v1 = vmul.f32 %v4064_v19, %v4049_v54  ;;  %v4054_v15 = vmul.f32 %v4053_v61, %v4049_v54 }
 0x666   :  { %v4018_v24 = vmul.f32 %v4017_v31, %v4009_v35 }
 0x667   :  { %v4030_v50 = vadd.f32 1.0, %v4029_v63  ;;  %v4066_v4 = vadd.f32 0.112945676, %v4065_v1  ;;  %v4055_v13 = vadd.f32 0.05243302, %v4054_v15 }
 0x668   :  { %v4019_v9 = vadd.f32 1.1283791, %v4018_v24 }
 0x669   :  { %6039 = vrcp.f32 %v4030_v50  ;;  %v4067_v6 = vmul.f32 %v4066_v4, %v4049_v54  ;;  %v4056_v17 = vmul.f32 %v4055_v13, %v4049_v54  ;;  %v4042_v27 = vand.u32 2147483648, %v4030_v50 }
 0x66a   :  { %v4040_v32 = vand.u32 2147483647, %v4030_v50  ;;  %vm4036_vm13 = vweird.f32 %v4030_v50  ;;  %v4020_v42 = vmul.f32 %v4019_v9, %v9004_v18 }
 0x66b   :  { %v4068_v59 = vadd.f32 0.4994258, %v4067_v6  ;;  %v4057_v46 = vadd.f32 0.18741608, %v4056_v17  ;;  %v4043_v53 = vor.u32 1.1754944e-38, %v4042_v27 }
 0x66c   :  { %vm4041_vm15 = vcmp.eq.f32.partialorder %v4040_v32, 8.507059e+37 }
 0x66d   :  { %v4069_v20 = vmul.f32 %v4068_v59, %v4049_v54  ;;  %v4058_v8 = vmul.f32 %v4057_v46, %v4049_v54 }
 0x66f   :  { %v6040_v38 = vpop.eup %6039  ;;  %v4070_v62 = vadd.f32 1.0, %v4069_v20  ;;  %v4059_v2 = vadd.f32 1.1283791, %v4058_v8 }
 0x670   :  { %v4032_v25 = vmul.f32 %v6040_v38, %v4030_v50  ;;  %vm4037_vm12 = vweird.f32 %v6040_v38 }
 0x671   :  { %6041 = vrcp.f32 %v4070_v62  ;;  %vm4038_vm14 = vmor %vm4036_vm13, %vm4037_vm12  ;;  %v4082_v35 = vand.u32 2147483648, %v4070_v62  ;;  %v4080_v43 = vand.u32 2147483647, %v4070_v62  ;;  %vm4076_vm2 = vweird.f32 %v4070_v62 }
 0x672   :  { %v4033_v23 = vsub.f32 1.0, %v4032_v25  ;;  %v4060_v30 = vmul.f32 %v4059_v2, %v9011_v3 }
 0x673   :  { %v4083_v40 = vor.u32 1.1754944e-38, %v4082_v35  ;;  %vm4081_vm4 = vcmp.eq.f32.partialorder %v4080_v43, 8.507059e+37 }
 0x674   :  { %v4034_v26 = vmul.f32 %v6040_v38, %v4033_v23 }
 0x676   :  { %v4035_v55 = vadd.f32 %v6040_v38, %v4034_v26 }
 0x677   :  { %v6042_v11 = vpop.eup %6041 }
 0x678   :  { %v4039_v47 = vsel %vm4038_vm14, %v6040_v38, %v4035_v55  ;;  %v4072_v52 = vmul.f32 %v6042_v11, %v4070_v62  ;;  %vm4077_vm1 = vweird.f32 %v6042_v11 }
 0x679   :  { %v4044_v28 = vsel %vm4041_vm15, %v4043_v53, %v4039_v47  ;;  %vm4078_vm3 = vmor %vm4076_vm2, %vm4077_vm1 }
 0x67a   :  { %v4073_v36 = vsub.f32 1.0, %v4072_v52  ;;  %v4045_v0 = vmul.f32 %v4044_v28, %v4020_v42 }
 0x67c   :  { %v4074_v14 = vmul.f32 %v6042_v11, %v4073_v36  ;;  %v5610_v49 = vclamps-f32 %v4045_v0, 1.0 }
 0x67e   :  { %v4075_v16 = vadd.f32 %v6042_v11, %v4074_v14  ;;  %v4088_v10 = vadd.f32 1.0, %v5610_v49 }
 0x680   :  { %v4079_v5 = vsel %vm4078_vm3, %v6042_v11, %v4075_v16  ;;  %v4090_v29 = vmul.f32 %v4088_v10, %v4004_v39 }
 0x681   :  { %v4084_v45 = vsel %vm4081_vm4, %v4083_v40, %v4079_v5 }
 0x682   :  { %v4085_v54 = vmul.f32 %v4084_v45, %v4060_v30 }
 0x684   :  { %v5611_v18 = vclamps-f32 %v4085_v54, 1.0 }
 0x686   :  { %v4089_v12 = vadd.f32 1.0, %v5611_v18 }
 0x688   :  { %v4091_v37 = vmul.f32 %v4089_v12, %v4005_v21 }
 0x68a   :  { %v4092_v48 = vpack.c.bf16 %v4091_v37, %v4090_v29 }
 0x68c   :  { %5620 = vmatmul.msk.bf16.vlgmr.msra.gmra.mxu3 %vm4113_vm5, %v4092_v48 }
 0x70f   :  { %v4126_v56 = vpop.f32.mrf.mxu3 }
 0x710   :  { %v4127_v3 = vadd.f32 %v5998_v51, %v4126_v56 }
 0x712   :  { %4132 = vst.msk [vmem:[%s9048_s17] sm:$0xff] %vm4131_vm6, %v4127_v3 }
 0x717   :  { %v4128_v57 = vpop.f32.mrf.mxu3 }
 0x718   :  { %v4129_v33 = vadd.f32 %v5998_v51, %v4128_v57 }
 0x71a   :  { %4133 = vst.msk [vmem:[%s9048_s17 + $0x8] sm:$0xff] %vm4131_vm6, %v4129_v33 }
 0x71b   :  { %4138 = vsyncpa [#allocation3], 1 }
 0x71c   :  { %4139 = vsyncpa [#allocation5], 1 }
 0x71d   :  { %4140 = vsyncpa [#allocation8], 1 }
 0x71e   :  { %4141 = vsyncpa [#allocation11], 1 }
 0x71f   :  { %4142 = vsyncpa [#allocation14], 1 }

</bundles_post_ra>
